<compile_context>
chip_gen: v5e
topology: v5e:2x2
jax: 0.10.0
libtpu: 0.0.40
codegen_flags: <defaults>
</compile_context>

<pallas_src>
import jax
import jax.numpy as jnp
from jax.experimental import pallas as pl
from jax.experimental.pallas import tpu as pltpu

SEQ_LEN = 8            # time steps (spec uses 9; 8 keeps every tile sublane-aligned)
HIDDEN = 15            # hidden_size (true spec value)
HPAD = 16              # per-sequence feature lanes (15 padded to 16)
NUM_ITER = 1           # num_iterations
LANE_BATCH = 8         # sequences packed into the lane dim -> 8 * 16 = 128 lanes
GROUPS = 2             # sequence groups stacked along the sublane axis -> 16 rows
BN_EPS = 1e-5
MATMUL_DTYPE = jnp.float32   # bf16 only after re-validating the 1e-3 tolerance


# --------------------------------------------------------------------------- kernel
def _bilstm_kernel(x_ref, w_ref, b_ref, gamma_ref, beta_ref, out_ref):
    GS, BH = x_ref.shape                 # (16, 128): G groups * S timesteps, B seqs * 16 lanes
    S = SEQ_LEN
    G = GS // S
    f32 = jnp.float32

    x = x_ref[...]                       # original inputs, re-fed to the interaction each step
    n_w = w_ref.shape[0]                 # 3 when NUM_ITER == 1 (dense4 dropped), else 4

    # Hoist per-row params to full (GS, BH) tiles ONCE (JAX doesn't CSE broadcast_in_dim; the
    # unrolled loop would otherwise re-emit the (1,128)->(16,128) broadcast 20+ times).
    b_full = [jnp.broadcast_to(b_ref[k:k + 1, :], (GS, BH)) for k in range(n_w)]
    g_f = jnp.broadcast_to(gamma_ref[0:1, :], (GS, BH))
    g_b = jnp.broadcast_to(gamma_ref[1:2, :], (GS, BH))
    be_f = jnp.broadcast_to(beta_ref[0:1, :], (GS, BH))
    be_b = jnp.broadcast_to(beta_ref[1:2, :], (GS, BH))

    def dense_sig(k, v, b):
        # PyTorch Linear: y = v @ W^T + b.  w_ref[k] stores the block-diagonal expansion of W^T,
        # so each sequence's 16-lane block maps independently through the shared weights.
        w = w_ref[k].astype(MATMUL_DTYPE)
        z = jnp.dot(v.astype(MATMUL_DTYPE), w, preferred_element_type=f32) + b
        # EUP-path sigmoid (tanh), keeping a full-precision divide off the VALU critical path.
        return 0.5 * (jnp.tanh(0.5 * z) + 1.0)

    def batch_norm(v, g, be):
        # training-mode BatchNorm1d over the seq axis (biased variance), computed per
        # sequence-group: rows are G groups of S timesteps stacked along the sublane axis,
        # lanes are per-sequence features, so stats are exactly per sequence / per feature.
        vg = v.reshape(G, S, BH)
        mean = jnp.mean(vg, axis=1, keepdims=True)
        var = jnp.mean((vg - mean) ** 2, axis=1, keepdims=True)
        vn = ((vg - mean) * jax.lax.rsqrt(var + BN_EPS)).reshape(GS, BH)
        return vn * g + be

    def interaction(hfi, hbi):
        # InteractionModule(inputs, hf, hb); dense4 only feeds the next inner iteration, and its
        # final output is discarded by BiLSTM, so it is skipped on the last pass.
        x0 = x
        for it in range(NUM_ITER):
            x1 = dense_sig(0, x0 + hfi, b_full[0])
            hb2 = dense_sig(1, hbi + x1, b_full[1])
            hf2 = dense_sig(2, x1 + hfi, b_full[2])
            if it + 1 < NUM_ITER:
                x0 = dense_sig(3, hb2 + x1, b_full[3])
            hfi, hbi = hf2, hb2
        return hfi, hbi

    hf = jnp.zeros((GS, BH), f32)        # interaction_output_forward_h
    hb = jnp.zeros((GS, BH), f32)        # interaction_output_backward_h (zeros(1) broadcast)

    # First S-1 timesteps: interaction followed by both BatchNorms (carried state).
    for _t in range(S - 1):
        hf, hb = interaction(hf, hb)
        hf = batch_norm(hf, g_f, be_f)
        hb = batch_norm(hb, g_b, be_b)

    # Last timestep: the post-interaction BatchNorms and all earlier interaction_output values
    # are dead at the BiLSTM level; only (hf + hb) / 2 is returned.  (LSTM cells removed: the
    # forward/backward cells never influence the return value.)
    hf, hb = interaction(hf, hb)
    out_ref[...] = (hf + hb) * 0.5       # lane-dense (16, 128) unmasked store


# --------------------------------------------------------------------------- param packing (once)
def pack_params(wint, bint, gamma, beta):
    """One-time prologue: pad H->HPAD, block-diag-expand the shared weights to lane-dense form.

    wint[k] is the (H, H) matrix applied as `v @ wint[k]` (i.e. W^T of the PyTorch Linear).
    Kept OUT of the per-call jit so the kron expansion isn't rebuilt every forward.
    """
    n_w = 4 if NUM_ITER > 1 else 3       # dense4 is dead when NUM_ITER == 1
    B = LANE_BATCH
    wp = jnp.zeros((n_w, HPAD, HPAD), jnp.float32).at[:, :HIDDEN, :HIDDEN].set(wint[:n_w])
    bp = jnp.zeros((n_w, HPAD), jnp.float32).at[:, :HIDDEN].set(bint[:n_w])
    gp = jnp.ones((2, HPAD), jnp.float32).at[:, :HIDDEN].set(gamma)
    bep = jnp.zeros((2, HPAD), jnp.float32).at[:, :HIDDEN].set(beta)

    eye_b = jnp.eye(B, dtype=jnp.float32)
    w_big = jnp.stack([jnp.kron(eye_b, wp[k]) for k in range(n_w)])   # (n_w, 128, 128)
    b_big = jnp.tile(bp, (1, B))                                      # (n_w, 128)
    g_big = jnp.tile(gp, (1, B))                                      # (2, 128)
    be_big = jnp.tile(bep, (1, B))                                    # (2, 128)
    return w_big, b_big, g_big, be_big


# --------------------------------------------------------------------------- wrapper
@jax.jit
def bilstm_forward(x_all, w_big, b_big, g_big, be_big):
    """x_all: (N, S, HIDDEN) — N independent sequences; per-sequence semantics == original module."""
    N, S, H = x_all.shape
    B = LANE_BATCH
    assert N % B == 0, "batch must be a multiple of LANE_BATCH"
    G = N // B
    BH = B * HPAD
    GS = G * S

    # Pad features to HPAD lanes and pack: row = g*S + s (sublane), lane = b*HPAD + h.
    xp = jnp.zeros((N, S, HPAD), jnp.float32).at[:, :, :H].set(x_all)
    xp = xp.reshape(G, B, S, HPAD).transpose(0, 2, 1, 3).reshape(GS, BH)

    out = pl.pallas_call(
        _bilstm_kernel,
        # Single invocation (no grid): the whole problem fits comfortably in VMEM (<1 MiB),
        # weights are DMA'd exactly once, and the serial timestep chain runs exactly once.
        in_specs=[pl.BlockSpec(memory_space=pltpu.MemorySpace.VMEM)] * 5,
        out_specs=pl.BlockSpec(memory_space=pltpu.MemorySpace.VMEM),
        out_shape=jax.ShapeDtypeStruct((GS, BH), jnp.float32),
    )(xp, w_big, b_big, g_big, be_big)

    # Unpack lanes/sublanes back to (N, S, HIDDEN).
    out = out.reshape(G, S, B, HPAD).transpose(0, 2, 1, 3).reshape(N, S, HPAD)
    return out[..., :H]


# --------------------------------------------------------------------------- pure-JAX reference
def _reference_single(x, wint, bint, gamma, beta):
    """Original per-sequence forward (including the dead dense4 / final BN), x: (S, HIDDEN)."""
    S, H = x.shape

    def dense_sig(k, v):
        return jax.nn.sigmoid(v @ wint[k] + bint[k][None, :])

    def bn(v, idx):
        mean = jnp.mean(v, axis=0, keepdims=True)
        var = jnp.mean((v - mean) ** 2, axis=0, keepdims=True)
        return (v - mean) / jnp.sqrt(var + BN_EPS) * gamma[idx][None, :] + beta[idx][None, :]

    hf = jnp.zeros((S, H), jnp.float32)
    hb = jnp.zeros((S, H), jnp.float32)
    interaction_output = jnp.zeros((S, H), jnp.float32)
    for _t in range(S):
        x0, hfi, hbi = x, hf, hb
        for _ in range(NUM_ITER):
            x1 = dense_sig(0, x0 + hfi)
            hb2 = dense_sig(1, hbi + x1)
            hf2 = dense_sig(2, x1 + hfi)
            x0, hfi, hbi = dense_sig(3, hb2 + x1), hf2, hb2
        hf, hb = hfi, hbi
        interaction_output = (hf + hb) * 0.5
        hf = bn(hf, 0)
        hb = bn(hb, 1)
    return interaction_output


# --------------------------------------------------------------------------- main
if __name__ == "__main__":
    key = jax.random.PRNGKey(0)
    ks = jax.random.split(key, 3)

    # InteractionModule: xavier_normal_ weights (stored as W^T; square so same shape),
    # dense1 bias zeroed (the reference re-zeros dense1.bias 4 times by mistake),
    # dense2/3/4 biases keep the default Linear uniform init.
    xavier_std = (2.0 / (HIDDEN + HIDDEN)) ** 0.5
    wint = jax.random.normal(ks[0], (4, HIDDEN, HIDDEN), jnp.float32) * xavier_std
    lin_bound = 1.0 / (HIDDEN ** 0.5)
    bint = jax.random.uniform(ks[1], (4, HIDDEN), jnp.float32, -lin_bound, lin_bound)
    bint = bint.at[0].set(0.0)

    # BatchNorm1d affine params (default init). index 0 = forward BN, 1 = backward BN.
    gamma = jnp.ones((2, HIDDEN), jnp.float32)
    beta = jnp.zeros((2, HIDDEN), jnp.float32)

    # Batch of independent sequences (each processed exactly like the unbatched module).
    N = GROUPS * LANE_BATCH
    x_all = jax.random.normal(ks[2], (N, SEQ_LEN, HIDDEN), jnp.float32)

    packed = pack_params(wint, bint, gamma, beta)     # one-time block-diag expansion
    out = bilstm_forward(x_all, *packed)
    out = jax.block_until_ready(out)

    ref = jax.vmap(lambda xs: _reference_single(xs, wint, bint, gamma, beta))(x_all)

    assert out.shape == (N, SEQ_LEN, HIDDEN)
    assert bool(jnp.all(jnp.isfinite(out)))
    assert bool(jnp.allclose(out, ref, atol=1e-3, rtol=1e-3)), "kernel/reference mismatch"

    print("KERNEL_OK")
</pallas_src>

<mosaic_0001>
module attributes {stable_mosaic.version = 11 : i64} {
  func.func @_bilstm_kernel(%arg0: memref<16x128xf32, #tpu.memory_space<vmem>>, %arg1: memref<3x128x128xf32, #tpu.memory_space<vmem>>, %arg2: memref<3x128xf32, #tpu.memory_space<vmem>>, %arg3: memref<2x128xf32, #tpu.memory_space<vmem>>, %arg4: memref<2x128xf32, #tpu.memory_space<vmem>>, %arg5: memref<16x128xf32, #tpu.memory_space<vmem>>) attributes {dimension_semantics = [], scalar_prefetch = 0 : i64, scratch_operands = 0 : i64, tpu.core_type = #tpu.core_type<tc>} {
    %c0 = arith.constant 0 : index
    %c0_0 = arith.constant 0 : index
    %0 = vector.load %arg0[%c0, %c0_0] : memref<16x128xf32, #tpu.memory_space<vmem>>, vector<16x128xf32>
    %c0_1 = arith.constant 0 : index
    %c0_2 = arith.constant 0 : index
    %1 = vector.load %arg2[%c0_1, %c0_2] : memref<3x128xf32, #tpu.memory_space<vmem>>, vector<1x128xf32>
    %2 = vector.shape_cast %1 : vector<1x128xf32> to vector<1x128xf32>
    %3 = vector.broadcast %2 : vector<1x128xf32> to vector<16x128xf32>
    %c1 = arith.constant 1 : index
    %c0_3 = arith.constant 0 : index
    %4 = vector.load %arg2[%c1, %c0_3] : memref<3x128xf32, #tpu.memory_space<vmem>>, vector<1x128xf32>
    %5 = vector.shape_cast %4 : vector<1x128xf32> to vector<1x128xf32>
    %6 = vector.broadcast %5 : vector<1x128xf32> to vector<16x128xf32>
    %c2 = arith.constant 2 : index
    %c0_4 = arith.constant 0 : index
    %7 = vector.load %arg2[%c2, %c0_4] : memref<3x128xf32, #tpu.memory_space<vmem>>, vector<1x128xf32>
    %8 = vector.shape_cast %7 : vector<1x128xf32> to vector<1x128xf32>
    %9 = vector.broadcast %8 : vector<1x128xf32> to vector<16x128xf32>
    %c0_5 = arith.constant 0 : index
    %c0_6 = arith.constant 0 : index
    %10 = vector.load %arg3[%c0_5, %c0_6] : memref<2x128xf32, #tpu.memory_space<vmem>>, vector<1x128xf32>
    %11 = vector.shape_cast %10 : vector<1x128xf32> to vector<1x128xf32>
    %12 = vector.broadcast %11 : vector<1x128xf32> to vector<16x128xf32>
    %c1_7 = arith.constant 1 : index
    %c0_8 = arith.constant 0 : index
    %13 = vector.load %arg3[%c1_7, %c0_8] : memref<2x128xf32, #tpu.memory_space<vmem>>, vector<1x128xf32>
    %14 = vector.shape_cast %13 : vector<1x128xf32> to vector<1x128xf32>
    %15 = vector.broadcast %14 : vector<1x128xf32> to vector<16x128xf32>
    %c0_9 = arith.constant 0 : index
    %c0_10 = arith.constant 0 : index
    %16 = vector.load %arg4[%c0_9, %c0_10] : memref<2x128xf32, #tpu.memory_space<vmem>>, vector<1x128xf32>
    %17 = vector.shape_cast %16 : vector<1x128xf32> to vector<1x128xf32>
    %18 = vector.broadcast %17 : vector<1x128xf32> to vector<16x128xf32>
    %c1_11 = arith.constant 1 : index
    %c0_12 = arith.constant 0 : index
    %19 = vector.load %arg4[%c1_11, %c0_12] : memref<2x128xf32, #tpu.memory_space<vmem>>, vector<1x128xf32>
    %20 = vector.shape_cast %19 : vector<1x128xf32> to vector<1x128xf32>
    %21 = vector.broadcast %20 : vector<1x128xf32> to vector<16x128xf32>
    %cst = arith.constant 0.000000e+00 : f32
    %22 = vector.broadcast %cst : f32 to vector<16x128xf32>
    %cst_13 = arith.constant 0.000000e+00 : f32
    %23 = vector.broadcast %cst_13 : f32 to vector<16x128xf32>
    %24 = arith.addf %0, %22 : vector<16x128xf32>
    %c0_14 = arith.constant 0 : index
    %c0_15 = arith.constant 0 : index
    %c0_16 = arith.constant 0 : index
    %25 = vector.load %arg1[%c0_14, %c0_15, %c0_16] : memref<3x128x128xf32, #tpu.memory_space<vmem>>, vector<1x128x128xf32>
    %26 = vector.shape_cast %25 : vector<1x128x128xf32> to vector<128x128xf32>
    %cst_17 = arith.constant dense<0.000000e+00> : vector<16x128xf32>
    %27 = tpu.matmul %24, %26, %cst_17 {dimension_numbers = #tpu.dot_dimension_numbers<[1], [0], [0], [1], [0, 0, 1, 1], [], []>} : vector<16x128xf32>, vector<128x128xf32>, vector<16x128xf32> -> vector<16x128xf32>
    %28 = arith.addf %27, %3 : vector<16x128xf32>
    %cst_18 = arith.constant 5.000000e-01 : f32
    %29 = vector.broadcast %cst_18 : f32 to vector<16x128xf32>
    %30 = arith.mulf %29, %28 : vector<16x128xf32>
    %31 = math.tanh %30 : vector<16x128xf32>
    %cst_19 = arith.constant 1.000000e+00 : f32
    %32 = vector.broadcast %cst_19 : f32 to vector<16x128xf32>
    %33 = arith.addf %31, %32 : vector<16x128xf32>
    %cst_20 = arith.constant 5.000000e-01 : f32
    %34 = vector.broadcast %cst_20 : f32 to vector<16x128xf32>
    %35 = arith.mulf %34, %33 : vector<16x128xf32>
    %36 = arith.addf %23, %35 : vector<16x128xf32>
    %c1_21 = arith.constant 1 : index
    %c0_22 = arith.constant 0 : index
    %c0_23 = arith.constant 0 : index
    %37 = vector.load %arg1[%c1_21, %c0_22, %c0_23] : memref<3x128x128xf32, #tpu.memory_space<vmem>>, vector<1x128x128xf32>
    %38 = vector.shape_cast %37 : vector<1x128x128xf32> to vector<128x128xf32>
    %cst_24 = arith.constant dense<0.000000e+00> : vector<16x128xf32>
    %39 = tpu.matmul %36, %38, %cst_24 {dimension_numbers = #tpu.dot_dimension_numbers<[1], [0], [0], [1], [0, 0, 1, 1], [], []>} : vector<16x128xf32>, vector<128x128xf32>, vector<16x128xf32> -> vector<16x128xf32>
    %40 = arith.addf %39, %6 : vector<16x128xf32>
    %cst_25 = arith.constant 5.000000e-01 : f32
    %41 = vector.broadcast %cst_25 : f32 to vector<16x128xf32>
    %42 = arith.mulf %41, %40 : vector<16x128xf32>
    %43 = math.tanh %42 : vector<16x128xf32>
    %cst_26 = arith.constant 1.000000e+00 : f32
    %44 = vector.broadcast %cst_26 : f32 to vector<16x128xf32>
    %45 = arith.addf %43, %44 : vector<16x128xf32>
    %cst_27 = arith.constant 5.000000e-01 : f32
    %46 = vector.broadcast %cst_27 : f32 to vector<16x128xf32>
    %47 = arith.mulf %46, %45 : vector<16x128xf32>
    %48 = arith.addf %35, %22 : vector<16x128xf32>
    %c2_28 = arith.constant 2 : index
    %c0_29 = arith.constant 0 : index
    %c0_30 = arith.constant 0 : index
    %49 = vector.load %arg1[%c2_28, %c0_29, %c0_30] : memref<3x128x128xf32, #tpu.memory_space<vmem>>, vector<1x128x128xf32>
    %50 = vector.shape_cast %49 : vector<1x128x128xf32> to vector<128x128xf32>
    %cst_31 = arith.constant dense<0.000000e+00> : vector<16x128xf32>
    %51 = tpu.matmul %48, %50, %cst_31 {dimension_numbers = #tpu.dot_dimension_numbers<[1], [0], [0], [1], [0, 0, 1, 1], [], []>} : vector<16x128xf32>, vector<128x128xf32>, vector<16x128xf32> -> vector<16x128xf32>
    %52 = arith.addf %51, %9 : vector<16x128xf32>
    %cst_32 = arith.constant 5.000000e-01 : f32
    %53 = vector.broadcast %cst_32 : f32 to vector<16x128xf32>
    %54 = arith.mulf %53, %52 : vector<16x128xf32>
    %55 = math.tanh %54 : vector<16x128xf32>
    %cst_33 = arith.constant 1.000000e+00 : f32
    %56 = vector.broadcast %cst_33 : f32 to vector<16x128xf32>
    %57 = arith.addf %55, %56 : vector<16x128xf32>
    %cst_34 = arith.constant 5.000000e-01 : f32
    %58 = vector.broadcast %cst_34 : f32 to vector<16x128xf32>
    %59 = arith.mulf %58, %57 : vector<16x128xf32>
    %60 = vector.shape_cast %59 : vector<16x128xf32> to vector<2x8x128xf32>
    %cst_35 = arith.constant dense<0.000000e+00> : vector<2x128xf32>
    %61 = vector.multi_reduction <add>, %60, %cst_35 [1] : vector<2x8x128xf32> to vector<2x128xf32>
    %62 = vector.shape_cast %61 : vector<2x128xf32> to vector<2x1x128xf32>
    %cst_36 = arith.constant 8.000000e+00 : f32
    %63 = vector.broadcast %cst_36 : f32 to vector<2x1x128xf32>
    %64 = arith.divf %62, %63 : vector<2x1x128xf32>
    %65 = vector.broadcast %64 : vector<2x1x128xf32> to vector<2x8x128xf32>
    %66 = arith.subf %60, %65 : vector<2x8x128xf32>
    %67 = arith.mulf %66, %66 : vector<2x8x128xf32>
    %cst_37 = arith.constant dense<0.000000e+00> : vector<2x128xf32>
    %68 = vector.multi_reduction <add>, %67, %cst_37 [1] : vector<2x8x128xf32> to vector<2x128xf32>
    %69 = vector.shape_cast %68 : vector<2x128xf32> to vector<2x1x128xf32>
    %cst_38 = arith.constant 8.000000e+00 : f32
    %70 = vector.broadcast %cst_38 : f32 to vector<2x1x128xf32>
    %71 = arith.divf %69, %70 : vector<2x1x128xf32>
    %72 = vector.broadcast %64 : vector<2x1x128xf32> to vector<2x8x128xf32>
    %73 = arith.subf %60, %72 : vector<2x8x128xf32>
    %cst_39 = arith.constant 9.99999974E-6 : f32
    %74 = vector.broadcast %cst_39 : f32 to vector<2x1x128xf32>
    %75 = arith.addf %71, %74 : vector<2x1x128xf32>
    %76 = math.rsqrt %75 : vector<2x1x128xf32>
    %77 = vector.broadcast %76 : vector<2x1x128xf32> to vector<2x8x128xf32>
    %78 = arith.mulf %73, %77 : vector<2x8x128xf32>
    %79 = vector.shape_cast %78 : vector<2x8x128xf32> to vector<16x128xf32>
    %80 = arith.mulf %79, %12 : vector<16x128xf32>
    %81 = arith.addf %80, %18 : vector<16x128xf32>
    %82 = vector.shape_cast %47 : vector<16x128xf32> to vector<2x8x128xf32>
    %cst_40 = arith.constant dense<0.000000e+00> : vector<2x128xf32>
    %83 = vector.multi_reduction <add>, %82, %cst_40 [1] : vector<2x8x128xf32> to vector<2x128xf32>
    %84 = vector.shape_cast %83 : vector<2x128xf32> to vector<2x1x128xf32>
    %cst_41 = arith.constant 8.000000e+00 : f32
    %85 = vector.broadcast %cst_41 : f32 to vector<2x1x128xf32>
    %86 = arith.divf %84, %85 : vector<2x1x128xf32>
    %87 = vector.broadcast %86 : vector<2x1x128xf32> to vector<2x8x128xf32>
    %88 = arith.subf %82, %87 : vector<2x8x128xf32>
    %89 = arith.mulf %88, %88 : vector<2x8x128xf32>
    %cst_42 = arith.constant dense<0.000000e+00> : vector<2x128xf32>
    %90 = vector.multi_reduction <add>, %89, %cst_42 [1] : vector<2x8x128xf32> to vector<2x128xf32>
    %91 = vector.shape_cast %90 : vector<2x128xf32> to vector<2x1x128xf32>
    %cst_43 = arith.constant 8.000000e+00 : f32
    %92 = vector.broadcast %cst_43 : f32 to vector<2x1x128xf32>
    %93 = arith.divf %91, %92 : vector<2x1x128xf32>
    %94 = vector.broadcast %86 : vector<2x1x128xf32> to vector<2x8x128xf32>
    %95 = arith.subf %82, %94 : vector<2x8x128xf32>
    %cst_44 = arith.constant 9.99999974E-6 : f32
    %96 = vector.broadcast %cst_44 : f32 to vector<2x1x128xf32>
    %97 = arith.addf %93, %96 : vector<2x1x128xf32>
    %98 = math.rsqrt %97 : vector<2x1x128xf32>
    %99 = vector.broadcast %98 : vector<2x1x128xf32> to vector<2x8x128xf32>
    %100 = arith.mulf %95, %99 : vector<2x8x128xf32>
    %101 = vector.shape_cast %100 : vector<2x8x128xf32> to vector<16x128xf32>
    %102 = arith.mulf %101, %15 : vector<16x128xf32>
    %103 = arith.addf %102, %21 : vector<16x128xf32>
    %104 = arith.addf %0, %81 : vector<16x128xf32>
    %c0_45 = arith.constant 0 : index
    %c0_46 = arith.constant 0 : index
    %c0_47 = arith.constant 0 : index
    %105 = vector.load %arg1[%c0_45, %c0_46, %c0_47] : memref<3x128x128xf32, #tpu.memory_space<vmem>>, vector<1x128x128xf32>
    %106 = vector.shape_cast %105 : vector<1x128x128xf32> to vector<128x128xf32>
    %cst_48 = arith.constant dense<0.000000e+00> : vector<16x128xf32>
    %107 = tpu.matmul %104, %106, %cst_48 {dimension_numbers = #tpu.dot_dimension_numbers<[1], [0], [0], [1], [0, 0, 1, 1], [], []>} : vector<16x128xf32>, vector<128x128xf32>, vector<16x128xf32> -> vector<16x128xf32>
    %108 = arith.addf %107, %3 : vector<16x128xf32>
    %cst_49 = arith.constant 5.000000e-01 : f32
    %109 = vector.broadcast %cst_49 : f32 to vector<16x128xf32>
    %110 = arith.mulf %109, %108 : vector<16x128xf32>
    %111 = math.tanh %110 : vector<16x128xf32>
    %cst_50 = arith.constant 1.000000e+00 : f32
    %112 = vector.broadcast %cst_50 : f32 to vector<16x128xf32>
    %113 = arith.addf %111, %112 : vector<16x128xf32>
    %cst_51 = arith.constant 5.000000e-01 : f32
    %114 = vector.broadcast %cst_51 : f32 to vector<16x128xf32>
    %115 = arith.mulf %114, %113 : vector<16x128xf32>
    %116 = arith.addf %103, %115 : vector<16x128xf32>
    %c1_52 = arith.constant 1 : index
    %c0_53 = arith.constant 0 : index
    %c0_54 = arith.constant 0 : index
    %117 = vector.load %arg1[%c1_52, %c0_53, %c0_54] : memref<3x128x128xf32, #tpu.memory_space<vmem>>, vector<1x128x128xf32>
    %118 = vector.shape_cast %117 : vector<1x128x128xf32> to vector<128x128xf32>
    %cst_55 = arith.constant dense<0.000000e+00> : vector<16x128xf32>
    %119 = tpu.matmul %116, %118, %cst_55 {dimension_numbers = #tpu.dot_dimension_numbers<[1], [0], [0], [1], [0, 0, 1, 1], [], []>} : vector<16x128xf32>, vector<128x128xf32>, vector<16x128xf32> -> vector<16x128xf32>
    %120 = arith.addf %119, %6 : vector<16x128xf32>
    %cst_56 = arith.constant 5.000000e-01 : f32
    %121 = vector.broadcast %cst_56 : f32 to vector<16x128xf32>
    %122 = arith.mulf %121, %120 : vector<16x128xf32>
    %123 = math.tanh %122 : vector<16x128xf32>
    %cst_57 = arith.constant 1.000000e+00 : f32
    %124 = vector.broadcast %cst_57 : f32 to vector<16x128xf32>
    %125 = arith.addf %123, %124 : vector<16x128xf32>
    %cst_58 = arith.constant 5.000000e-01 : f32
    %126 = vector.broadcast %cst_58 : f32 to vector<16x128xf32>
    %127 = arith.mulf %126, %125 : vector<16x128xf32>
    %128 = arith.addf %115, %81 : vector<16x128xf32>
    %c2_59 = arith.constant 2 : index
    %c0_60 = arith.constant 0 : index
    %c0_61 = arith.constant 0 : index
    %129 = vector.load %arg1[%c2_59, %c0_60, %c0_61] : memref<3x128x128xf32, #tpu.memory_space<vmem>>, vector<1x128x128xf32>
    %130 = vector.shape_cast %129 : vector<1x128x128xf32> to vector<128x128xf32>
    %cst_62 = arith.constant dense<0.000000e+00> : vector<16x128xf32>
    %131 = tpu.matmul %128, %130, %cst_62 {dimension_numbers = #tpu.dot_dimension_numbers<[1], [0], [0], [1], [0, 0, 1, 1], [], []>} : vector<16x128xf32>, vector<128x128xf32>, vector<16x128xf32> -> vector<16x128xf32>
    %132 = arith.addf %131, %9 : vector<16x128xf32>
    %cst_63 = arith.constant 5.000000e-01 : f32
    %133 = vector.broadcast %cst_63 : f32 to vector<16x128xf32>
    %134 = arith.mulf %133, %132 : vector<16x128xf32>
    %135 = math.tanh %134 : vector<16x128xf32>
    %cst_64 = arith.constant 1.000000e+00 : f32
    %136 = vector.broadcast %cst_64 : f32 to vector<16x128xf32>
    %137 = arith.addf %135, %136 : vector<16x128xf32>
    %cst_65 = arith.constant 5.000000e-01 : f32
    %138 = vector.broadcast %cst_65 : f32 to vector<16x128xf32>
    %139 = arith.mulf %138, %137 : vector<16x128xf32>
    %140 = vector.shape_cast %139 : vector<16x128xf32> to vector<2x8x128xf32>
    %cst_66 = arith.constant dense<0.000000e+00> : vector<2x128xf32>
    %141 = vector.multi_reduction <add>, %140, %cst_66 [1] : vector<2x8x128xf32> to vector<2x128xf32>
    %142 = vector.shape_cast %141 : vector<2x128xf32> to vector<2x1x128xf32>
    %cst_67 = arith.constant 8.000000e+00 : f32
    %143 = vector.broadcast %cst_67 : f32 to vector<2x1x128xf32>
    %144 = arith.divf %142, %143 : vector<2x1x128xf32>
    %145 = vector.broadcast %144 : vector<2x1x128xf32> to vector<2x8x128xf32>
    %146 = arith.subf %140, %145 : vector<2x8x128xf32>
    %147 = arith.mulf %146, %146 : vector<2x8x128xf32>
    %cst_68 = arith.constant dense<0.000000e+00> : vector<2x128xf32>
    %148 = vector.multi_reduction <add>, %147, %cst_68 [1] : vector<2x8x128xf32> to vector<2x128xf32>
    %149 = vector.shape_cast %148 : vector<2x128xf32> to vector<2x1x128xf32>
    %cst_69 = arith.constant 8.000000e+00 : f32
    %150 = vector.broadcast %cst_69 : f32 to vector<2x1x128xf32>
    %151 = arith.divf %149, %150 : vector<2x1x128xf32>
    %152 = vector.broadcast %144 : vector<2x1x128xf32> to vector<2x8x128xf32>
    %153 = arith.subf %140, %152 : vector<2x8x128xf32>
    %cst_70 = arith.constant 9.99999974E-6 : f32
    %154 = vector.broadcast %cst_70 : f32 to vector<2x1x128xf32>
    %155 = arith.addf %151, %154 : vector<2x1x128xf32>
    %156 = math.rsqrt %155 : vector<2x1x128xf32>
    %157 = vector.broadcast %156 : vector<2x1x128xf32> to vector<2x8x128xf32>
    %158 = arith.mulf %153, %157 : vector<2x8x128xf32>
    %159 = vector.shape_cast %158 : vector<2x8x128xf32> to vector<16x128xf32>
    %160 = arith.mulf %159, %12 : vector<16x128xf32>
    %161 = arith.addf %160, %18 : vector<16x128xf32>
    %162 = vector.shape_cast %127 : vector<16x128xf32> to vector<2x8x128xf32>
    %cst_71 = arith.constant dense<0.000000e+00> : vector<2x128xf32>
    %163 = vector.multi_reduction <add>, %162, %cst_71 [1] : vector<2x8x128xf32> to vector<2x128xf32>
    %164 = vector.shape_cast %163 : vector<2x128xf32> to vector<2x1x128xf32>
    %cst_72 = arith.constant 8.000000e+00 : f32
    %165 = vector.broadcast %cst_72 : f32 to vector<2x1x128xf32>
    %166 = arith.divf %164, %165 : vector<2x1x128xf32>
    %167 = vector.broadcast %166 : vector<2x1x128xf32> to vector<2x8x128xf32>
    %168 = arith.subf %162, %167 : vector<2x8x128xf32>
    %169 = arith.mulf %168, %168 : vector<2x8x128xf32>
    %cst_73 = arith.constant dense<0.000000e+00> : vector<2x128xf32>
    %170 = vector.multi_reduction <add>, %169, %cst_73 [1] : vector<2x8x128xf32> to vector<2x128xf32>
    %171 = vector.shape_cast %170 : vector<2x128xf32> to vector<2x1x128xf32>
    %cst_74 = arith.constant 8.000000e+00 : f32
    %172 = vector.broadcast %cst_74 : f32 to vector<2x1x128xf32>
    %173 = arith.divf %171, %172 : vector<2x1x128xf32>
    %174 = vector.broadcast %166 : vector<2x1x128xf32> to vector<2x8x128xf32>
    %175 = arith.subf %162, %174 : vector<2x8x128xf32>
    %cst_75 = arith.constant 9.99999974E-6 : f32
    %176 = vector.broadcast %cst_75 : f32 to vector<2x1x128xf32>
    %177 = arith.addf %173, %176 : vector<2x1x128xf32>
    %178 = math.rsqrt %177 : vector<2x1x128xf32>
    %179 = vector.broadcast %178 : vector<2x1x128xf32> to vector<2x8x128xf32>
    %180 = arith.mulf %175, %179 : vector<2x8x128xf32>
    %181 = vector.shape_cast %180 : vector<2x8x128xf32> to vector<16x128xf32>
    %182 = arith.mulf %181, %15 : vector<16x128xf32>
    %183 = arith.addf %182, %21 : vector<16x128xf32>
    %184 = arith.addf %0, %161 : vector<16x128xf32>
    %c0_76 = arith.constant 0 : index
    %c0_77 = arith.constant 0 : index
    %c0_78 = arith.constant 0 : index
    %185 = vector.load %arg1[%c0_76, %c0_77, %c0_78] : memref<3x128x128xf32, #tpu.memory_space<vmem>>, vector<1x128x128xf32>
    %186 = vector.shape_cast %185 : vector<1x128x128xf32> to vector<128x128xf32>
    %cst_79 = arith.constant dense<0.000000e+00> : vector<16x128xf32>
    %187 = tpu.matmul %184, %186, %cst_79 {dimension_numbers = #tpu.dot_dimension_numbers<[1], [0], [0], [1], [0, 0, 1, 1], [], []>} : vector<16x128xf32>, vector<128x128xf32>, vector<16x128xf32> -> vector<16x128xf32>
    %188 = arith.addf %187, %3 : vector<16x128xf32>
    %cst_80 = arith.constant 5.000000e-01 : f32
    %189 = vector.broadcast %cst_80 : f32 to vector<16x128xf32>
    %190 = arith.mulf %189, %188 : vector<16x128xf32>
    %191 = math.tanh %190 : vector<16x128xf32>
    %cst_81 = arith.constant 1.000000e+00 : f32
    %192 = vector.broadcast %cst_81 : f32 to vector<16x128xf32>
    %193 = arith.addf %191, %192 : vector<16x128xf32>
    %cst_82 = arith.constant 5.000000e-01 : f32
    %194 = vector.broadcast %cst_82 : f32 to vector<16x128xf32>
    %195 = arith.mulf %194, %193 : vector<16x128xf32>
    %196 = arith.addf %183, %195 : vector<16x128xf32>
    %c1_83 = arith.constant 1 : index
    %c0_84 = arith.constant 0 : index
    %c0_85 = arith.constant 0 : index
    %197 = vector.load %arg1[%c1_83, %c0_84, %c0_85] : memref<3x128x128xf32, #tpu.memory_space<vmem>>, vector<1x128x128xf32>
    %198 = vector.shape_cast %197 : vector<1x128x128xf32> to vector<128x128xf32>
    %cst_86 = arith.constant dense<0.000000e+00> : vector<16x128xf32>
    %199 = tpu.matmul %196, %198, %cst_86 {dimension_numbers = #tpu.dot_dimension_numbers<[1], [0], [0], [1], [0, 0, 1, 1], [], []>} : vector<16x128xf32>, vector<128x128xf32>, vector<16x128xf32> -> vector<16x128xf32>
    %200 = arith.addf %199, %6 : vector<16x128xf32>
    %cst_87 = arith.constant 5.000000e-01 : f32
    %201 = vector.broadcast %cst_87 : f32 to vector<16x128xf32>
    %202 = arith.mulf %201, %200 : vector<16x128xf32>
    %203 = math.tanh %202 : vector<16x128xf32>
    %cst_88 = arith.constant 1.000000e+00 : f32
    %204 = vector.broadcast %cst_88 : f32 to vector<16x128xf32>
    %205 = arith.addf %203, %204 : vector<16x128xf32>
    %cst_89 = arith.constant 5.000000e-01 : f32
    %206 = vector.broadcast %cst_89 : f32 to vector<16x128xf32>
    %207 = arith.mulf %206, %205 : vector<16x128xf32>
    %208 = arith.addf %195, %161 : vector<16x128xf32>
    %c2_90 = arith.constant 2 : index
    %c0_91 = arith.constant 0 : index
    %c0_92 = arith.constant 0 : index
    %209 = vector.load %arg1[%c2_90, %c0_91, %c0_92] : memref<3x128x128xf32, #tpu.memory_space<vmem>>, vector<1x128x128xf32>
    %210 = vector.shape_cast %209 : vector<1x128x128xf32> to vector<128x128xf32>
    %cst_93 = arith.constant dense<0.000000e+00> : vector<16x128xf32>
    %211 = tpu.matmul %208, %210, %cst_93 {dimension_numbers = #tpu.dot_dimension_numbers<[1], [0], [0], [1], [0, 0, 1, 1], [], []>} : vector<16x128xf32>, vector<128x128xf32>, vector<16x128xf32> -> vector<16x128xf32>
    %212 = arith.addf %211, %9 : vector<16x128xf32>
    %cst_94 = arith.constant 5.000000e-01 : f32
    %213 = vector.broadcast %cst_94 : f32 to vector<16x128xf32>
    %214 = arith.mulf %213, %212 : vector<16x128xf32>
    %215 = math.tanh %214 : vector<16x128xf32>
    %cst_95 = arith.constant 1.000000e+00 : f32
    %216 = vector.broadcast %cst_95 : f32 to vector<16x128xf32>
    %217 = arith.addf %215, %216 : vector<16x128xf32>
    %cst_96 = arith.constant 5.000000e-01 : f32
    %218 = vector.broadcast %cst_96 : f32 to vector<16x128xf32>
    %219 = arith.mulf %218, %217 : vector<16x128xf32>
    %220 = vector.shape_cast %219 : vector<16x128xf32> to vector<2x8x128xf32>
    %cst_97 = arith.constant dense<0.000000e+00> : vector<2x128xf32>
    %221 = vector.multi_reduction <add>, %220, %cst_97 [1] : vector<2x8x128xf32> to vector<2x128xf32>
    %222 = vector.shape_cast %221 : vector<2x128xf32> to vector<2x1x128xf32>
    %cst_98 = arith.constant 8.000000e+00 : f32
    %223 = vector.broadcast %cst_98 : f32 to vector<2x1x128xf32>
    %224 = arith.divf %222, %223 : vector<2x1x128xf32>
    %225 = vector.broadcast %224 : vector<2x1x128xf32> to vector<2x8x128xf32>
    %226 = arith.subf %220, %225 : vector<2x8x128xf32>
    %227 = arith.mulf %226, %226 : vector<2x8x128xf32>
    %cst_99 = arith.constant dense<0.000000e+00> : vector<2x128xf32>
    %228 = vector.multi_reduction <add>, %227, %cst_99 [1] : vector<2x8x128xf32> to vector<2x128xf32>
    %229 = vector.shape_cast %228 : vector<2x128xf32> to vector<2x1x128xf32>
    %cst_100 = arith.constant 8.000000e+00 : f32
    %230 = vector.broadcast %cst_100 : f32 to vector<2x1x128xf32>
    %231 = arith.divf %229, %230 : vector<2x1x128xf32>
    %232 = vector.broadcast %224 : vector<2x1x128xf32> to vector<2x8x128xf32>
    %233 = arith.subf %220, %232 : vector<2x8x128xf32>
    %cst_101 = arith.constant 9.99999974E-6 : f32
    %234 = vector.broadcast %cst_101 : f32 to vector<2x1x128xf32>
    %235 = arith.addf %231, %234 : vector<2x1x128xf32>
    %236 = math.rsqrt %235 : vector<2x1x128xf32>
    %237 = vector.broadcast %236 : vector<2x1x128xf32> to vector<2x8x128xf32>
    %238 = arith.mulf %233, %237 : vector<2x8x128xf32>
    %239 = vector.shape_cast %238 : vector<2x8x128xf32> to vector<16x128xf32>
    %240 = arith.mulf %239, %12 : vector<16x128xf32>
    %241 = arith.addf %240, %18 : vector<16x128xf32>
    %242 = vector.shape_cast %207 : vector<16x128xf32> to vector<2x8x128xf32>
    %cst_102 = arith.constant dense<0.000000e+00> : vector<2x128xf32>
    %243 = vector.multi_reduction <add>, %242, %cst_102 [1] : vector<2x8x128xf32> to vector<2x128xf32>
    %244 = vector.shape_cast %243 : vector<2x128xf32> to vector<2x1x128xf32>
    %cst_103 = arith.constant 8.000000e+00 : f32
    %245 = vector.broadcast %cst_103 : f32 to vector<2x1x128xf32>
    %246 = arith.divf %244, %245 : vector<2x1x128xf32>
    %247 = vector.broadcast %246 : vector<2x1x128xf32> to vector<2x8x128xf32>
    %248 = arith.subf %242, %247 : vector<2x8x128xf32>
    %249 = arith.mulf %248, %248 : vector<2x8x128xf32>
    %cst_104 = arith.constant dense<0.000000e+00> : vector<2x128xf32>
    %250 = vector.multi_reduction <add>, %249, %cst_104 [1] : vector<2x8x128xf32> to vector<2x128xf32>
    %251 = vector.shape_cast %250 : vector<2x128xf32> to vector<2x1x128xf32>
    %cst_105 = arith.constant 8.000000e+00 : f32
    %252 = vector.broadcast %cst_105 : f32 to vector<2x1x128xf32>
    %253 = arith.divf %251, %252 : vector<2x1x128xf32>
    %254 = vector.broadcast %246 : vector<2x1x128xf32> to vector<2x8x128xf32>
    %255 = arith.subf %242, %254 : vector<2x8x128xf32>
    %cst_106 = arith.constant 9.99999974E-6 : f32
    %256 = vector.broadcast %cst_106 : f32 to vector<2x1x128xf32>
    %257 = arith.addf %253, %256 : vector<2x1x128xf32>
    %258 = math.rsqrt %257 : vector<2x1x128xf32>
    %259 = vector.broadcast %258 : vector<2x1x128xf32> to vector<2x8x128xf32>
    %260 = arith.mulf %255, %259 : vector<2x8x128xf32>
    %261 = vector.shape_cast %260 : vector<2x8x128xf32> to vector<16x128xf32>
    %262 = arith.mulf %261, %15 : vector<16x128xf32>
    %263 = arith.addf %262, %21 : vector<16x128xf32>
    %264 = arith.addf %0, %241 : vector<16x128xf32>
    %c0_107 = arith.constant 0 : index
    %c0_108 = arith.constant 0 : index
    %c0_109 = arith.constant 0 : index
    %265 = vector.load %arg1[%c0_107, %c0_108, %c0_109] : memref<3x128x128xf32, #tpu.memory_space<vmem>>, vector<1x128x128xf32>
    %266 = vector.shape_cast %265 : vector<1x128x128xf32> to vector<128x128xf32>
    %cst_110 = arith.constant dense<0.000000e+00> : vector<16x128xf32>
    %267 = tpu.matmul %264, %266, %cst_110 {dimension_numbers = #tpu.dot_dimension_numbers<[1], [0], [0], [1], [0, 0, 1, 1], [], []>} : vector<16x128xf32>, vector<128x128xf32>, vector<16x128xf32> -> vector<16x128xf32>
    %268 = arith.addf %267, %3 : vector<16x128xf32>
    %cst_111 = arith.constant 5.000000e-01 : f32
    %269 = vector.broadcast %cst_111 : f32 to vector<16x128xf32>
    %270 = arith.mulf %269, %268 : vector<16x128xf32>
    %271 = math.tanh %270 : vector<16x128xf32>
    %cst_112 = arith.constant 1.000000e+00 : f32
    %272 = vector.broadcast %cst_112 : f32 to vector<16x128xf32>
    %273 = arith.addf %271, %272 : vector<16x128xf32>
    %cst_113 = arith.constant 5.000000e-01 : f32
    %274 = vector.broadcast %cst_113 : f32 to vector<16x128xf32>
    %275 = arith.mulf %274, %273 : vector<16x128xf32>
    %276 = arith.addf %263, %275 : vector<16x128xf32>
    %c1_114 = arith.constant 1 : index
    %c0_115 = arith.constant 0 : index
    %c0_116 = arith.constant 0 : index
    %277 = vector.load %arg1[%c1_114, %c0_115, %c0_116] : memref<3x128x128xf32, #tpu.memory_space<vmem>>, vector<1x128x128xf32>
    %278 = vector.shape_cast %277 : vector<1x128x128xf32> to vector<128x128xf32>
    %cst_117 = arith.constant dense<0.000000e+00> : vector<16x128xf32>
    %279 = tpu.matmul %276, %278, %cst_117 {dimension_numbers = #tpu.dot_dimension_numbers<[1], [0], [0], [1], [0, 0, 1, 1], [], []>} : vector<16x128xf32>, vector<128x128xf32>, vector<16x128xf32> -> vector<16x128xf32>
    %280 = arith.addf %279, %6 : vector<16x128xf32>
    %cst_118 = arith.constant 5.000000e-01 : f32
    %281 = vector.broadcast %cst_118 : f32 to vector<16x128xf32>
    %282 = arith.mulf %281, %280 : vector<16x128xf32>
    %283 = math.tanh %282 : vector<16x128xf32>
    %cst_119 = arith.constant 1.000000e+00 : f32
    %284 = vector.broadcast %cst_119 : f32 to vector<16x128xf32>
    %285 = arith.addf %283, %284 : vector<16x128xf32>
    %cst_120 = arith.constant 5.000000e-01 : f32
    %286 = vector.broadcast %cst_120 : f32 to vector<16x128xf32>
    %287 = arith.mulf %286, %285 : vector<16x128xf32>
    %288 = arith.addf %275, %241 : vector<16x128xf32>
    %c2_121 = arith.constant 2 : index
    %c0_122 = arith.constant 0 : index
    %c0_123 = arith.constant 0 : index
    %289 = vector.load %arg1[%c2_121, %c0_122, %c0_123] : memref<3x128x128xf32, #tpu.memory_space<vmem>>, vector<1x128x128xf32>
    %290 = vector.shape_cast %289 : vector<1x128x128xf32> to vector<128x128xf32>
    %cst_124 = arith.constant dense<0.000000e+00> : vector<16x128xf32>
    %291 = tpu.matmul %288, %290, %cst_124 {dimension_numbers = #tpu.dot_dimension_numbers<[1], [0], [0], [1], [0, 0, 1, 1], [], []>} : vector<16x128xf32>, vector<128x128xf32>, vector<16x128xf32> -> vector<16x128xf32>
    %292 = arith.addf %291, %9 : vector<16x128xf32>
    %cst_125 = arith.constant 5.000000e-01 : f32
    %293 = vector.broadcast %cst_125 : f32 to vector<16x128xf32>
    %294 = arith.mulf %293, %292 : vector<16x128xf32>
    %295 = math.tanh %294 : vector<16x128xf32>
    %cst_126 = arith.constant 1.000000e+00 : f32
    %296 = vector.broadcast %cst_126 : f32 to vector<16x128xf32>
    %297 = arith.addf %295, %296 : vector<16x128xf32>
    %cst_127 = arith.constant 5.000000e-01 : f32
    %298 = vector.broadcast %cst_127 : f32 to vector<16x128xf32>
    %299 = arith.mulf %298, %297 : vector<16x128xf32>
    %300 = vector.shape_cast %299 : vector<16x128xf32> to vector<2x8x128xf32>
    %cst_128 = arith.constant dense<0.000000e+00> : vector<2x128xf32>
    %301 = vector.multi_reduction <add>, %300, %cst_128 [1] : vector<2x8x128xf32> to vector<2x128xf32>
    %302 = vector.shape_cast %301 : vector<2x128xf32> to vector<2x1x128xf32>
    %cst_129 = arith.constant 8.000000e+00 : f32
    %303 = vector.broadcast %cst_129 : f32 to vector<2x1x128xf32>
    %304 = arith.divf %302, %303 : vector<2x1x128xf32>
    %305 = vector.broadcast %304 : vector<2x1x128xf32> to vector<2x8x128xf32>
    %306 = arith.subf %300, %305 : vector<2x8x128xf32>
    %307 = arith.mulf %306, %306 : vector<2x8x128xf32>
    %cst_130 = arith.constant dense<0.000000e+00> : vector<2x128xf32>
    %308 = vector.multi_reduction <add>, %307, %cst_130 [1] : vector<2x8x128xf32> to vector<2x128xf32>
    %309 = vector.shape_cast %308 : vector<2x128xf32> to vector<2x1x128xf32>
    %cst_131 = arith.constant 8.000000e+00 : f32
    %310 = vector.broadcast %cst_131 : f32 to vector<2x1x128xf32>
    %311 = arith.divf %309, %310 : vector<2x1x128xf32>
    %312 = vector.broadcast %304 : vector<2x1x128xf32> to vector<2x8x128xf32>
    %313 = arith.subf %300, %312 : vector<2x8x128xf32>
    %cst_132 = arith.constant 9.99999974E-6 : f32
    %314 = vector.broadcast %cst_132 : f32 to vector<2x1x128xf32>
    %315 = arith.addf %311, %314 : vector<2x1x128xf32>
    %316 = math.rsqrt %315 : vector<2x1x128xf32>
    %317 = vector.broadcast %316 : vector<2x1x128xf32> to vector<2x8x128xf32>
    %318 = arith.mulf %313, %317 : vector<2x8x128xf32>
    %319 = vector.shape_cast %318 : vector<2x8x128xf32> to vector<16x128xf32>
    %320 = arith.mulf %319, %12 : vector<16x128xf32>
    %321 = arith.addf %320, %18 : vector<16x128xf32>
    %322 = vector.shape_cast %287 : vector<16x128xf32> to vector<2x8x128xf32>
    %cst_133 = arith.constant dense<0.000000e+00> : vector<2x128xf32>
    %323 = vector.multi_reduction <add>, %322, %cst_133 [1] : vector<2x8x128xf32> to vector<2x128xf32>
    %324 = vector.shape_cast %323 : vector<2x128xf32> to vector<2x1x128xf32>
    %cst_134 = arith.constant 8.000000e+00 : f32
    %325 = vector.broadcast %cst_134 : f32 to vector<2x1x128xf32>
    %326 = arith.divf %324, %325 : vector<2x1x128xf32>
    %327 = vector.broadcast %326 : vector<2x1x128xf32> to vector<2x8x128xf32>
    %328 = arith.subf %322, %327 : vector<2x8x128xf32>
    %329 = arith.mulf %328, %328 : vector<2x8x128xf32>
    %cst_135 = arith.constant dense<0.000000e+00> : vector<2x128xf32>
    %330 = vector.multi_reduction <add>, %329, %cst_135 [1] : vector<2x8x128xf32> to vector<2x128xf32>
    %331 = vector.shape_cast %330 : vector<2x128xf32> to vector<2x1x128xf32>
    %cst_136 = arith.constant 8.000000e+00 : f32
    %332 = vector.broadcast %cst_136 : f32 to vector<2x1x128xf32>
    %333 = arith.divf %331, %332 : vector<2x1x128xf32>
    %334 = vector.broadcast %326 : vector<2x1x128xf32> to vector<2x8x128xf32>
    %335 = arith.subf %322, %334 : vector<2x8x128xf32>
    %cst_137 = arith.constant 9.99999974E-6 : f32
    %336 = vector.broadcast %cst_137 : f32 to vector<2x1x128xf32>
    %337 = arith.addf %333, %336 : vector<2x1x128xf32>
    %338 = math.rsqrt %337 : vector<2x1x128xf32>
    %339 = vector.broadcast %338 : vector<2x1x128xf32> to vector<2x8x128xf32>
    %340 = arith.mulf %335, %339 : vector<2x8x128xf32>
    %341 = vector.shape_cast %340 : vector<2x8x128xf32> to vector<16x128xf32>
    %342 = arith.mulf %341, %15 : vector<16x128xf32>
    %343 = arith.addf %342, %21 : vector<16x128xf32>
    %344 = arith.addf %0, %321 : vector<16x128xf32>
    %c0_138 = arith.constant 0 : index
    %c0_139 = arith.constant 0 : index
    %c0_140 = arith.constant 0 : index
    %345 = vector.load %arg1[%c0_138, %c0_139, %c0_140] : memref<3x128x128xf32, #tpu.memory_space<vmem>>, vector<1x128x128xf32>
    %346 = vector.shape_cast %345 : vector<1x128x128xf32> to vector<128x128xf32>
    %cst_141 = arith.constant dense<0.000000e+00> : vector<16x128xf32>
    %347 = tpu.matmul %344, %346, %cst_141 {dimension_numbers = #tpu.dot_dimension_numbers<[1], [0], [0], [1], [0, 0, 1, 1], [], []>} : vector<16x128xf32>, vector<128x128xf32>, vector<16x128xf32> -> vector<16x128xf32>
    %348 = arith.addf %347, %3 : vector<16x128xf32>
    %cst_142 = arith.constant 5.000000e-01 : f32
    %349 = vector.broadcast %cst_142 : f32 to vector<16x128xf32>
    %350 = arith.mulf %349, %348 : vector<16x128xf32>
    %351 = math.tanh %350 : vector<16x128xf32>
    %cst_143 = arith.constant 1.000000e+00 : f32
    %352 = vector.broadcast %cst_143 : f32 to vector<16x128xf32>
    %353 = arith.addf %351, %352 : vector<16x128xf32>
    %cst_144 = arith.constant 5.000000e-01 : f32
    %354 = vector.broadcast %cst_144 : f32 to vector<16x128xf32>
    %355 = arith.mulf %354, %353 : vector<16x128xf32>
    %356 = arith.addf %343, %355 : vector<16x128xf32>
    %c1_145 = arith.constant 1 : index
    %c0_146 = arith.constant 0 : index
    %c0_147 = arith.constant 0 : index
    %357 = vector.load %arg1[%c1_145, %c0_146, %c0_147] : memref<3x128x128xf32, #tpu.memory_space<vmem>>, vector<1x128x128xf32>
    %358 = vector.shape_cast %357 : vector<1x128x128xf32> to vector<128x128xf32>
    %cst_148 = arith.constant dense<0.000000e+00> : vector<16x128xf32>
    %359 = tpu.matmul %356, %358, %cst_148 {dimension_numbers = #tpu.dot_dimension_numbers<[1], [0], [0], [1], [0, 0, 1, 1], [], []>} : vector<16x128xf32>, vector<128x128xf32>, vector<16x128xf32> -> vector<16x128xf32>
    %360 = arith.addf %359, %6 : vector<16x128xf32>
    %cst_149 = arith.constant 5.000000e-01 : f32
    %361 = vector.broadcast %cst_149 : f32 to vector<16x128xf32>
    %362 = arith.mulf %361, %360 : vector<16x128xf32>
    %363 = math.tanh %362 : vector<16x128xf32>
    %cst_150 = arith.constant 1.000000e+00 : f32
    %364 = vector.broadcast %cst_150 : f32 to vector<16x128xf32>
    %365 = arith.addf %363, %364 : vector<16x128xf32>
    %cst_151 = arith.constant 5.000000e-01 : f32
    %366 = vector.broadcast %cst_151 : f32 to vector<16x128xf32>
    %367 = arith.mulf %366, %365 : vector<16x128xf32>
    %368 = arith.addf %355, %321 : vector<16x128xf32>
    %c2_152 = arith.constant 2 : index
    %c0_153 = arith.constant 0 : index
    %c0_154 = arith.constant 0 : index
    %369 = vector.load %arg1[%c2_152, %c0_153, %c0_154] : memref<3x128x128xf32, #tpu.memory_space<vmem>>, vector<1x128x128xf32>
    %370 = vector.shape_cast %369 : vector<1x128x128xf32> to vector<128x128xf32>
    %cst_155 = arith.constant dense<0.000000e+00> : vector<16x128xf32>
    %371 = tpu.matmul %368, %370, %cst_155 {dimension_numbers = #tpu.dot_dimension_numbers<[1], [0], [0], [1], [0, 0, 1, 1], [], []>} : vector<16x128xf32>, vector<128x128xf32>, vector<16x128xf32> -> vector<16x128xf32>
    %372 = arith.addf %371, %9 : vector<16x128xf32>
    %cst_156 = arith.constant 5.000000e-01 : f32
    %373 = vector.broadcast %cst_156 : f32 to vector<16x128xf32>
    %374 = arith.mulf %373, %372 : vector<16x128xf32>
    %375 = math.tanh %374 : vector<16x128xf32>
    %cst_157 = arith.constant 1.000000e+00 : f32
    %376 = vector.broadcast %cst_157 : f32 to vector<16x128xf32>
    %377 = arith.addf %375, %376 : vector<16x128xf32>
    %cst_158 = arith.constant 5.000000e-01 : f32
    %378 = vector.broadcast %cst_158 : f32 to vector<16x128xf32>
    %379 = arith.mulf %378, %377 : vector<16x128xf32>
    %380 = vector.shape_cast %379 : vector<16x128xf32> to vector<2x8x128xf32>
    %cst_159 = arith.constant dense<0.000000e+00> : vector<2x128xf32>
    %381 = vector.multi_reduction <add>, %380, %cst_159 [1] : vector<2x8x128xf32> to vector<2x128xf32>
    %382 = vector.shape_cast %381 : vector<2x128xf32> to vector<2x1x128xf32>
    %cst_160 = arith.constant 8.000000e+00 : f32
    %383 = vector.broadcast %cst_160 : f32 to vector<2x1x128xf32>
    %384 = arith.divf %382, %383 : vector<2x1x128xf32>
    %385 = vector.broadcast %384 : vector<2x1x128xf32> to vector<2x8x128xf32>
    %386 = arith.subf %380, %385 : vector<2x8x128xf32>
    %387 = arith.mulf %386, %386 : vector<2x8x128xf32>
    %cst_161 = arith.constant dense<0.000000e+00> : vector<2x128xf32>
    %388 = vector.multi_reduction <add>, %387, %cst_161 [1] : vector<2x8x128xf32> to vector<2x128xf32>
    %389 = vector.shape_cast %388 : vector<2x128xf32> to vector<2x1x128xf32>
    %cst_162 = arith.constant 8.000000e+00 : f32
    %390 = vector.broadcast %cst_162 : f32 to vector<2x1x128xf32>
    %391 = arith.divf %389, %390 : vector<2x1x128xf32>
    %392 = vector.broadcast %384 : vector<2x1x128xf32> to vector<2x8x128xf32>
    %393 = arith.subf %380, %392 : vector<2x8x128xf32>
    %cst_163 = arith.constant 9.99999974E-6 : f32
    %394 = vector.broadcast %cst_163 : f32 to vector<2x1x128xf32>
    %395 = arith.addf %391, %394 : vector<2x1x128xf32>
    %396 = math.rsqrt %395 : vector<2x1x128xf32>
    %397 = vector.broadcast %396 : vector<2x1x128xf32> to vector<2x8x128xf32>
    %398 = arith.mulf %393, %397 : vector<2x8x128xf32>
    %399 = vector.shape_cast %398 : vector<2x8x128xf32> to vector<16x128xf32>
    %400 = arith.mulf %399, %12 : vector<16x128xf32>
    %401 = arith.addf %400, %18 : vector<16x128xf32>
    %402 = vector.shape_cast %367 : vector<16x128xf32> to vector<2x8x128xf32>
    %cst_164 = arith.constant dense<0.000000e+00> : vector<2x128xf32>
    %403 = vector.multi_reduction <add>, %402, %cst_164 [1] : vector<2x8x128xf32> to vector<2x128xf32>
    %404 = vector.shape_cast %403 : vector<2x128xf32> to vector<2x1x128xf32>
    %cst_165 = arith.constant 8.000000e+00 : f32
    %405 = vector.broadcast %cst_165 : f32 to vector<2x1x128xf32>
    %406 = arith.divf %404, %405 : vector<2x1x128xf32>
    %407 = vector.broadcast %406 : vector<2x1x128xf32> to vector<2x8x128xf32>
    %408 = arith.subf %402, %407 : vector<2x8x128xf32>
    %409 = arith.mulf %408, %408 : vector<2x8x128xf32>
    %cst_166 = arith.constant dense<0.000000e+00> : vector<2x128xf32>
    %410 = vector.multi_reduction <add>, %409, %cst_166 [1] : vector<2x8x128xf32> to vector<2x128xf32>
    %411 = vector.shape_cast %410 : vector<2x128xf32> to vector<2x1x128xf32>
    %cst_167 = arith.constant 8.000000e+00 : f32
    %412 = vector.broadcast %cst_167 : f32 to vector<2x1x128xf32>
    %413 = arith.divf %411, %412 : vector<2x1x128xf32>
    %414 = vector.broadcast %406 : vector<2x1x128xf32> to vector<2x8x128xf32>
    %415 = arith.subf %402, %414 : vector<2x8x128xf32>
    %cst_168 = arith.constant 9.99999974E-6 : f32
    %416 = vector.broadcast %cst_168 : f32 to vector<2x1x128xf32>
    %417 = arith.addf %413, %416 : vector<2x1x128xf32>
    %418 = math.rsqrt %417 : vector<2x1x128xf32>
    %419 = vector.broadcast %418 : vector<2x1x128xf32> to vector<2x8x128xf32>
    %420 = arith.mulf %415, %419 : vector<2x8x128xf32>
    %421 = vector.shape_cast %420 : vector<2x8x128xf32> to vector<16x128xf32>
    %422 = arith.mulf %421, %15 : vector<16x128xf32>
    %423 = arith.addf %422, %21 : vector<16x128xf32>
    %424 = arith.addf %0, %401 : vector<16x128xf32>
    %c0_169 = arith.constant 0 : index
    %c0_170 = arith.constant 0 : index
    %c0_171 = arith.constant 0 : index
    %425 = vector.load %arg1[%c0_169, %c0_170, %c0_171] : memref<3x128x128xf32, #tpu.memory_space<vmem>>, vector<1x128x128xf32>
    %426 = vector.shape_cast %425 : vector<1x128x128xf32> to vector<128x128xf32>
    %cst_172 = arith.constant dense<0.000000e+00> : vector<16x128xf32>
    %427 = tpu.matmul %424, %426, %cst_172 {dimension_numbers = #tpu.dot_dimension_numbers<[1], [0], [0], [1], [0, 0, 1, 1], [], []>} : vector<16x128xf32>, vector<128x128xf32>, vector<16x128xf32> -> vector<16x128xf32>
    %428 = arith.addf %427, %3 : vector<16x128xf32>
    %cst_173 = arith.constant 5.000000e-01 : f32
    %429 = vector.broadcast %cst_173 : f32 to vector<16x128xf32>
    %430 = arith.mulf %429, %428 : vector<16x128xf32>
    %431 = math.tanh %430 : vector<16x128xf32>
    %cst_174 = arith.constant 1.000000e+00 : f32
    %432 = vector.broadcast %cst_174 : f32 to vector<16x128xf32>
    %433 = arith.addf %431, %432 : vector<16x128xf32>
    %cst_175 = arith.constant 5.000000e-01 : f32
    %434 = vector.broadcast %cst_175 : f32 to vector<16x128xf32>
    %435 = arith.mulf %434, %433 : vector<16x128xf32>
    %436 = arith.addf %423, %435 : vector<16x128xf32>
    %c1_176 = arith.constant 1 : index
    %c0_177 = arith.constant 0 : index
    %c0_178 = arith.constant 0 : index
    %437 = vector.load %arg1[%c1_176, %c0_177, %c0_178] : memref<3x128x128xf32, #tpu.memory_space<vmem>>, vector<1x128x128xf32>
    %438 = vector.shape_cast %437 : vector<1x128x128xf32> to vector<128x128xf32>
    %cst_179 = arith.constant dense<0.000000e+00> : vector<16x128xf32>
    %439 = tpu.matmul %436, %438, %cst_179 {dimension_numbers = #tpu.dot_dimension_numbers<[1], [0], [0], [1], [0, 0, 1, 1], [], []>} : vector<16x128xf32>, vector<128x128xf32>, vector<16x128xf32> -> vector<16x128xf32>
    %440 = arith.addf %439, %6 : vector<16x128xf32>
    %cst_180 = arith.constant 5.000000e-01 : f32
    %441 = vector.broadcast %cst_180 : f32 to vector<16x128xf32>
    %442 = arith.mulf %441, %440 : vector<16x128xf32>
    %443 = math.tanh %442 : vector<16x128xf32>
    %cst_181 = arith.constant 1.000000e+00 : f32
    %444 = vector.broadcast %cst_181 : f32 to vector<16x128xf32>
    %445 = arith.addf %443, %444 : vector<16x128xf32>
    %cst_182 = arith.constant 5.000000e-01 : f32
    %446 = vector.broadcast %cst_182 : f32 to vector<16x128xf32>
    %447 = arith.mulf %446, %445 : vector<16x128xf32>
    %448 = arith.addf %435, %401 : vector<16x128xf32>
    %c2_183 = arith.constant 2 : index
    %c0_184 = arith.constant 0 : index
    %c0_185 = arith.constant 0 : index
    %449 = vector.load %arg1[%c2_183, %c0_184, %c0_185] : memref<3x128x128xf32, #tpu.memory_space<vmem>>, vector<1x128x128xf32>
    %450 = vector.shape_cast %449 : vector<1x128x128xf32> to vector<128x128xf32>
    %cst_186 = arith.constant dense<0.000000e+00> : vector<16x128xf32>
    %451 = tpu.matmul %448, %450, %cst_186 {dimension_numbers = #tpu.dot_dimension_numbers<[1], [0], [0], [1], [0, 0, 1, 1], [], []>} : vector<16x128xf32>, vector<128x128xf32>, vector<16x128xf32> -> vector<16x128xf32>
    %452 = arith.addf %451, %9 : vector<16x128xf32>
    %cst_187 = arith.constant 5.000000e-01 : f32
    %453 = vector.broadcast %cst_187 : f32 to vector<16x128xf32>
    %454 = arith.mulf %453, %452 : vector<16x128xf32>
    %455 = math.tanh %454 : vector<16x128xf32>
    %cst_188 = arith.constant 1.000000e+00 : f32
    %456 = vector.broadcast %cst_188 : f32 to vector<16x128xf32>
    %457 = arith.addf %455, %456 : vector<16x128xf32>
    %cst_189 = arith.constant 5.000000e-01 : f32
    %458 = vector.broadcast %cst_189 : f32 to vector<16x128xf32>
    %459 = arith.mulf %458, %457 : vector<16x128xf32>
    %460 = vector.shape_cast %459 : vector<16x128xf32> to vector<2x8x128xf32>
    %cst_190 = arith.constant dense<0.000000e+00> : vector<2x128xf32>
    %461 = vector.multi_reduction <add>, %460, %cst_190 [1] : vector<2x8x128xf32> to vector<2x128xf32>
    %462 = vector.shape_cast %461 : vector<2x128xf32> to vector<2x1x128xf32>
    %cst_191 = arith.constant 8.000000e+00 : f32
    %463 = vector.broadcast %cst_191 : f32 to vector<2x1x128xf32>
    %464 = arith.divf %462, %463 : vector<2x1x128xf32>
    %465 = vector.broadcast %464 : vector<2x1x128xf32> to vector<2x8x128xf32>
    %466 = arith.subf %460, %465 : vector<2x8x128xf32>
    %467 = arith.mulf %466, %466 : vector<2x8x128xf32>
    %cst_192 = arith.constant dense<0.000000e+00> : vector<2x128xf32>
    %468 = vector.multi_reduction <add>, %467, %cst_192 [1] : vector<2x8x128xf32> to vector<2x128xf32>
    %469 = vector.shape_cast %468 : vector<2x128xf32> to vector<2x1x128xf32>
    %cst_193 = arith.constant 8.000000e+00 : f32
    %470 = vector.broadcast %cst_193 : f32 to vector<2x1x128xf32>
    %471 = arith.divf %469, %470 : vector<2x1x128xf32>
    %472 = vector.broadcast %464 : vector<2x1x128xf32> to vector<2x8x128xf32>
    %473 = arith.subf %460, %472 : vector<2x8x128xf32>
    %cst_194 = arith.constant 9.99999974E-6 : f32
    %474 = vector.broadcast %cst_194 : f32 to vector<2x1x128xf32>
    %475 = arith.addf %471, %474 : vector<2x1x128xf32>
    %476 = math.rsqrt %475 : vector<2x1x128xf32>
    %477 = vector.broadcast %476 : vector<2x1x128xf32> to vector<2x8x128xf32>
    %478 = arith.mulf %473, %477 : vector<2x8x128xf32>
    %479 = vector.shape_cast %478 : vector<2x8x128xf32> to vector<16x128xf32>
    %480 = arith.mulf %479, %12 : vector<16x128xf32>
    %481 = arith.addf %480, %18 : vector<16x128xf32>
    %482 = vector.shape_cast %447 : vector<16x128xf32> to vector<2x8x128xf32>
    %cst_195 = arith.constant dense<0.000000e+00> : vector<2x128xf32>
    %483 = vector.multi_reduction <add>, %482, %cst_195 [1] : vector<2x8x128xf32> to vector<2x128xf32>
    %484 = vector.shape_cast %483 : vector<2x128xf32> to vector<2x1x128xf32>
    %cst_196 = arith.constant 8.000000e+00 : f32
    %485 = vector.broadcast %cst_196 : f32 to vector<2x1x128xf32>
    %486 = arith.divf %484, %485 : vector<2x1x128xf32>
    %487 = vector.broadcast %486 : vector<2x1x128xf32> to vector<2x8x128xf32>
    %488 = arith.subf %482, %487 : vector<2x8x128xf32>
    %489 = arith.mulf %488, %488 : vector<2x8x128xf32>
    %cst_197 = arith.constant dense<0.000000e+00> : vector<2x128xf32>
    %490 = vector.multi_reduction <add>, %489, %cst_197 [1] : vector<2x8x128xf32> to vector<2x128xf32>
    %491 = vector.shape_cast %490 : vector<2x128xf32> to vector<2x1x128xf32>
    %cst_198 = arith.constant 8.000000e+00 : f32
    %492 = vector.broadcast %cst_198 : f32 to vector<2x1x128xf32>
    %493 = arith.divf %491, %492 : vector<2x1x128xf32>
    %494 = vector.broadcast %486 : vector<2x1x128xf32> to vector<2x8x128xf32>
    %495 = arith.subf %482, %494 : vector<2x8x128xf32>
    %cst_199 = arith.constant 9.99999974E-6 : f32
    %496 = vector.broadcast %cst_199 : f32 to vector<2x1x128xf32>
    %497 = arith.addf %493, %496 : vector<2x1x128xf32>
    %498 = math.rsqrt %497 : vector<2x1x128xf32>
    %499 = vector.broadcast %498 : vector<2x1x128xf32> to vector<2x8x128xf32>
    %500 = arith.mulf %495, %499 : vector<2x8x128xf32>
    %501 = vector.shape_cast %500 : vector<2x8x128xf32> to vector<16x128xf32>
    %502 = arith.mulf %501, %15 : vector<16x128xf32>
    %503 = arith.addf %502, %21 : vector<16x128xf32>
    %504 = arith.addf %0, %481 : vector<16x128xf32>
    %c0_200 = arith.constant 0 : index
    %c0_201 = arith.constant 0 : index
    %c0_202 = arith.constant 0 : index
    %505 = vector.load %arg1[%c0_200, %c0_201, %c0_202] : memref<3x128x128xf32, #tpu.memory_space<vmem>>, vector<1x128x128xf32>
    %506 = vector.shape_cast %505 : vector<1x128x128xf32> to vector<128x128xf32>
    %cst_203 = arith.constant dense<0.000000e+00> : vector<16x128xf32>
    %507 = tpu.matmul %504, %506, %cst_203 {dimension_numbers = #tpu.dot_dimension_numbers<[1], [0], [0], [1], [0, 0, 1, 1], [], []>} : vector<16x128xf32>, vector<128x128xf32>, vector<16x128xf32> -> vector<16x128xf32>
    %508 = arith.addf %507, %3 : vector<16x128xf32>
    %cst_204 = arith.constant 5.000000e-01 : f32
    %509 = vector.broadcast %cst_204 : f32 to vector<16x128xf32>
    %510 = arith.mulf %509, %508 : vector<16x128xf32>
    %511 = math.tanh %510 : vector<16x128xf32>
    %cst_205 = arith.constant 1.000000e+00 : f32
    %512 = vector.broadcast %cst_205 : f32 to vector<16x128xf32>
    %513 = arith.addf %511, %512 : vector<16x128xf32>
    %cst_206 = arith.constant 5.000000e-01 : f32
    %514 = vector.broadcast %cst_206 : f32 to vector<16x128xf32>
    %515 = arith.mulf %514, %513 : vector<16x128xf32>
    %516 = arith.addf %503, %515 : vector<16x128xf32>
    %c1_207 = arith.constant 1 : index
    %c0_208 = arith.constant 0 : index
    %c0_209 = arith.constant 0 : index
    %517 = vector.load %arg1[%c1_207, %c0_208, %c0_209] : memref<3x128x128xf32, #tpu.memory_space<vmem>>, vector<1x128x128xf32>
    %518 = vector.shape_cast %517 : vector<1x128x128xf32> to vector<128x128xf32>
    %cst_210 = arith.constant dense<0.000000e+00> : vector<16x128xf32>
    %519 = tpu.matmul %516, %518, %cst_210 {dimension_numbers = #tpu.dot_dimension_numbers<[1], [0], [0], [1], [0, 0, 1, 1], [], []>} : vector<16x128xf32>, vector<128x128xf32>, vector<16x128xf32> -> vector<16x128xf32>
    %520 = arith.addf %519, %6 : vector<16x128xf32>
    %cst_211 = arith.constant 5.000000e-01 : f32
    %521 = vector.broadcast %cst_211 : f32 to vector<16x128xf32>
    %522 = arith.mulf %521, %520 : vector<16x128xf32>
    %523 = math.tanh %522 : vector<16x128xf32>
    %cst_212 = arith.constant 1.000000e+00 : f32
    %524 = vector.broadcast %cst_212 : f32 to vector<16x128xf32>
    %525 = arith.addf %523, %524 : vector<16x128xf32>
    %cst_213 = arith.constant 5.000000e-01 : f32
    %526 = vector.broadcast %cst_213 : f32 to vector<16x128xf32>
    %527 = arith.mulf %526, %525 : vector<16x128xf32>
    %528 = arith.addf %515, %481 : vector<16x128xf32>
    %c2_214 = arith.constant 2 : index
    %c0_215 = arith.constant 0 : index
    %c0_216 = arith.constant 0 : index
    %529 = vector.load %arg1[%c2_214, %c0_215, %c0_216] : memref<3x128x128xf32, #tpu.memory_space<vmem>>, vector<1x128x128xf32>
    %530 = vector.shape_cast %529 : vector<1x128x128xf32> to vector<128x128xf32>
    %cst_217 = arith.constant dense<0.000000e+00> : vector<16x128xf32>
    %531 = tpu.matmul %528, %530, %cst_217 {dimension_numbers = #tpu.dot_dimension_numbers<[1], [0], [0], [1], [0, 0, 1, 1], [], []>} : vector<16x128xf32>, vector<128x128xf32>, vector<16x128xf32> -> vector<16x128xf32>
    %532 = arith.addf %531, %9 : vector<16x128xf32>
    %cst_218 = arith.constant 5.000000e-01 : f32
    %533 = vector.broadcast %cst_218 : f32 to vector<16x128xf32>
    %534 = arith.mulf %533, %532 : vector<16x128xf32>
    %535 = math.tanh %534 : vector<16x128xf32>
    %cst_219 = arith.constant 1.000000e+00 : f32
    %536 = vector.broadcast %cst_219 : f32 to vector<16x128xf32>
    %537 = arith.addf %535, %536 : vector<16x128xf32>
    %cst_220 = arith.constant 5.000000e-01 : f32
    %538 = vector.broadcast %cst_220 : f32 to vector<16x128xf32>
    %539 = arith.mulf %538, %537 : vector<16x128xf32>
    %540 = vector.shape_cast %539 : vector<16x128xf32> to vector<2x8x128xf32>
    %cst_221 = arith.constant dense<0.000000e+00> : vector<2x128xf32>
    %541 = vector.multi_reduction <add>, %540, %cst_221 [1] : vector<2x8x128xf32> to vector<2x128xf32>
    %542 = vector.shape_cast %541 : vector<2x128xf32> to vector<2x1x128xf32>
    %cst_222 = arith.constant 8.000000e+00 : f32
    %543 = vector.broadcast %cst_222 : f32 to vector<2x1x128xf32>
    %544 = arith.divf %542, %543 : vector<2x1x128xf32>
    %545 = vector.broadcast %544 : vector<2x1x128xf32> to vector<2x8x128xf32>
    %546 = arith.subf %540, %545 : vector<2x8x128xf32>
    %547 = arith.mulf %546, %546 : vector<2x8x128xf32>
    %cst_223 = arith.constant dense<0.000000e+00> : vector<2x128xf32>
    %548 = vector.multi_reduction <add>, %547, %cst_223 [1] : vector<2x8x128xf32> to vector<2x128xf32>
    %549 = vector.shape_cast %548 : vector<2x128xf32> to vector<2x1x128xf32>
    %cst_224 = arith.constant 8.000000e+00 : f32
    %550 = vector.broadcast %cst_224 : f32 to vector<2x1x128xf32>
    %551 = arith.divf %549, %550 : vector<2x1x128xf32>
    %552 = vector.broadcast %544 : vector<2x1x128xf32> to vector<2x8x128xf32>
    %553 = arith.subf %540, %552 : vector<2x8x128xf32>
    %cst_225 = arith.constant 9.99999974E-6 : f32
    %554 = vector.broadcast %cst_225 : f32 to vector<2x1x128xf32>
    %555 = arith.addf %551, %554 : vector<2x1x128xf32>
    %556 = math.rsqrt %555 : vector<2x1x128xf32>
    %557 = vector.broadcast %556 : vector<2x1x128xf32> to vector<2x8x128xf32>
    %558 = arith.mulf %553, %557 : vector<2x8x128xf32>
    %559 = vector.shape_cast %558 : vector<2x8x128xf32> to vector<16x128xf32>
    %560 = arith.mulf %559, %12 : vector<16x128xf32>
    %561 = arith.addf %560, %18 : vector<16x128xf32>
    %562 = vector.shape_cast %527 : vector<16x128xf32> to vector<2x8x128xf32>
    %cst_226 = arith.constant dense<0.000000e+00> : vector<2x128xf32>
    %563 = vector.multi_reduction <add>, %562, %cst_226 [1] : vector<2x8x128xf32> to vector<2x128xf32>
    %564 = vector.shape_cast %563 : vector<2x128xf32> to vector<2x1x128xf32>
    %cst_227 = arith.constant 8.000000e+00 : f32
    %565 = vector.broadcast %cst_227 : f32 to vector<2x1x128xf32>
    %566 = arith.divf %564, %565 : vector<2x1x128xf32>
    %567 = vector.broadcast %566 : vector<2x1x128xf32> to vector<2x8x128xf32>
    %568 = arith.subf %562, %567 : vector<2x8x128xf32>
    %569 = arith.mulf %568, %568 : vector<2x8x128xf32>
    %cst_228 = arith.constant dense<0.000000e+00> : vector<2x128xf32>
    %570 = vector.multi_reduction <add>, %569, %cst_228 [1] : vector<2x8x128xf32> to vector<2x128xf32>
    %571 = vector.shape_cast %570 : vector<2x128xf32> to vector<2x1x128xf32>
    %cst_229 = arith.constant 8.000000e+00 : f32
    %572 = vector.broadcast %cst_229 : f32 to vector<2x1x128xf32>
    %573 = arith.divf %571, %572 : vector<2x1x128xf32>
    %574 = vector.broadcast %566 : vector<2x1x128xf32> to vector<2x8x128xf32>
    %575 = arith.subf %562, %574 : vector<2x8x128xf32>
    %cst_230 = arith.constant 9.99999974E-6 : f32
    %576 = vector.broadcast %cst_230 : f32 to vector<2x1x128xf32>
    %577 = arith.addf %573, %576 : vector<2x1x128xf32>
    %578 = math.rsqrt %577 : vector<2x1x128xf32>
    %579 = vector.broadcast %578 : vector<2x1x128xf32> to vector<2x8x128xf32>
    %580 = arith.mulf %575, %579 : vector<2x8x128xf32>
    %581 = vector.shape_cast %580 : vector<2x8x128xf32> to vector<16x128xf32>
    %582 = arith.mulf %581, %15 : vector<16x128xf32>
    %583 = arith.addf %582, %21 : vector<16x128xf32>
    %584 = arith.addf %0, %561 : vector<16x128xf32>
    %c0_231 = arith.constant 0 : index
    %c0_232 = arith.constant 0 : index
    %c0_233 = arith.constant 0 : index
    %585 = vector.load %arg1[%c0_231, %c0_232, %c0_233] : memref<3x128x128xf32, #tpu.memory_space<vmem>>, vector<1x128x128xf32>
    %586 = vector.shape_cast %585 : vector<1x128x128xf32> to vector<128x128xf32>
    %cst_234 = arith.constant dense<0.000000e+00> : vector<16x128xf32>
    %587 = tpu.matmul %584, %586, %cst_234 {dimension_numbers = #tpu.dot_dimension_numbers<[1], [0], [0], [1], [0, 0, 1, 1], [], []>} : vector<16x128xf32>, vector<128x128xf32>, vector<16x128xf32> -> vector<16x128xf32>
    %588 = arith.addf %587, %3 : vector<16x128xf32>
    %cst_235 = arith.constant 5.000000e-01 : f32
    %589 = vector.broadcast %cst_235 : f32 to vector<16x128xf32>
    %590 = arith.mulf %589, %588 : vector<16x128xf32>
    %591 = math.tanh %590 : vector<16x128xf32>
    %cst_236 = arith.constant 1.000000e+00 : f32
    %592 = vector.broadcast %cst_236 : f32 to vector<16x128xf32>
    %593 = arith.addf %591, %592 : vector<16x128xf32>
    %cst_237 = arith.constant 5.000000e-01 : f32
    %594 = vector.broadcast %cst_237 : f32 to vector<16x128xf32>
    %595 = arith.mulf %594, %593 : vector<16x128xf32>
    %596 = arith.addf %583, %595 : vector<16x128xf32>
    %c1_238 = arith.constant 1 : index
    %c0_239 = arith.constant 0 : index
    %c0_240 = arith.constant 0 : index
    %597 = vector.load %arg1[%c1_238, %c0_239, %c0_240] : memref<3x128x128xf32, #tpu.memory_space<vmem>>, vector<1x128x128xf32>
    %598 = vector.shape_cast %597 : vector<1x128x128xf32> to vector<128x128xf32>
    %cst_241 = arith.constant dense<0.000000e+00> : vector<16x128xf32>
    %599 = tpu.matmul %596, %598, %cst_241 {dimension_numbers = #tpu.dot_dimension_numbers<[1], [0], [0], [1], [0, 0, 1, 1], [], []>} : vector<16x128xf32>, vector<128x128xf32>, vector<16x128xf32> -> vector<16x128xf32>
    %600 = arith.addf %599, %6 : vector<16x128xf32>
    %cst_242 = arith.constant 5.000000e-01 : f32
    %601 = vector.broadcast %cst_242 : f32 to vector<16x128xf32>
    %602 = arith.mulf %601, %600 : vector<16x128xf32>
    %603 = math.tanh %602 : vector<16x128xf32>
    %cst_243 = arith.constant 1.000000e+00 : f32
    %604 = vector.broadcast %cst_243 : f32 to vector<16x128xf32>
    %605 = arith.addf %603, %604 : vector<16x128xf32>
    %cst_244 = arith.constant 5.000000e-01 : f32
    %606 = vector.broadcast %cst_244 : f32 to vector<16x128xf32>
    %607 = arith.mulf %606, %605 : vector<16x128xf32>
    %608 = arith.addf %595, %561 : vector<16x128xf32>
    %c2_245 = arith.constant 2 : index
    %c0_246 = arith.constant 0 : index
    %c0_247 = arith.constant 0 : index
    %609 = vector.load %arg1[%c2_245, %c0_246, %c0_247] : memref<3x128x128xf32, #tpu.memory_space<vmem>>, vector<1x128x128xf32>
    %610 = vector.shape_cast %609 : vector<1x128x128xf32> to vector<128x128xf32>
    %cst_248 = arith.constant dense<0.000000e+00> : vector<16x128xf32>
    %611 = tpu.matmul %608, %610, %cst_248 {dimension_numbers = #tpu.dot_dimension_numbers<[1], [0], [0], [1], [0, 0, 1, 1], [], []>} : vector<16x128xf32>, vector<128x128xf32>, vector<16x128xf32> -> vector<16x128xf32>
    %612 = arith.addf %611, %9 : vector<16x128xf32>
    %cst_249 = arith.constant 5.000000e-01 : f32
    %613 = vector.broadcast %cst_249 : f32 to vector<16x128xf32>
    %614 = arith.mulf %613, %612 : vector<16x128xf32>
    %615 = math.tanh %614 : vector<16x128xf32>
    %cst_250 = arith.constant 1.000000e+00 : f32
    %616 = vector.broadcast %cst_250 : f32 to vector<16x128xf32>
    %617 = arith.addf %615, %616 : vector<16x128xf32>
    %cst_251 = arith.constant 5.000000e-01 : f32
    %618 = vector.broadcast %cst_251 : f32 to vector<16x128xf32>
    %619 = arith.mulf %618, %617 : vector<16x128xf32>
    %620 = arith.addf %619, %607 : vector<16x128xf32>
    %cst_252 = arith.constant 5.000000e-01 : f32
    %621 = vector.broadcast %cst_252 : f32 to vector<16x128xf32>
    %622 = arith.mulf %620, %621 : vector<16x128xf32>
    %c0_253 = arith.constant 0 : index
    %c0_254 = arith.constant 0 : index
    %623 = vector.load %arg5[%c0_253, %c0_254] : memref<16x128xf32, #tpu.memory_space<vmem>>, vector<16x128xf32>
    tpu.vector_store %arg5[%c0_253, %c0_254], %622 {strides = array<i32>} : memref<16x128xf32, #tpu.memory_space<vmem>>, vector<16x128xf32>,
    return
  }
}

</mosaic_0001>

<bundles_post_ra>
// kernel: bilstm_forward.1
= control target key start
LH: loop header
LB: loop body
LE: loop exit
PB: predicated region body
PF: predicated region fallthrough
CT: control target
= control target key end

     0   :  { %s3271_s1 = inlined_call_operand.vmem [shape: f32[3,128,128], index: 1, kind: input, shape index: {}]   ;;  %s3272_s2 = inlined_call_operand.vmem [shape: f32[3,128], index: 2, kind: input, shape index: {}]   ;;  %s3273_s0 = inlined_call_operand.vmem [shape: f32[16,128], index: 0, kind: input, shape index: {}]   ;;  %s3274_s3 = inlined_call_operand.vmem [shape: f32[2,128], index: 3, kind: input, shape index: {}]   ;;  %s3275_s4 = inlined_call_operand.vmem [shape: f32[2,128], index: 4, kind: input, shape index: {}]   ;;  %s3276_s5 = inlined_call_operand.vmem [shape: f32[16,128], index: 5, kind: output, shape index: {}]  }
   0x1   :  { %v2035_v0 = vld [vmem:[%s3271_s1 + $0x78] sm:$0xff]  ;;  %v2040_v1 = vld [vmem:[%s3271_s1 + $0x70] sm:$0xff]  ;;  %v2047_v2 = vld [vmem:[%s3271_s1 + $0x68] sm:$0xff] }
   0x2   :  { %54 = vmatpush.msra.mxu0 %v2035_v0  ;;  %312 = vmatpush.msra.mxu3 %v2035_v0  ;;  %v2054_v3 = vld [vmem:[%s3271_s1 + $0x60] sm:$0xff]  ;;  %v2060_v4 = vld [vmem:[%s3271_s1 + $0x58] sm:$0xff]  ;;  %v2067_v5 = vld [vmem:[%s3271_s1 + $0x50] sm:$0xff] }
   0x3   :  { %v2073_v6 = vld [vmem:[%s3271_s1 + $0xf8] sm:$0xff]  ;;  %v2083_v8 = vld [vmem:[%s3271_s1 + $0xf0] sm:$0xff]  ;;  %v2095_v10 = vld [vmem:[%s3271_s1 + $0x48] sm:$0xff] }
   0x4   :  { %55 = vmatpush.msra.mxu0 %v2040_v1  ;;  %313 = vmatpush.msra.mxu3 %v2040_v1  ;;  %v2078_v7 = vld [vmem:[%s3271_s1 + $0x178] sm:$0xff]  ;;  %v2090_v9 = vld [vmem:[%s3271_s1 + $0x170] sm:$0xff]  ;;  %v2101_v11 = vld [vmem:[%s3271_s1 + $0xe8] sm:$0xff] }
   0x5   :  { %104 = vmatpush.msra.mxu1 %v2073_v6  ;;  %152 = vmatpush.msra.mxu2 %v2078_v7  ;;  %v2109_v12 = vld [vmem:[%s3271_s1 + $0x168] sm:$0xff]  ;;  %v2114_v13 = vld [vmem:[%s3271_s1 + $0x40] sm:$0xff]  ;;  %v2133_v16 = vld [vmem:[%s3271_s1 + $0x38] sm:$0xff] }
   0x6   :  { %56 = vmatpush.msra.mxu0 %v2047_v2  ;;  %314 = vmatpush.msra.mxu3 %v2047_v2  ;;  %v2120_v14 = vld [vmem:[%s3271_s1 + $0xe0] sm:$0xff]  ;;  %v2139_v17 = vld [vmem:[%s3271_s1 + $0xd8] sm:$0xff]  ;;  %v2152_v19 = vld [vmem:[%s3271_s1 + $0x30] sm:$0xff] }
   0x7   :  { %105 = vmatpush.msra.mxu1 %v2083_v8  ;;  %153 = vmatpush.msra.mxu2 %v2090_v9  ;;  %v2128_v15 = vld [vmem:[%s3271_s1 + $0x160] sm:$0xff]  ;;  %v2147_v18 = vld [vmem:[%s3271_s1 + $0x158] sm:$0xff]  ;;  %v2158_v20 = vld [vmem:[%s3271_s1 + $0xd0] sm:$0xff] }
   0x8   :  { %57 = vmatpush.msra.mxu0 %v2054_v3  ;;  %315 = vmatpush.msra.mxu3 %v2054_v3  ;;  %v2166_v21 = vld [vmem:[%s3271_s1 + $0x150] sm:$0xff]  ;;  %v2171_v22 = vld [vmem:[%s3271_s1 + $0x28] sm:$0xff]  ;;  %v2190_v25 = vld [vmem:[%s3271_s1 + $0x20] sm:$0xff] }
   0x9   :  { %106 = vmatpush.msra.mxu1 %v2101_v11  ;;  %154 = vmatpush.msra.mxu2 %v2109_v12  ;;  %v2177_v23 = vld [vmem:[%s3271_s1 + $0xc8] sm:$0xff]  ;;  %3320 = vst [vmem:[#allocation2_spill] sm:$0xff] %v2190_v25  ;;  %v2196_v26 = vld [vmem:[%s3271_s1 + $0xc0] sm:$0xff]  ;;  %v2209_v28 = vld [vmem:[%s3271_s1 + $0x18] sm:$0xff] }
   0xa   :  { %58 = vmatpush.msra.mxu0 %v2060_v4  ;;  %316 = vmatpush.msra.mxu3 %v2060_v4  ;;  %v2185_v24 = vld [vmem:[%s3271_s1 + $0x148] sm:$0xff]  ;;  %v2204_v27 = vld [vmem:[%s3271_s1 + $0x140] sm:$0xff]  ;;  %3321 = vst [vmem:[#allocation3_spill] sm:$0xff] %v2209_v28  ;;  %v2218_v29 = vld [vmem:[%s3271_s1 + $0x10] sm:$0xff] }
   0xb   :  { %107 = vmatpush.msra.mxu1 %v2120_v14  ;;  %155 = vmatpush.msra.mxu2 %v2128_v15  ;;  %3322 = vst [vmem:[#allocation4_spill] sm:$0xff] %v2218_v29  ;;  %v2226_v30 = vld [vmem:[%s3271_s1 + $0x8] sm:$0xff]  ;;  %v2233_v31 = vld [vmem:[%s3271_s1] sm:$0xff]  ;;  %v2271_v34 = vld [vmem:[%s3271_s1 + $0xb8] sm:$0xff] }
   0xc   :  { %59 = vmatpush.msra.mxu0 %v2067_v5  ;;  %317 = vmatpush.msra.mxu3 %v2067_v5  ;;  %3323 = vst [vmem:[#allocation5_spill] sm:$0xff] %v2226_v30  ;;  %v2240_v32 = vld [vmem:[%s3273_s0] sm:$0xff]  ;;  %v2253_v33 = vld [vmem:[%s3273_s0 + $0x8] sm:$0xff]  ;;  %v2276_v35 = vld [vmem:[%s3271_s1 + $0x138] sm:$0xff] }
   0xd   :  { %108 = vmatpush.msra.mxu1 %v2139_v17  ;;  %156 = vmatpush.msra.mxu2 %v2147_v18  ;;  %3324 = vst [vmem:[#allocation6_spill] sm:$0xff] %v2233_v31  ;;  %v2283_v36 = vld [vmem:[%s3271_s1 + $0xb0] sm:$0xff]  ;;  %v2297_v38 = vld [vmem:[%s3271_s1 + $0xa8] sm:$0xff]  ;;  %v2311_v40 = vld [vmem:[%s3271_s1 + $0xa0] sm:$0xff] }
   0xe   :  { %60 = vmatpush.msra.mxu0 %v2095_v10  ;;  %318 = vmatpush.msra.mxu3 %v2095_v10  ;;  %v2288_v37 = vld [vmem:[%s3271_s1 + $0x130] sm:$0xff]  ;;  %3325 = vst [vmem:[#allocation7_spill] sm:$0xff] %v2297_v38  ;;  %v2302_v39 = vld [vmem:[%s3271_s1 + $0x128] sm:$0xff]  ;;  %v2316_v41 = vld [vmem:[%s3271_s1 + $0x120] sm:$0xff] }
   0xf   :  { %109 = vmatpush.msra.mxu1 %v2158_v20  ;;  %157 = vmatpush.msra.mxu2 %v2166_v21  ;;  %3326 = vst [vmem:[#allocation8_spill] sm:$0xff] %v2311_v40  ;;  %v2325_v42 = vld [vmem:[%s3271_s1 + $0x98] sm:$0xff]  ;;  %v2339_v44 = vld [vmem:[%s3271_s1 + $0x90] sm:$0xff]  ;;  %v2353_v46 = vld [vmem:[%s3271_s1 + $0x88] sm:$0xff] }
  0x10   :  { %61 = vmatpush.msra.mxu0 %v2114_v13  ;;  %319 = vmatpush.msra.mxu3 %v2114_v13  ;;  %3327 = vst [vmem:[#allocation9_spill] sm:$0xff] %v2325_v42  ;;  %v2330_v43 = vld [vmem:[%s3271_s1 + $0x118] sm:$0xff]  ;;  %v2344_v45 = vld [vmem:[%s3271_s1 + $0x110] sm:$0xff]  ;;  %v2358_v47 = vld [vmem:[%s3271_s1 + $0x108] sm:$0xff] }
  0x11   :  { %110 = vmatpush.msra.mxu1 %v2177_v23  ;;  %158 = vmatpush.msra.mxu2 %v2185_v24  ;;  %3328 = vst [vmem:[#allocation10_spill] sm:$0xff] %v2339_v44  ;;  %v2367_v48 = vld [vmem:[%s3271_s1 + $0x80] sm:$0xff] }
  0x12   :  { %62 = vmatpush.msra.mxu0 %v2133_v16  ;;  %320 = vmatpush.msra.mxu3 %v2133_v16  ;;  %3329 = vst [vmem:[#allocation11_spill] sm:$0xff] %v2353_v46  ;;  %v2372_v49 = vld [vmem:[%s3271_s1 + $0x100] sm:$0xff] }
  0x13   :  { %111 = vmatpush.msra.mxu1 %v2196_v26  ;;  %159 = vmatpush.msra.mxu2 %v2204_v27  ;;  %3330 = vst [vmem:[#allocation12_spill] sm:$0xff] %v2367_v48  ;;  %v2402_v50 = vld [vmem:[%s3272_s2] ss:$0 sm:$0xff]  ;;  %v2470_v63 = vld [vmem:[%s3272_s2 + $0x2] ss:$0 sm:$0xff] }
  0x14   :  { %63 = vmatpush.msra.mxu0 %v2152_v19  ;;  %321 = vmatpush.msra.mxu3 %v2152_v19  ;;  %3331 = vst [vmem:[#allocation13_spill] sm:$0xff] %v2470_v63 }
  0x15   :  { %112 = vmatpush.msra.mxu1 %v2271_v34  ;;  %160 = vmatpush.msra.mxu2 %v2276_v35 }
  0x16   :  { %64 = vmatpush.msra.mxu0 %v2171_v22  ;;  %322 = vmatpush.msra.mxu3 %v2171_v22 }
  0x17   :  { %113 = vmatpush.msra.mxu1 %v2283_v36  ;;  %161 = vmatpush.msra.mxu2 %v2288_v37 }
  0x18   :  { %65 = vmatpush.msra.mxu0 %v2190_v25  ;;  %323 = vmatpush.msra.mxu3 %v2190_v25 }
  0x19   :  { %114 = vmatpush.msra.mxu1 %v2297_v38  ;;  %162 = vmatpush.msra.mxu2 %v2302_v39 }
  0x1a   :  { %66 = vmatpush.msra.mxu0 %v2209_v28  ;;  %324 = vmatpush.msra.mxu3 %v2209_v28 }
  0x1b   :  { %115 = vmatpush.msra.mxu1 %v2311_v40  ;;  %163 = vmatpush.msra.mxu2 %v2316_v41 }
  0x1c   :  { %67 = vmatpush.msra.mxu0 %v2218_v29  ;;  %325 = vmatpush.msra.mxu3 %v2218_v29 }
  0x1d   :  { %116 = vmatpush.msra.mxu1 %v2325_v42  ;;  %164 = vmatpush.msra.mxu2 %v2330_v43 }
  0x1e   :  { %68 = vmatpush.msra.mxu0 %v2226_v30  ;;  %326 = vmatpush.msra.mxu3 %v2226_v30 }
  0x1f   :  { %117 = vmatpush.msra.mxu1 %v2339_v44  ;;  %165 = vmatpush.msra.mxu2 %v2344_v45 }
  0x20   :  { %69 = vmatpush.msra.mxu0 %v2233_v31  ;;  %327 = vmatpush.msra.mxu3 %v2233_v31 }
  0x21   :  { %70 = vmatmul.f32.vlgmr.msra.gmra.mxu0 %v2240_v32  ;;  %118 = vmatpush.msra.mxu1 %v2353_v46 }
  0x22   :  { %345 = vmatpush.msrb.mxu0 %v2073_v6  ;;  %564 = vmatpush.msrb.mxu3 %v2073_v6 }
  0x23   :  { %166 = vmatpush.msra.mxu2 %v2358_v47  ;;  %119 = vmatpush.msra.mxu1 %v2367_v48 }
  0x24   :  { %346 = vmatpush.msrb.mxu0 %v2083_v8  ;;  %565 = vmatpush.msrb.mxu3 %v2083_v8 }
  0x25   :  { %167 = vmatpush.msra.mxu2 %v2372_v49  ;;  %378 = vmatpush.msrb.mxu1 %v2078_v7 }
  0x26   :  { %347 = vmatpush.msrb.mxu0 %v2101_v11  ;;  %566 = vmatpush.msrb.mxu3 %v2101_v11 }
  0x27   :  { %531 = vmatpush.msrb.mxu2 %v2035_v0  ;;  %379 = vmatpush.msrb.mxu1 %v2090_v9 }
  0x28   :  { %348 = vmatpush.msrb.mxu0 %v2120_v14  ;;  %567 = vmatpush.msrb.mxu3 %v2120_v14 }
  0x29   :  { %73 = vmatmul.f32.gmra.mxu0 %v2253_v33  ;;  %532 = vmatpush.msrb.mxu2 %v2040_v1 }
  0x2a   :  { %349 = vmatpush.msrb.mxu0 %v2139_v17  ;;  %568 = vmatpush.msrb.mxu3 %v2139_v17 }
  0x2b   :  { %380 = vmatpush.msrb.mxu1 %v2109_v12  ;;  %533 = vmatpush.msrb.mxu2 %v2047_v2 }
  0x2c   :  { %350 = vmatpush.msrb.mxu0 %v2158_v20  ;;  %569 = vmatpush.msrb.mxu3 %v2158_v20 }
  0x2d   :  { %381 = vmatpush.msrb.mxu1 %v2128_v15  ;;  %534 = vmatpush.msrb.mxu2 %v2054_v3 }
  0x2e   :  { %351 = vmatpush.msrb.mxu0 %v2177_v23  ;;  %570 = vmatpush.msrb.mxu3 %v2177_v23 }
  0x2f   :  { %382 = vmatpush.msrb.mxu1 %v2147_v18  ;;  %535 = vmatpush.msrb.mxu2 %v2060_v4 }
  0x30   :  { %352 = vmatpush.msrb.mxu0 %v2196_v26  ;;  %571 = vmatpush.msrb.mxu3 %v2196_v26 }
  0x31   :  { %383 = vmatpush.msrb.mxu1 %v2166_v21  ;;  %536 = vmatpush.msrb.mxu2 %v2067_v5 }
  0x32   :  { %353 = vmatpush.msrb.mxu0 %v2271_v34  ;;  %572 = vmatpush.msrb.mxu3 %v2271_v34 }
  0x33   :  { %384 = vmatpush.msrb.mxu1 %v2185_v24  ;;  %537 = vmatpush.msrb.mxu2 %v2095_v10 }
  0x34   :  { %354 = vmatpush.msrb.mxu0 %v2283_v36  ;;  %573 = vmatpush.msrb.mxu3 %v2283_v36 }
  0x35   :  { %385 = vmatpush.msrb.mxu1 %v2204_v27  ;;  %538 = vmatpush.msrb.mxu2 %v2114_v13 }
  0x36   :  { %355 = vmatpush.msrb.mxu0 %v2297_v38  ;;  %574 = vmatpush.msrb.mxu3 %v2297_v38 }
  0x37   :  { %386 = vmatpush.msrb.mxu1 %v2276_v35  ;;  %539 = vmatpush.msrb.mxu2 %v2133_v16 }
  0x38   :  { %356 = vmatpush.msrb.mxu0 %v2311_v40  ;;  %575 = vmatpush.msrb.mxu3 %v2311_v40 }
  0x39   :  { %387 = vmatpush.msrb.mxu1 %v2288_v37  ;;  %540 = vmatpush.msrb.mxu2 %v2152_v19 }
  0x3a   :  { %357 = vmatpush.msrb.mxu0 %v2325_v42  ;;  %576 = vmatpush.msrb.mxu3 %v2325_v42 }
  0x3b   :  { %388 = vmatpush.msrb.mxu1 %v2302_v39  ;;  %541 = vmatpush.msrb.mxu2 %v2171_v22 }
  0x3c   :  { %358 = vmatpush.msrb.mxu0 %v2339_v44  ;;  %577 = vmatpush.msrb.mxu3 %v2339_v44 }
  0x3d   :  { %389 = vmatpush.msrb.mxu1 %v2316_v41  ;;  %542 = vmatpush.msrb.mxu2 %v2190_v25 }
  0x3e   :  { %359 = vmatpush.msrb.mxu0 %v2353_v46  ;;  %578 = vmatpush.msrb.mxu3 %v2353_v46 }
  0x3f   :  { %390 = vmatpush.msrb.mxu1 %v2330_v43  ;;  %543 = vmatpush.msrb.mxu2 %v2209_v28 }
  0x40   :  { %360 = vmatpush.msrb.mxu0 %v2367_v48  ;;  %579 = vmatpush.msrb.mxu3 %v2367_v48 }
  0x41   :  { %391 = vmatpush.msrb.mxu1 %v2344_v45  ;;  %544 = vmatpush.msrb.mxu2 %v2218_v29 }
  0x42   :  { %597 = vmatpush.msra.mxu0 %v2078_v7 }
  0x43   :  { %392 = vmatpush.msrb.mxu1 %v2358_v47  ;;  %545 = vmatpush.msrb.mxu2 %v2226_v30 }
  0x44   :  { %598 = vmatpush.msra.mxu0 %v2090_v9 }
  0x45   :  { %393 = vmatpush.msrb.mxu1 %v2372_v49  ;;  %546 = vmatpush.msrb.mxu2 %v2233_v31 }
  0x46   :  { %599 = vmatpush.msra.mxu0 %v2109_v12 }
  0x48   :  { %600 = vmatpush.msra.mxu0 %v2128_v15 }
  0x4a   :  { %601 = vmatpush.msra.mxu0 %v2147_v18 }
  0x4c   :  { %602 = vmatpush.msra.mxu0 %v2166_v21 }
  0x4e   :  { %603 = vmatpush.msra.mxu0 %v2185_v24 }
  0x50   :  { %604 = vmatpush.msra.mxu0 %v2204_v27 }
  0x52   :  { %605 = vmatpush.msra.mxu0 %v2276_v35 }
  0x54   :  { %606 = vmatpush.msra.mxu0 %v2288_v37 }
  0x56   :  { %607 = vmatpush.msra.mxu0 %v2302_v39 }
  0x58   :  { %608 = vmatpush.msra.mxu0 %v2316_v41 }
  0x5a   :  { %609 = vmatpush.msra.mxu0 %v2330_v43 }
  0x5c   :  { %610 = vmatpush.msra.mxu0 %v2344_v45 }
  0x5e   :  { %611 = vmatpush.msra.mxu0 %v2358_v47 }
  0x60   :  { %612 = vmatpush.msra.mxu0 %v2372_v49 }
  0x9e   :  { %v71_v51 = vpop.f32.mrf.mxu0 }
  0x9f   :  { %v72_v52 = vadd.f32 %v2402_v50, %v71_v51 }
  0xa1   :  { %v77_v53 = vmul.f32 0.5, %v72_v52 }
  0xa3   :  { %1773 = vtanh.f32 %v77_v53  ;;  %v2001_v53 = vmov 8.0  }
  0xa6   :  { %v74_v54 = vpop.f32.mrf.mxu0 }
  0xa7   :  { %v75_v55 = vadd.f32 %v2402_v50, %v74_v54 }
  0xa9   :  { %v1774_v56 = vpop.eup %1773  ;;  %v78_v57 = vmul.f32 0.5, %v75_v55 }
  0xaa   :  { %v81_v58 = vadd.f32 1.0, %v1774_v56 }
  0xab   :  { %1775 = vtanh.f32 %v78_v57 }
  0xac   :  { %v83_v59 = vmul.f32 0.5, %v81_v58  ;;  %1777 = vrcp.f32 %v2001_v53 }
  0xae   :  { %120 = vmatmul.f32.vlgmr.msra.gmra.mxu1 %v83_v59  ;;  %168 = vmatmul.f32.vlgmr.msra.gmra.mxu2 %v83_v59 }
  0xaf   :  { %750 = vmatpush.msra.mxu1 %v2035_v0  ;;  %783 = vmatpush.msra.mxu2 %v2073_v6 }
  0xb1   :  { %v1776_v60 = vpop.eup %1775  ;;  %751 = vmatpush.msra.mxu1 %v2040_v1  ;;  %784 = vmatpush.msra.mxu2 %v2083_v8 }
  0xb2   :  { %v82_v61 = vadd.f32 1.0, %v1776_v60  ;;  %v1778_v55 = vpop.eup %1777 }
  0xb3   :  { %752 = vmatpush.msra.mxu1 %v2047_v2  ;;  %785 = vmatpush.msra.mxu2 %v2101_v11  ;;  %v196_v59 = vmul.f32 8.0, %v1778_v55  ;;  %vm200_vm0 = vweird.f32 %v1778_v55 }
  0xb4   :  { %v84_v62 = vmul.f32 0.5, %v82_v61 }
  0xb5   :  { %753 = vmatpush.msra.mxu1 %v2054_v3  ;;  %786 = vmatpush.msra.mxu2 %v2120_v14 }
  0xb6   :  { %123 = vmatmul.f32.gmra.mxu1 %v84_v62  ;;  %171 = vmatmul.f32.gmra.mxu2 %v84_v62 }
  0xb7   :  { %754 = vmatpush.msra.mxu1 %v2060_v4  ;;  %787 = vmatpush.msra.mxu2 %v2139_v17 }
  0xb9   :  { %755 = vmatpush.msra.mxu1 %v2067_v5  ;;  %788 = vmatpush.msra.mxu2 %v2158_v20 }
  0xbb   :  { %756 = vmatpush.msra.mxu1 %v2095_v10  ;;  %789 = vmatpush.msra.mxu2 %v2177_v23 }
  0xbd   :  { %757 = vmatpush.msra.mxu1 %v2114_v13  ;;  %790 = vmatpush.msra.mxu2 %v2196_v26 }
  0xbf   :  { %758 = vmatpush.msra.mxu1 %v2133_v16  ;;  %791 = vmatpush.msra.mxu2 %v2271_v34 }
  0xc1   :  { %759 = vmatpush.msra.mxu1 %v2152_v19  ;;  %792 = vmatpush.msra.mxu2 %v2283_v36 }
  0xc3   :  { %760 = vmatpush.msra.mxu1 %v2171_v22  ;;  %793 = vmatpush.msra.mxu2 %v2297_v38 }
  0xc5   :  { %761 = vmatpush.msra.mxu1 %v2190_v25  ;;  %794 = vmatpush.msra.mxu2 %v2311_v40 }
  0xc7   :  { %762 = vmatpush.msra.mxu1 %v2209_v28  ;;  %795 = vmatpush.msra.mxu2 %v2325_v42 }
  0xc9   :  { %763 = vmatpush.msra.mxu1 %v2218_v29  ;;  %796 = vmatpush.msra.mxu2 %v2339_v44 }
  0xcb   :  { %764 = vmatpush.msra.mxu1 %v2226_v30  ;;  %797 = vmatpush.msra.mxu2 %v2353_v46 }
  0xcd   :  { %765 = vmatpush.msra.mxu1 %v2233_v31  ;;  %798 = vmatpush.msra.mxu2 %v2367_v48  ;;  %v197_v48 = vsub.f32 1.0, %v196_v59 }
  0xcf   :  { %v198_v44 = vmul.f32 %v1778_v55, %v197_v48 }
 0x131   :  { %v169_v51 = vpop.f32.mrf.mxu2 }
 0x132   :  { %v170_v52 = vadd.f32 %v2470_v63, %v169_v51 }
 0x134   :  { %v175_v54 = vmul.f32 0.5, %v170_v52 }
 0x136   :  { %1779 = vtanh.f32 %v175_v54  ;;  %v199_v54 = vadd.f32 %v1778_v55, %v198_v44 }
 0x138   :  { %v2474_v40 = vsel %vm200_vm0, %v1778_v55, %v199_v54 }
 0x139   :  { %v172_v56 = vpop.f32.mrf.mxu2 }
 0x13a   :  { %v173_v57 = vadd.f32 %v2470_v63, %v172_v56 }
 0x13c   :  { %v1780_v58 = vpop.eup %1779  ;;  %v176_v60 = vmul.f32 0.5, %v173_v57 }
 0x13d   :  { %v179_v61 = vadd.f32 1.0, %v1780_v58 }
 0x13e   :  { %1781 = vtanh.f32 %v176_v60 }
 0x13f   :  { %v181_v62 = vmul.f32 0.5, %v179_v61 }
 0x141   :  { %v183_v31 = vrot.slane %v181_v62, 4 }
 0x143   :  { %v184_v46 = vadd.f32 %v183_v31, %v181_v62 }
 0x144   :  { %v1782_v30 = vpop.eup %1781 }
 0x145   :  { %v185_v51 = vrot.slane %v184_v46, 2  ;;  %v180_v29 = vadd.f32 1.0, %v1782_v30 }
 0x147   :  { %v186_v53 = vadd.f32 %v185_v51, %v184_v46  ;;  %v182_v52 = vmul.f32 0.5, %v180_v29 }
 0x149   :  { %v187_v42 = vrot.slane %v186_v53, 1  ;;  %v189_v28 = vrot.slane %v182_v52, 4 }
 0x14b   :  { %v188_v56 = vadd.f32 %v187_v42, %v186_v53  ;;  %v190_v63 = vadd.f32 %v189_v28, %v182_v52 }
 0x14d   :  { %v202_v57 = vmul.f32 %v2474_v40, %v188_v56  ;;  %v191_v58 = vrot.slane %v190_v63, 2 }
 0x14f   :  { %v204_v59 = vsub.f32 %v181_v62, %v202_v57  ;;  %v192_v60 = vadd.f32 %v191_v58, %v190_v63 }
 0x151   :  { %v206_v31 = vmul.f32 %v204_v59, %v204_v59  ;;  %v193_v61 = vrot.slane %v192_v60, 1 }
 0x153   :  { %v208_v48 = vrot.slane %v206_v31, 4  ;;  %v194_v25 = vadd.f32 %v193_v61, %v192_v60 }
 0x155   :  { %v209_v30 = vadd.f32 %v208_v48, %v206_v31  ;;  %v203_v29 = vmul.f32 %v2474_v40, %v194_v25 }
 0x157   :  { %v210_v44 = vrot.slane %v209_v30, 2  ;;  %v205_v46 = vsub.f32 %v182_v52, %v203_v29 }
 0x159   :  { %v211_v51 = vadd.f32 %v210_v44, %v209_v30  ;;  %v207_v38 = vmul.f32 %v205_v46, %v205_v46 }
 0x15b   :  { %v212_v42 = vrot.slane %v211_v51, 1  ;;  %v214_v28 = vrot.slane %v207_v38, 4 }
 0x15d   :  { %v213_v55 = vadd.f32 %v212_v42, %v211_v51  ;;  %v215_v53 = vadd.f32 %v214_v28, %v207_v38  ;;  %v2483_v51 = vld [vmem:[%s3274_s3] ss:$0 sm:$0xff] }
 0x15f   :  { %v216_v54 = vrot.slane %v215_v53, 2  ;;  %v220_v56 = vmul.f32 %v213_v55, %v2474_v40  ;;  %v2488_v55 = vld [vmem:[%s3275_s4] ss:$0 sm:$0xff] }
 0x161   :  { %v217_v62 = vadd.f32 %v216_v54, %v215_v53  ;;  %v222_v63 = vadd.f32 1e-05, %v220_v56 }
 0x163   :  { %v218_v57 = vrot.slane %v217_v62, 1  ;;  %1783 = vrsqrt.f32 %v222_v63  ;;  %vm230_vm2 = vweird.f32 %v222_v63 }
 0x165   :  { %v219_v58 = vadd.f32 %v218_v57, %v217_v62 }
 0x167   :  { %v221_v60 = vmul.f32 %v219_v58, %v2474_v40 }
 0x169   :  { %v1784_v31 = vpop.eup %1783  ;;  %v223_v25 = vadd.f32 1e-05, %v221_v60 }
 0x16a   :  { %v225_v61 = vmul.f32 %v1784_v31, %v222_v63  ;;  %vm231_vm1 = vweird.f32 %v1784_v31 }
 0x16b   :  { %1785 = vrsqrt.f32 %v223_v25  ;;  %vm232_vm3 = vmor %vm230_vm2, %vm231_vm1  ;;  %vm240_vm5 = vweird.f32 %v223_v25 }
 0x16c   :  { %v226_v52 = vmul.f32 %v1784_v31, %v225_v61 }
 0x16e   :  { %v227_v48 = vmul.f32 0.5, %v226_v52  ;;  %v121_v52 = vpop.f32.mrf.mxu1 }
 0x170   :  { %v228_v30 = vsub.f32 1.5, %v227_v48 }
 0x171   :  { %v1786_v29 = vpop.eup %1785 }
 0x172   :  { %v229_v38 = vmul.f32 %v1784_v31, %v228_v30  ;;  %v235_v44 = vmul.f32 %v1786_v29, %v223_v25  ;;  %vm241_vm4 = vweird.f32 %v1786_v29 }
 0x173   :  { %vm242_vm6 = vmor %vm240_vm5, %vm241_vm4 }
 0x174   :  { %v233_v42 = vsel %vm232_vm3, %v1784_v31, %v229_v38  ;;  %v236_v28 = vmul.f32 %v1786_v29, %v235_v44 }
 0x175   :  { %v244_v53 = vmul.f32 %v233_v42, %v204_v59 }
 0x176   :  { %v237_v54 = vmul.f32 0.5, %v236_v28 }
 0x177   :  { %v246_v56 = vmul.f32 %v2483_v51, %v244_v53 }
 0x178   :  { %v238_v62 = vsub.f32 1.5, %v237_v54 }
 0x179   :  { %v2492_v63 = vadd.f32 %v2488_v55, %v246_v56 }
 0x17a   :  { %v239_v57 = vmul.f32 %v1786_v29, %v238_v62 }
 0x17b   :  { %v310_v58 = vadd.f32 %v2492_v63, %v2240_v32 }
 0x17c   :  { %v243_v60 = vsel %vm242_vm6, %v1786_v29, %v239_v57 }
 0x17d   :  { %328 = vmatmul.f32.vlgmr.msra.gmra.mxu3 %v310_v58  ;;  %v245_v31 = vmul.f32 %v243_v60, %v205_v46  ;;  %v2509_v46 = vld [vmem:[%s3272_s2 + $0x1] ss:$0 sm:$0xff] }
 0x17e   :  { %816 = vmatpush.msra.mxu3 %v2078_v7  ;;  %v122_v7 = vadd.f32 %v2509_v46, %v121_v52 }
 0x17f   :  { %v247_v59 = vmul.f32 %v2483_v51, %v245_v31 }
 0x180   :  { %817 = vmatpush.msra.mxu3 %v2090_v9  ;;  %v127_v9 = vmul.f32 0.5, %v122_v7 }
 0x181   :  { %v2500_v61 = vadd.f32 %v2488_v55, %v247_v59 }
 0x182   :  { %818 = vmatpush.msra.mxu3 %v2109_v12  ;;  %v124_v12 = vpop.f32.mrf.mxu1  ;;  %1787 = vtanh.f32 %v127_v9 }
 0x183   :  { %v311_v25 = vadd.f32 %v2500_v61, %v2253_v33 }
 0x184   :  { %819 = vmatpush.msra.mxu3 %v2128_v15  ;;  %v125_v15 = vadd.f32 %v2509_v46, %v124_v12 }
 0x185   :  { %331 = vmatmul.f32.gmra.mxu3 %v311_v25 }
 0x186   :  { %820 = vmatpush.msra.mxu3 %v2147_v18  ;;  %v128_v18 = vmul.f32 0.5, %v125_v15 }
 0x188   :  { %821 = vmatpush.msra.mxu3 %v2166_v21  ;;  %v1788_v21 = vpop.eup %1787  ;;  %1789 = vtanh.f32 %v128_v18 }
 0x18a   :  { %822 = vmatpush.msra.mxu3 %v2185_v24  ;;  %v131_v24 = vadd.f32 1.0, %v1788_v21 }
 0x18c   :  { %823 = vmatpush.msra.mxu3 %v2204_v27  ;;  %v133_v27 = vmul.f32 0.5, %v131_v24 }
 0x18e   :  { %824 = vmatpush.msra.mxu3 %v2276_v35  ;;  %v1790_v48 = vpop.eup %1789  ;;  %v250_v30 = vrot.slane %v133_v27, 4 }
 0x18f   :  { %v132_v29 = vadd.f32 1.0, %v1790_v48 }
 0x190   :  { %825 = vmatpush.msra.mxu3 %v2288_v37  ;;  %v251_v38 = vadd.f32 %v250_v30, %v133_v27 }
 0x191   :  { %v134_v44 = vmul.f32 0.5, %v132_v29 }
 0x192   :  { %826 = vmatpush.msra.mxu3 %v2302_v39  ;;  %v252_v42 = vrot.slane %v251_v38, 2 }
 0x193   :  { %v256_v28 = vrot.slane %v134_v44, 4 }
 0x194   :  { %827 = vmatpush.msra.mxu3 %v2316_v41  ;;  %v253_v53 = vadd.f32 %v252_v42, %v251_v38 }
 0x195   :  { %v257_v54 = vadd.f32 %v256_v28, %v134_v44 }
 0x196   :  { %828 = vmatpush.msra.mxu3 %v2330_v43  ;;  %v254_v56 = vrot.slane %v253_v53, 1 }
 0x197   :  { %v258_v62 = vrot.slane %v257_v54, 2 }
 0x198   :  { %829 = vmatpush.msra.mxu3 %v2344_v45  ;;  %v255_v57 = vadd.f32 %v254_v56, %v253_v53 }
 0x199   :  { %v259_v58 = vadd.f32 %v258_v62, %v257_v54 }
 0x19a   :  { %830 = vmatpush.msra.mxu3 %v2358_v47  ;;  %v262_v60 = vmul.f32 %v255_v57, %v2474_v40 }
 0x19b   :  { %v260_v31 = vrot.slane %v259_v58, 1 }
 0x19c   :  { %831 = vmatpush.msra.mxu3 %v2372_v49  ;;  %v264_v59 = vsub.f32 %v133_v27, %v262_v60 }
 0x19d   :  { %v261_v25 = vadd.f32 %v260_v31, %v259_v58 }
 0x19e   :  { %v266_v52 = vmul.f32 %v264_v59, %v264_v59 }
 0x19f   :  { %v263_v7 = vmul.f32 %v261_v25, %v2474_v40 }
 0x1a0   :  { %v268_v9 = vrot.slane %v266_v52, 4 }
 0x1a1   :  { %v265_v12 = vsub.f32 %v134_v44, %v263_v7 }
 0x1a2   :  { %v269_v15 = vadd.f32 %v268_v9, %v266_v52 }
 0x1a3   :  { %v267_v18 = vmul.f32 %v265_v12, %v265_v12 }
 0x1a4   :  { %v270_v21 = vrot.slane %v269_v15, 2 }
 0x1a5   :  { %v274_v24 = vrot.slane %v267_v18, 4 }
 0x1a6   :  { %v271_v48 = vadd.f32 %v270_v21, %v269_v15 }
 0x1a7   :  { %v275_v30 = vadd.f32 %v274_v24, %v267_v18 }
 0x1a8   :  { %v272_v29 = vrot.slane %v271_v48, 1 }
 0x1a9   :  { %v276_v38 = vrot.slane %v275_v30, 2 }
 0x1aa   :  { %v273_v42 = vadd.f32 %v272_v29, %v271_v48 }
 0x1ab   :  { %v277_v28 = vadd.f32 %v276_v38, %v275_v30  ;;  %v2533_v38 = vld [vmem:[%s3274_s3 + $0x1] ss:$0 sm:$0xff] }
 0x1ac   :  { %v280_v53 = vmul.f32 %v273_v42, %v2474_v40 }
 0x1ad   :  { %v278_v54 = vrot.slane %v277_v28, 1 }
 0x1ae   :  { %v282_v56 = vadd.f32 1e-05, %v280_v53 }
 0x1af   :  { %v279_v27 = vadd.f32 %v278_v54, %v277_v28 }
 0x1b0   :  { %1791 = vrsqrt.f32 %v282_v56  ;;  %vm290_vm8 = vweird.f32 %v282_v56 }
 0x1b1   :  { %v281_v62 = vmul.f32 %v279_v27, %v2474_v40  ;;  %v2539_v27 = vld [vmem:[%s3275_s4 + $0x1] ss:$0 sm:$0xff] }
 0x1b3   :  { %v283_v57 = vadd.f32 1e-05, %v281_v62 }
 0x1b5   :  { %1793 = vrsqrt.f32 %v283_v57  ;;  %vm300_vm11 = vweird.f32 %v283_v57 }
 0x1b6   :  { %v1792_v44 = vpop.eup %1791 }
 0x1b7   :  { %v285_v58 = vmul.f32 %v1792_v44, %v282_v56  ;;  %vm291_vm7 = vweird.f32 %v1792_v44 }
 0x1b8   :  { %vm292_vm9 = vmor %vm290_vm8, %vm291_vm7 }
 0x1b9   :  { %v286_v60 = vmul.f32 %v1792_v44, %v285_v58 }
 0x1bb   :  { %v1794_v31 = vpop.eup %1793  ;;  %v287_v25 = vmul.f32 0.5, %v286_v60 }
 0x1bc   :  { %v295_v52 = vmul.f32 %v1794_v31, %v283_v57  ;;  %vm301_vm10 = vweird.f32 %v1794_v31 }
 0x1bd   :  { %v288_v7 = vsub.f32 1.5, %v287_v25  ;;  %vm302_vm12 = vmor %vm300_vm11, %vm301_vm10 }
 0x1be   :  { %v296_v9 = vmul.f32 %v1794_v31, %v295_v52 }
 0x1bf   :  { %v289_v15 = vmul.f32 %v1792_v44, %v288_v7 }
 0x1c0   :  { %v297_v18 = vmul.f32 0.5, %v296_v9 }
 0x1c1   :  { %v293_v30 = vsel %vm292_vm9, %v1792_v44, %v289_v15 }
 0x1c2   :  { %v298_v29 = vsub.f32 1.5, %v297_v18  ;;  %v304_v42 = vmul.f32 %v293_v30, %v264_v59 }
 0x1c4   :  { %v299_v28 = vmul.f32 %v1794_v31, %v298_v29  ;;  %v306_v56 = vmul.f32 %v2533_v38, %v304_v42 }
 0x1c6   :  { %v303_v58 = vsel %vm302_vm12, %v1794_v31, %v299_v28  ;;  %v308_v25 = vadd.f32 %v2539_v27, %v306_v56 }
 0x1c7   :  { %v305_v52 = vmul.f32 %v303_v58, %v265_v12 }
 0x1c9   :  { %v307_v9 = vmul.f32 %v2533_v38, %v305_v52 }
 0x1cb   :  { %v309_v31 = vadd.f32 %v2539_v27, %v307_v9 }
 0x200   :  { %v329_v21 = vpop.f32.mrf.mxu3 }
 0x201   :  { %v330_v24 = vadd.f32 %v2402_v50, %v329_v21 }
 0x203   :  { %v335_v48 = vmul.f32 0.5, %v330_v24 }
 0x205   :  { %1795 = vtanh.f32 %v335_v48 }
 0x208   :  { %v332_v53 = vpop.f32.mrf.mxu3 }
 0x209   :  { %v333_v54 = vadd.f32 %v2402_v50, %v332_v53 }
 0x20b   :  { %v1796_v62 = vpop.eup %1795  ;;  %v336_v44 = vmul.f32 0.5, %v333_v54 }
 0x20c   :  { %v339_v60 = vadd.f32 1.0, %v1796_v62 }
 0x20d   :  { %1797 = vtanh.f32 %v336_v44 }
 0x20e   :  { %v341_v59 = vmul.f32 0.5, %v339_v60 }
 0x210   :  { %v343_v7 = vadd.f32 %v341_v59, %v308_v25  ;;  %v376_v57 = vadd.f32 %v341_v59, %v2492_v63 }
 0x212   :  { %361 = vmatmul.f32.vlgmr.msrb.gmra.mxu0 %v343_v7  ;;  %394 = vmatmul.f32.vlgmr.msrb.gmra.mxu1 %v376_v57 }
 0x213   :  { %v1798_v15 = vpop.eup %1797  ;;  %969 = vmatpush.msrb.mxu0 %v2035_v0  ;;  %1002 = vmatpush.msrb.mxu1 %v2073_v6  ;;  %v3332_v0 = vld [vmem:[#allocation7_spill] sm:$0xff]  ;;  %v3338_v6 = vld [vmem:[#allocation10_spill] sm:$0xff] }
 0x214   :  { %v340_v18 = vadd.f32 1.0, %v1798_v15 }
 0x215   :  { %970 = vmatpush.msrb.mxu0 %v2040_v1  ;;  %1003 = vmatpush.msrb.mxu1 %v2083_v8  ;;  %v3333_v1 = vld [vmem:[#allocation2_spill] sm:$0xff]  ;;  %v3339_v8 = vld [vmem:[#allocation5_spill] sm:$0xff] }
 0x216   :  { %v342_v12 = vmul.f32 0.5, %v340_v18 }
 0x217   :  { %971 = vmatpush.msrb.mxu0 %v2047_v2  ;;  %1004 = vmatpush.msrb.mxu1 %v2101_v11  ;;  %v3334_v2 = vld [vmem:[#allocation8_spill] sm:$0xff]  ;;  %v3341_v11 = vld [vmem:[#allocation6_spill] sm:$0xff] }
 0x218   :  { %v344_v63 = vadd.f32 %v342_v12, %v309_v31  ;;  %v377_v21 = vadd.f32 %v342_v12, %v2500_v61 }
 0x219   :  { %972 = vmatpush.msrb.mxu0 %v2054_v3  ;;  %1005 = vmatpush.msrb.mxu1 %v2120_v14  ;;  %v3335_v3 = vld [vmem:[#allocation3_spill] sm:$0xff] }
 0x21a   :  { %364 = vmatmul.f32.gmra.mxu0 %v344_v63  ;;  %397 = vmatmul.f32.gmra.mxu1 %v377_v21 }
 0x21b   :  { %973 = vmatpush.msrb.mxu0 %v2060_v4  ;;  %1006 = vmatpush.msrb.mxu1 %v2139_v17  ;;  %v3336_v4 = vld [vmem:[#allocation9_spill] sm:$0xff] }
 0x21d   :  { %974 = vmatpush.msrb.mxu0 %v2067_v5  ;;  %1007 = vmatpush.msrb.mxu1 %v2158_v20  ;;  %v3337_v5 = vld [vmem:[#allocation4_spill] sm:$0xff] }
 0x21f   :  { %975 = vmatpush.msrb.mxu0 %v2095_v10  ;;  %1008 = vmatpush.msrb.mxu1 %v2177_v23  ;;  %v3340_v10 = vld [vmem:[#allocation11_spill] sm:$0xff] }
 0x221   :  { %976 = vmatpush.msrb.mxu0 %v2114_v13  ;;  %1009 = vmatpush.msrb.mxu1 %v2196_v26  ;;  %v3342_v13 = vld [vmem:[#allocation12_spill] sm:$0xff] }
 0x223   :  { %977 = vmatpush.msrb.mxu0 %v2133_v16  ;;  %1010 = vmatpush.msrb.mxu1 %v2271_v34  ;;  %v3343_v16 = vld [vmem:[#allocation13_spill] sm:$0xff] }
 0x225   :  { %978 = vmatpush.msrb.mxu0 %v2152_v19  ;;  %1011 = vmatpush.msrb.mxu1 %v2283_v36 }
 0x227   :  { %979 = vmatpush.msrb.mxu0 %v2171_v22  ;;  %1012 = vmatpush.msrb.mxu1 %v3332_v0 }
 0x229   :  { %980 = vmatpush.msrb.mxu0 %v3333_v1  ;;  %1013 = vmatpush.msrb.mxu1 %v3334_v2 }
 0x22b   :  { %981 = vmatpush.msrb.mxu0 %v3335_v3  ;;  %1014 = vmatpush.msrb.mxu1 %v3336_v4 }
 0x22d   :  { %982 = vmatpush.msrb.mxu0 %v3337_v5  ;;  %1015 = vmatpush.msrb.mxu1 %v3338_v6 }
 0x22f   :  { %983 = vmatpush.msrb.mxu0 %v3339_v8  ;;  %1016 = vmatpush.msrb.mxu1 %v3340_v10 }
 0x231   :  { %984 = vmatpush.msrb.mxu0 %v3341_v11  ;;  %1017 = vmatpush.msrb.mxu1 %v3342_v13 }
 0x28f   :  { %v395_v14 = vpop.f32.mrf.mxu1 }
 0x290   :  { %v396_v17 = vadd.f32 %v3343_v16, %v395_v14 }
 0x292   :  { %v401_v19 = vmul.f32 0.5, %v396_v17 }
 0x294   :  { %1799 = vtanh.f32 %v401_v19 }
 0x297   :  { %v398_v20 = vpop.f32.mrf.mxu1 }
 0x298   :  { %v399_v22 = vadd.f32 %v3343_v16, %v398_v20 }
 0x29a   :  { %v402_v23 = vmul.f32 0.5, %v399_v22  ;;  %v1800_v26 = vpop.eup %1799 }
 0x29b   :  { %v405_v34 = vadd.f32 1.0, %v1800_v26 }
 0x29c   :  { %1801 = vtanh.f32 %v402_v23 }
 0x29d   :  { %v407_v36 = vmul.f32 0.5, %v405_v34 }
 0x29f   :  { %v409_v61 = vrot.slane %v407_v36, 4 }
 0x2a1   :  { %v410_v24 = vadd.f32 %v409_v61, %v407_v36 }
 0x2a2   :  { %v1802_v48 = vpop.eup %1801 }
 0x2a3   :  { %v411_v30 = vrot.slane %v410_v24, 2  ;;  %v406_v29 = vadd.f32 1.0, %v1802_v48 }
 0x2a5   :  { %v412_v42 = vadd.f32 %v411_v30, %v410_v24  ;;  %v408_v28 = vmul.f32 0.5, %v406_v29 }
 0x2a7   :  { %v413_v53 = vrot.slane %v412_v42, 1  ;;  %v415_v54 = vrot.slane %v408_v28, 4 }
 0x2a9   :  { %v414_v56 = vadd.f32 %v413_v53, %v412_v42  ;;  %v416_v62 = vadd.f32 %v415_v54, %v408_v28 }
 0x2ab   :  { %v421_v44 = vmul.f32 %v414_v56, %v2474_v40  ;;  %v417_v58 = vrot.slane %v416_v62, 2 }
 0x2ad   :  { %v423_v60 = vsub.f32 %v407_v36, %v421_v44  ;;  %v418_v59 = vadd.f32 %v417_v58, %v416_v62  ;;  %v2594_v62 = vld [vmem:[%s3271_s1 + $0x178] sm:$0xff]  ;;  %v2601_v58 = vld [vmem:[%s3271_s1 + $0x170] sm:$0xff] }
 0x2af   :  { %v425_v25 = vmul.f32 %v423_v60, %v423_v60  ;;  %v419_v52 = vrot.slane %v418_v59, 1 }
 0x2b1   :  { %v427_v7 = vrot.slane %v425_v25, 4  ;;  %v420_v57 = vadd.f32 %v419_v52, %v418_v59  ;;  %v2618_v52 = vld [vmem:[%s3271_s1 + $0x160] sm:$0xff] }
 0x2b3   :  { %v428_v9 = vadd.f32 %v427_v7, %v425_v25  ;;  %v422_v15 = vmul.f32 %v420_v57, %v2474_v40  ;;  %v362_v25 = vpop.f32.mrf.mxu0  ;;  %v2624_v7 = vld [vmem:[%s3271_s1 + $0x158] sm:$0xff] }
 0x2b4   :  { %v363_v57 = vadd.f32 %v2509_v46, %v362_v25 }
 0x2b5   :  { %v429_v18 = vrot.slane %v428_v9, 2  ;;  %v424_v31 = vsub.f32 %v408_v28, %v422_v15  ;;  %v2643_v15 = vld [vmem:[%s3271_s1 + $0x140] sm:$0xff] }
 0x2b6   :  { %3345 = vst [vmem:[#allocation2_spill] sm:$0xff] %v2643_v15 }
 0x2b7   :  { %v430_v12 = vadd.f32 %v429_v18, %v428_v9  ;;  %v426_v63 = vmul.f32 %v424_v31, %v424_v31  ;;  %v2637_v9 = vld [vmem:[%s3271_s1 + $0x148] sm:$0xff]  ;;  %v368_v18 = vmul.f32 0.5, %v363_v57 }
 0x2b8   :  { %3344 = vst [vmem:[#allocation7_spill] sm:$0xff] %v2637_v9 }
 0x2b9   :  { %v431_v21 = vrot.slane %v430_v12, 1  ;;  %v433_v0 = vrot.slane %v426_v63, 4 }
 0x2bb   :  { %v432_v1 = vadd.f32 %v431_v21, %v430_v12  ;;  %v434_v2 = vadd.f32 %v433_v0, %v426_v63 }
 0x2bd   :  { %v439_v3 = vmul.f32 %v432_v1, %v2474_v40  ;;  %v435_v4 = vrot.slane %v434_v2, 2 }
 0x2bf   :  { %v436_v5 = vadd.f32 %v435_v4, %v434_v2  ;;  %v441_v6 = vadd.f32 1e-05, %v439_v3 }
 0x2c1   :  { %v437_v8 = vrot.slane %v436_v5, 1  ;;  %1803 = vrsqrt.f32 %v441_v6  ;;  %vm449_vm14 = vweird.f32 %v441_v6 }
 0x2c3   :  { %v438_v10 = vadd.f32 %v437_v8, %v436_v5 }
 0x2c5   :  { %v440_v11 = vmul.f32 %v438_v10, %v2474_v40 }
 0x2c7   :  { %v1804_v13 = vpop.eup %1803  ;;  %v442_v14 = vadd.f32 1e-05, %v440_v11 }
 0x2c8   :  { %v444_v17 = vmul.f32 %v1804_v13, %v441_v6  ;;  %vm450_vm13 = vweird.f32 %v1804_v13 }
 0x2c9   :  { %1805 = vrsqrt.f32 %v442_v14  ;;  %vm451_vm15 = vmor %vm449_vm14, %vm450_vm13  ;;  %vm459_vm1 = vweird.f32 %v442_v14 }
 0x2ca   :  { %v445_v19 = vmul.f32 %v1804_v13, %v444_v17  ;;  %1807 = vtanh.f32 %v368_v18 }
 0x2cc   :  { %v446_v20 = vmul.f32 0.5, %v445_v19 }
 0x2ce   :  { %v447_v22 = vsub.f32 1.5, %v446_v20 }
 0x2cf   :  { %v1806_v23 = vpop.eup %1805 }
 0x2d0   :  { %v448_v26 = vmul.f32 %v1804_v13, %v447_v22  ;;  %v454_v34 = vmul.f32 %v1806_v23, %v442_v14  ;;  %vm460_vm0 = vweird.f32 %v1806_v23  ;;  %v1808_v21 = vpop.eup %1807 }
 0x2d1   :  { %vm461_vm2 = vmor %vm459_vm1, %vm460_vm0  ;;  %v372_v0 = vadd.f32 1.0, %v1808_v21 }
 0x2d2   :  { %v452_v36 = vsel %vm451_vm15, %v1804_v13, %v448_v26  ;;  %v455_v61 = vmul.f32 %v1806_v23, %v454_v34 }
 0x2d3   :  { %v463_v24 = vmul.f32 %v452_v36, %v423_v60  ;;  %v2610_v60 = vld [vmem:[%s3271_s1 + $0x168] sm:$0xff] }
 0x2d4   :  { %v456_v48 = vmul.f32 0.5, %v455_v61 }
 0x2d5   :  { %v465_v30 = vmul.f32 %v2483_v51, %v463_v24 }
 0x2d6   :  { %v457_v29 = vsub.f32 1.5, %v456_v48 }
 0x2d7   :  { %v2587_v42 = vadd.f32 %v2488_v55, %v465_v30 }
 0x2d8   :  { %v458_v28 = vmul.f32 %v1806_v23, %v457_v29 }
 0x2d9   :  { %v529_v53 = vadd.f32 %v2587_v42, %v2240_v32 }
 0x2da   :  { %v462_v54 = vsel %vm461_vm2, %v1806_v23, %v458_v28 }
 0x2db   :  { %547 = vmatmul.f32.vlgmr.msrb.gmra.mxu2 %v529_v53  ;;  %v464_v56 = vmul.f32 %v462_v54, %v424_v31  ;;  %v365_v31 = vpop.f32.mrf.mxu0 }
 0x2dc   :  { %1035 = vmatpush.msrb.mxu2 %v2594_v62  ;;  %v366_v12 = vadd.f32 %v2509_v46, %v365_v31 }
 0x2dd   :  { %v466_v44 = vmul.f32 %v2483_v51, %v464_v56 }
 0x2de   :  { %1036 = vmatpush.msrb.mxu2 %v2601_v58  ;;  %v369_v63 = vmul.f32 0.5, %v366_v12 }
 0x2df   :  { %v2605_v32 = vadd.f32 %v2488_v55, %v466_v44 }
 0x2e0   :  { %1037 = vmatpush.msrb.mxu2 %v2610_v60  ;;  %1809 = vtanh.f32 %v369_v63 }
 0x2e1   :  { %v530_v59 = vadd.f32 %v2605_v32, %v2253_v33  ;;  %v2630_v33 = vld [vmem:[%s3271_s1 + $0x150] sm:$0xff] }
 0x2e2   :  { %1038 = vmatpush.msrb.mxu2 %v2618_v52 }
 0x2e3   :  { %550 = vmatmul.f32.gmra.mxu2 %v530_v59 }
 0x2e4   :  { %1039 = vmatpush.msrb.mxu2 %v2624_v7 }
 0x2e6   :  { %1040 = vmatpush.msrb.mxu2 %v2630_v33 }
 0x2e8   :  { %1041 = vmatpush.msrb.mxu2 %v2637_v9 }
 0x2ea   :  { %1042 = vmatpush.msrb.mxu2 %v2643_v15 }
 0x2ec   :  { %1043 = vmatpush.msrb.mxu2 %v2276_v35  ;;  %v374_v35 = vmul.f32 0.5, %v372_v0 }
 0x2ee   :  { %1044 = vmatpush.msrb.mxu2 %v2288_v37  ;;  %v1810_v37 = vpop.eup %1809  ;;  %v469_v1 = vrot.slane %v374_v35, 4 }
 0x2ef   :  { %v373_v2 = vadd.f32 1.0, %v1810_v37 }
 0x2f0   :  { %1045 = vmatpush.msrb.mxu2 %v2302_v39  ;;  %v470_v3 = vadd.f32 %v469_v1, %v374_v35 }
 0x2f1   :  { %v375_v39 = vmul.f32 0.5, %v373_v2 }
 0x2f2   :  { %1046 = vmatpush.msrb.mxu2 %v2316_v41  ;;  %v471_v4 = vrot.slane %v470_v3, 2 }
 0x2f3   :  { %v475_v41 = vrot.slane %v375_v39, 4 }
 0x2f4   :  { %1047 = vmatpush.msrb.mxu2 %v2330_v43  ;;  %v472_v5 = vadd.f32 %v471_v4, %v470_v3 }
 0x2f5   :  { %v476_v6 = vadd.f32 %v475_v41, %v375_v39 }
 0x2f6   :  { %1048 = vmatpush.msrb.mxu2 %v2344_v45  ;;  %v473_v43 = vrot.slane %v472_v5, 1 }
 0x2f7   :  { %v477_v8 = vrot.slane %v476_v6, 2 }
 0x2f8   :  { %1049 = vmatpush.msrb.mxu2 %v2358_v47  ;;  %v474_v10 = vadd.f32 %v473_v43, %v472_v5 }
 0x2f9   :  { %v478_v45 = vadd.f32 %v477_v8, %v476_v6 }
 0x2fa   :  { %1050 = vmatpush.msrb.mxu2 %v2372_v49  ;;  %v481_v11 = vmul.f32 %v474_v10, %v2474_v40 }
 0x2fb   :  { %v479_v13 = vrot.slane %v478_v45, 1 }
 0x2fc   :  { %v483_v47 = vsub.f32 %v374_v35, %v481_v11 }
 0x2fd   :  { %v480_v14 = vadd.f32 %v479_v13, %v478_v45 }
 0x2fe   :  { %v485_v49 = vmul.f32 %v483_v47, %v483_v47 }
 0x2ff   :  { %v482_v17 = vmul.f32 %v480_v14, %v2474_v40 }
 0x300   :  { %v487_v19 = vrot.slane %v485_v49, 4 }
 0x301   :  { %v484_v20 = vsub.f32 %v375_v39, %v482_v17 }
 0x302   :  { %v488_v22 = vadd.f32 %v487_v19, %v485_v49 }
 0x303   :  { %v486_v23 = vmul.f32 %v484_v20, %v484_v20 }
 0x304   :  { %v489_v26 = vrot.slane %v488_v22, 2 }
 0x305   :  { %v493_v34 = vrot.slane %v486_v23, 4 }
 0x306   :  { %v490_v36 = vadd.f32 %v489_v26, %v488_v22  ;;  %v2674_v26 = vld [vmem:[%s3271_s1 + $0xf8] sm:$0xff] }
 0x307   :  { %v494_v61 = vadd.f32 %v493_v34, %v486_v23  ;;  %v2668_v23 = vld [vmem:[%s3271_s1 + $0x78] sm:$0xff]  ;;  %v2686_v34 = vld [vmem:[%s3271_s1 + $0xf0] sm:$0xff] }
 0x308   :  { %v491_v24 = vrot.slane %v490_v36, 1 }
 0x309   :  { %v495_v48 = vrot.slane %v494_v61, 2 }
 0x30a   :  { %v492_v30 = vadd.f32 %v491_v24, %v490_v36  ;;  %v2693_v24 = vld [vmem:[%s3271_s1 + $0x68] sm:$0xff] }
 0x30b   :  { %v496_v29 = vadd.f32 %v495_v48, %v494_v61  ;;  %v2699_v48 = vld [vmem:[%s3271_s1 + $0xe8] sm:$0xff] }
 0x30c   :  { %v499_v28 = vmul.f32 %v492_v30, %v2474_v40 }
 0x30d   :  { %v497_v53 = vrot.slane %v496_v29, 1 }
 0x30e   :  { %v501_v56 = vadd.f32 1e-05, %v499_v28  ;;  %v2706_v28 = vld [vmem:[%s3271_s1 + $0x60] sm:$0xff] }
 0x30f   :  { %v498_v54 = vadd.f32 %v497_v53, %v496_v29  ;;  %v2712_v53 = vld [vmem:[%s3271_s1 + $0xe0] sm:$0xff] }
 0x310   :  { %1811 = vrsqrt.f32 %v501_v56  ;;  %vm509_vm4 = vweird.f32 %v501_v56 }
 0x311   :  { %v500_v44 = vmul.f32 %v498_v54, %v2474_v40  ;;  %v2724_v54 = vld [vmem:[%s3271_s1 + $0xd8] sm:$0xff] }
 0x313   :  { %v502_v59 = vadd.f32 1e-05, %v500_v44  ;;  %v2736_v44 = vld [vmem:[%s3271_s1 + $0xd0] sm:$0xff] }
 0x315   :  { %1813 = vrsqrt.f32 %v502_v59  ;;  %vm519_vm7 = vweird.f32 %v502_v59 }
 0x316   :  { %v1812_v25 = vpop.eup %1811 }
 0x317   :  { %v504_v57 = vmul.f32 %v1812_v25, %v501_v56  ;;  %vm510_vm3 = vweird.f32 %v1812_v25  ;;  %v2730_v56 = vld [vmem:[%s3271_s1 + $0x50] sm:$0xff] }
 0x318   :  { %vm511_vm5 = vmor %vm509_vm4, %vm510_vm3 }
 0x319   :  { %v505_v18 = vmul.f32 %v1812_v25, %v504_v57  ;;  %v2754_v57 = vld [vmem:[%s3271_s1 + $0x40] sm:$0xff] }
 0x31b   :  { %v1814_v31 = vpop.eup %1813  ;;  %v506_v12 = vmul.f32 0.5, %v505_v18  ;;  %v2760_v18 = vld [vmem:[%s3271_s1 + $0xc0] sm:$0xff] }
 0x31c   :  { %v514_v63 = vmul.f32 %v1814_v31, %v502_v59  ;;  %vm520_vm6 = vweird.f32 %v1814_v31  ;;  %v2742_v59 = vld [vmem:[%s3271_s1 + $0x48] sm:$0xff] }
 0x31d   :  { %v507_v21 = vsub.f32 1.5, %v506_v12  ;;  %vm521_vm8 = vmor %vm519_vm7, %vm520_vm6  ;;  %v2772_v12 = vld [vmem:[%s3271_s1 + $0xb8] sm:$0xff] }
 0x31e   :  { %v515_v0 = vmul.f32 %v1814_v31, %v514_v63  ;;  %v2778_v63 = vld [vmem:[%s3271_s1 + $0x30] sm:$0xff] }
 0x31f   :  { %v508_v35 = vmul.f32 %v1812_v25, %v507_v21  ;;  %v2784_v21 = vld [vmem:[%s3271_s1 + $0xb0] sm:$0xff] }
 0x320   :  { %v516_v37 = vmul.f32 0.5, %v515_v0  ;;  %v2790_v0 = vld [vmem:[%s3271_s1 + $0x28] sm:$0xff] }
 0x321   :  { %v512_v39 = vsel %vm511_vm5, %v1812_v25, %v508_v35  ;;  %v2748_v25 = vld [vmem:[%s3271_s1 + $0xc8] sm:$0xff] }
 0x322   :  { %v517_v4 = vsub.f32 1.5, %v516_v37  ;;  %v523_v41 = vmul.f32 %v512_v39, %v483_v47  ;;  %v2796_v35 = vld [vmem:[%s3271_s1 + $0xa8] sm:$0xff]  ;;  %v2802_v37 = vld [vmem:[%s3271_s1 + $0x20] sm:$0xff]  ;;  %v2826_v39 = vld [vmem:[%s3271_s1 + $0x10] sm:$0xff] }
 0x324   :  { %v518_v5 = vmul.f32 %v1814_v31, %v517_v4  ;;  %v525_v8 = vmul.f32 %v2533_v38, %v523_v41  ;;  %v2832_v4 = vld [vmem:[%s3271_s1 + $0x90] sm:$0xff]  ;;  %v2838_v41 = vld [vmem:[%s3271_s1 + $0x8] sm:$0xff] }
 0x325   :  { %3346 = vst [vmem:[#allocation8_spill] sm:$0xff] %v2832_v4 }
 0x326   :  { %v522_v11 = vsel %vm521_vm8, %v1814_v31, %v518_v5  ;;  %v527_v49 = vadd.f32 %v2539_v27, %v525_v8  ;;  %v2766_v31 = vld [vmem:[%s3271_s1 + $0x38] sm:$0xff]  ;;  %3347 = vst [vmem:[#allocation3_spill] sm:$0xff] %v2838_v41  ;;  %v2844_v5 = vld [vmem:[%s3271_s1 + $0x88] sm:$0xff] }
 0x327   :  { %v524_v17 = vmul.f32 %v522_v11, %v484_v20  ;;  %v2680_v20 = vld [vmem:[%s3271_s1 + $0x70] sm:$0xff]  ;;  %3348 = vst [vmem:[#allocation9_spill] sm:$0xff] %v2844_v5 }
 0x35e   :  { %v548_v1 = vpop.f32.mrf.mxu2 }
 0x35f   :  { %v549_v2 = vadd.f32 %v2402_v50, %v548_v1  ;;  %v2808_v1 = vld [vmem:[%s3271_s1 + $0xa0] sm:$0xff] }
 0x361   :  { %v554_v3 = vmul.f32 0.5, %v549_v2  ;;  %v2814_v2 = vld [vmem:[%s3271_s1 + $0x18] sm:$0xff] }
 0x363   :  { %1815 = vtanh.f32 %v554_v3  ;;  %v2820_v3 = vld [vmem:[%s3271_s1 + $0x98] sm:$0xff] }
 0x366   :  { %v551_v6 = vpop.f32.mrf.mxu2 }
 0x367   :  { %v552_v43 = vadd.f32 %v2402_v50, %v551_v6  ;;  %v526_v50 = vmul.f32 %v2533_v38, %v524_v17  ;;  %v2850_v6 = vld [vmem:[%s3271_s1] sm:$0xff] }
 0x368   :  { %3349 = vst [vmem:[#allocation4_spill] sm:$0xff] %v2850_v6 }
 0x369   :  { %v1816_v10 = vpop.eup %1815  ;;  %v555_v45 = vmul.f32 0.5, %v552_v43  ;;  %v528_v36 = vadd.f32 %v2539_v27, %v526_v50  ;;  %v2856_v43 = vld [vmem:[%s3271_s1 + $0x80] sm:$0xff] }
 0x36a   :  { %v558_v13 = vadd.f32 1.0, %v1816_v10  ;;  %3350 = vst [vmem:[#allocation10_spill] sm:$0xff] %v2856_v43 }
 0x36b   :  { %1817 = vtanh.f32 %v555_v45 }
 0x36c   :  { %v560_v14 = vmul.f32 0.5, %v558_v13 }
 0x36e   :  { %v595_v47 = vadd.f32 %v560_v14, %v2587_v42  ;;  %v562_v19 = vadd.f32 %v560_v14, %v527_v49 }
 0x370   :  { %580 = vmatmul.f32.vlgmr.msrb.gmra.mxu3 %v562_v19  ;;  %613 = vmatmul.f32.vlgmr.msra.gmra.mxu0 %v595_v47 }
 0x371   :  { %v1818_v22 = vpop.eup %1817  ;;  %1188 = vmatpush.msrb.mxu3 %v2668_v23  ;;  %1221 = vmatpush.msra.mxu0 %v2674_v26 }
 0x372   :  { %v559_v42 = vadd.f32 1.0, %v1818_v22 }
 0x373   :  { %1189 = vmatpush.msrb.mxu3 %v2680_v20  ;;  %1222 = vmatpush.msra.mxu0 %v2686_v34 }
 0x374   :  { %v561_v61 = vmul.f32 0.5, %v559_v42 }
 0x375   :  { %1190 = vmatpush.msrb.mxu3 %v2693_v24  ;;  %1223 = vmatpush.msra.mxu0 %v2699_v48 }
 0x376   :  { %v563_v30 = vadd.f32 %v561_v61, %v528_v36  ;;  %v596_v29 = vadd.f32 %v561_v61, %v2605_v32  ;;  %v2718_v32 = vld [vmem:[%s3271_s1 + $0x58] sm:$0xff] }
 0x377   :  { %1191 = vmatpush.msrb.mxu3 %v2706_v28  ;;  %1224 = vmatpush.msra.mxu0 %v2712_v53 }
 0x378   :  { %583 = vmatmul.f32.gmra.mxu3 %v563_v30  ;;  %616 = vmatmul.f32.gmra.mxu0 %v596_v29 }
 0x379   :  { %1192 = vmatpush.msrb.mxu3 %v2718_v32  ;;  %1225 = vmatpush.msra.mxu0 %v2724_v54 }
 0x37b   :  { %1193 = vmatpush.msrb.mxu3 %v2730_v56  ;;  %1226 = vmatpush.msra.mxu0 %v2736_v44 }
 0x37d   :  { %1194 = vmatpush.msrb.mxu3 %v2742_v59  ;;  %1227 = vmatpush.msra.mxu0 %v2748_v25 }
 0x37f   :  { %1195 = vmatpush.msrb.mxu3 %v2754_v57  ;;  %1228 = vmatpush.msra.mxu0 %v2760_v18 }
 0x381   :  { %1196 = vmatpush.msrb.mxu3 %v2766_v31  ;;  %1229 = vmatpush.msra.mxu0 %v2772_v12 }
 0x383   :  { %1197 = vmatpush.msrb.mxu3 %v2778_v63  ;;  %1230 = vmatpush.msra.mxu0 %v2784_v21 }
 0x385   :  { %1198 = vmatpush.msrb.mxu3 %v2790_v0  ;;  %1231 = vmatpush.msra.mxu0 %v2796_v35 }
 0x387   :  { %1199 = vmatpush.msrb.mxu3 %v2802_v37  ;;  %1232 = vmatpush.msra.mxu0 %v2808_v1 }
 0x389   :  { %1200 = vmatpush.msrb.mxu3 %v2814_v2  ;;  %1233 = vmatpush.msra.mxu0 %v2820_v3 }
 0x38b   :  { %1201 = vmatpush.msrb.mxu3 %v2826_v39  ;;  %1234 = vmatpush.msra.mxu0 %v2832_v4 }
 0x38d   :  { %1202 = vmatpush.msrb.mxu3 %v2838_v41  ;;  %1235 = vmatpush.msra.mxu0 %v2844_v5 }
 0x38f   :  { %1203 = vmatpush.msrb.mxu3 %v2850_v6  ;;  %1236 = vmatpush.msra.mxu0 %v2856_v43 }
 0x3ed   :  { %v614_v8 = vpop.f32.mrf.mxu0 }
 0x3ee   :  { %v615_v10 = vadd.f32 %v3343_v16, %v614_v8 }
 0x3f0   :  { %v620_v45 = vmul.f32 0.5, %v615_v10 }
 0x3f2   :  { %1819 = vtanh.f32 %v620_v45 }
 0x3f5   :  { %v617_v11 = vpop.f32.mrf.mxu0 }
 0x3f6   :  { %v618_v13 = vadd.f32 %v3343_v16, %v617_v11 }
 0x3f8   :  { %v1820_v14 = vpop.eup %1819  ;;  %v621_v49 = vmul.f32 0.5, %v618_v13 }
 0x3f9   :  { %v624_v17 = vadd.f32 1.0, %v1820_v14 }
 0x3fa   :  { %1821 = vtanh.f32 %v621_v49 }
 0x3fb   :  { %v626_v47 = vmul.f32 0.5, %v624_v17 }
 0x3fd   :  { %v628_v19 = vrot.slane %v626_v47, 4 }
 0x3ff   :  { %v629_v50 = vadd.f32 %v628_v19, %v626_v47 }
 0x400   :  { %v1822_v22 = vpop.eup %1821 }
 0x401   :  { %v630_v42 = vrot.slane %v629_v50, 2  ;;  %v625_v36 = vadd.f32 1.0, %v1822_v22 }
 0x403   :  { %v631_v61 = vadd.f32 %v630_v42, %v629_v50  ;;  %v627_v30 = vmul.f32 0.5, %v625_v36 }
 0x405   :  { %v632_v29 = vrot.slane %v631_v61, 1  ;;  %v634_v43 = vrot.slane %v627_v30, 4 }
 0x407   :  { %v633_v8 = vadd.f32 %v632_v29, %v631_v61  ;;  %v635_v10 = vadd.f32 %v634_v43, %v627_v30 }
 0x409   :  { %v640_v45 = vmul.f32 %v633_v8, %v2474_v40  ;;  %v636_v6 = vrot.slane %v635_v10, 2 }
 0x40b   :  { %v642_v16 = vsub.f32 %v626_v47, %v640_v45  ;;  %v637_v11 = vadd.f32 %v636_v6, %v635_v10 }
 0x40d   :  { %v644_v13 = vmul.f32 %v642_v16, %v642_v16  ;;  %v638_v14 = vrot.slane %v637_v11, 1 }
 0x40f   :  { %v646_v49 = vrot.slane %v644_v13, 4  ;;  %v639_v17 = vadd.f32 %v638_v14, %v637_v11 }
 0x411   :  { %v647_v5 = vadd.f32 %v646_v49, %v644_v13  ;;  %v641_v19 = vmul.f32 %v639_v17, %v2474_v40 }
 0x413   :  { %v648_v41 = vrot.slane %v647_v5, 2  ;;  %v643_v22 = vsub.f32 %v627_v30, %v641_v19 }
 0x415   :  { %v649_v50 = vadd.f32 %v648_v41, %v647_v5  ;;  %v645_v42 = vmul.f32 %v643_v22, %v643_v22 }
 0x417   :  { %v650_v36 = vrot.slane %v649_v50, 1  ;;  %v652_v4 = vrot.slane %v645_v42, 4 }
 0x419   :  { %v651_v61 = vadd.f32 %v650_v36, %v649_v50  ;;  %v653_v43 = vadd.f32 %v652_v4, %v645_v42 }
 0x41b   :  { %v658_v29 = vmul.f32 %v651_v61, %v2474_v40  ;;  %v654_v8 = vrot.slane %v653_v43, 2 }
 0x41d   :  { %v660_v47 = vadd.f32 1e-05, %v658_v29  ;;  %v655_v6 = vadd.f32 %v654_v8, %v653_v43 }
 0x41f   :  { %1823 = vrsqrt.f32 %v660_v47  ;;  %v656_v10 = vrot.slane %v655_v6, 1  ;;  %vm668_vm10 = vweird.f32 %v660_v47 }
 0x421   :  { %v657_v45 = vadd.f32 %v656_v10, %v655_v6  ;;  %v2872_v10 = vld [vmem:[%s3273_s0] sm:$0xff] }
 0x423   :  { %v659_v11 = vmul.f32 %v657_v45, %v2474_v40 }
 0x425   :  { %v1824_v13 = vpop.eup %1823  ;;  %v661_v14 = vadd.f32 1e-05, %v659_v11  ;;  %v581_v11 = vpop.f32.mrf.mxu3 }
 0x426   :  { %v663_v49 = vmul.f32 %v1824_v13, %v660_v47  ;;  %vm669_vm9 = vweird.f32 %v1824_v13 }
 0x427   :  { %1825 = vrsqrt.f32 %v661_v14  ;;  %vm670_vm11 = vmor %vm668_vm10, %vm669_vm9  ;;  %vm678_vm13 = vweird.f32 %v661_v14 }
 0x428   :  { %v664_v41 = vmul.f32 %v1824_v13, %v663_v49  ;;  %v582_v49 = vadd.f32 %v2509_v46, %v581_v11 }
 0x42a   :  { %v665_v5 = vmul.f32 0.5, %v664_v41  ;;  %v2887_v41 = vld [vmem:[%s3273_s0 + $0x8] sm:$0xff] }
 0x42c   :  { %v666_v30 = vsub.f32 1.5, %v665_v5 }
 0x42d   :  { %v1826_v17 = vpop.eup %1825 }
 0x42e   :  { %v667_v4 = vmul.f32 %v1824_v13, %v666_v30  ;;  %v673_v19 = vmul.f32 %v1826_v17, %v661_v14  ;;  %vm679_vm12 = vweird.f32 %v1826_v17  ;;  %v2900_v30 = vld [vmem:[%s3271_s1 + $0x138] sm:$0xff] }
 0x42f   :  { %vm680_vm14 = vmor %vm678_vm13, %vm679_vm12  ;;  %3351 = vst [vmem:[#allocation5_spill] sm:$0xff] %v2900_v30 }
 0x430   :  { %v671_v50 = vsel %vm670_vm11, %v1824_v13, %v667_v4  ;;  %v674_v42 = vmul.f32 %v1826_v17, %v673_v19  ;;  %v2906_v4 = vld [vmem:[%s3271_s1 + $0x130] sm:$0xff] }
 0x431   :  { %v682_v36 = vmul.f32 %v671_v50, %v642_v16  ;;  %3352 = vst [vmem:[#allocation11_spill] sm:$0xff] %v2906_v4 }
 0x432   :  { %v675_v61 = vmul.f32 0.5, %v674_v42  ;;  %v2918_v42 = vld [vmem:[%s3271_s1 + $0x120] sm:$0xff] }
 0x433   :  { %v684_v43 = vmul.f32 %v2483_v51, %v682_v36  ;;  %3354 = vst [vmem:[#allocation12_spill] sm:$0xff] %v2918_v42  ;;  %v2924_v36 = vld [vmem:[%s3271_s1 + $0x118] sm:$0xff] }
 0x434   :  { %v676_v29 = vsub.f32 1.5, %v675_v61  ;;  %3355 = vst [vmem:[#allocation13_spill] sm:$0xff] %v2924_v36 }
 0x435   :  { %v2867_v8 = vadd.f32 %v2488_v55, %v684_v43  ;;  %v2930_v43 = vld [vmem:[%s3271_s1 + $0x110] sm:$0xff] }
 0x436   :  { %v677_v6 = vmul.f32 %v1826_v17, %v676_v29  ;;  %3356 = vst [vmem:[#allocation14_spill] sm:$0xff] %v2930_v43 }
 0x437   :  { %v748_v47 = vadd.f32 %v2872_v10, %v2867_v8 }
 0x438   :  { %v681_v16 = vsel %vm680_vm14, %v1826_v17, %v677_v6  ;;  %v2936_v6 = vld [vmem:[%s3271_s1 + $0x108] sm:$0xff] }
 0x439   :  { %766 = vmatmul.f32.vlgmr.msra.gmra.mxu1 %v748_v47  ;;  %v683_v45 = vmul.f32 %v681_v16, %v643_v22  ;;  %3357 = vst [vmem:[#allocation15_spill] sm:$0xff] %v2936_v6 }
 0x43a   :  { %1254 = vmatpush.msra.mxu1 %v2594_v62 }
 0x43b   :  { %v685_v13 = vmul.f32 %v2483_v51, %v683_v45  ;;  %v587_v51 = vmul.f32 0.5, %v582_v49  ;;  %v2942_v45 = vld [vmem:[%s3271_s1 + $0x100] sm:$0xff] }
 0x43c   :  { %1255 = vmatpush.msra.mxu1 %v2601_v58  ;;  %3358 = vst [vmem:[#allocation16_spill] sm:$0xff] %v2942_v45 }
 0x43d   :  { %v2880_v14 = vadd.f32 %v2488_v55, %v685_v13  ;;  %v584_v55 = vpop.f32.mrf.mxu3  ;;  %1827 = vtanh.f32 %v587_v51 }
 0x43e   :  { %1256 = vmatpush.msra.mxu1 %v2610_v60  ;;  %v585_v5 = vadd.f32 %v2509_v46, %v584_v55  ;;  %v2912_v46 = vld [vmem:[%s3271_s1 + $0x128] sm:$0xff] }
 0x43f   :  { %v749_v22 = vadd.f32 %v2887_v41, %v2880_v14  ;;  %3353 = vst [vmem:[#allocation6_spill] sm:$0xff] %v2912_v46 }
 0x440   :  { %1257 = vmatpush.msra.mxu1 %v2618_v52  ;;  %v588_v17 = vmul.f32 0.5, %v585_v5 }
 0x441   :  { %769 = vmatmul.f32.gmra.mxu1 %v749_v22 }
 0x442   :  { %1258 = vmatpush.msra.mxu1 %v2624_v7  ;;  %1829 = vtanh.f32 %v588_v17 }
 0x443   :  { %v1828_v19 = vpop.eup %1827 }
 0x444   :  { %1259 = vmatpush.msra.mxu1 %v2630_v33  ;;  %v591_v50 = vadd.f32 1.0, %v1828_v19 }
 0x446   :  { %1260 = vmatpush.msra.mxu1 %v2637_v9  ;;  %v593_v61 = vmul.f32 0.5, %v591_v50 }
 0x448   :  { %1261 = vmatpush.msra.mxu1 %v2643_v15  ;;  %v1830_v29 = vpop.eup %1829  ;;  %v688_v47 = vrot.slane %v593_v61, 4 }
 0x449   :  { %v592_v16 = vadd.f32 1.0, %v1830_v29 }
 0x44a   :  { %1262 = vmatpush.msra.mxu1 %v2900_v30  ;;  %v689_v11 = vadd.f32 %v688_v47, %v593_v61 }
 0x44b   :  { %v594_v13 = vmul.f32 0.5, %v592_v16 }
 0x44c   :  { %1263 = vmatpush.msra.mxu1 %v2906_v4  ;;  %v690_v49 = vrot.slane %v689_v11, 2 }
 0x44d   :  { %v694_v22 = vrot.slane %v594_v13, 4 }
 0x44e   :  { %1264 = vmatpush.msra.mxu1 %v2912_v46  ;;  %v691_v51 = vadd.f32 %v690_v49, %v689_v11 }
 0x44f   :  { %v695_v55 = vadd.f32 %v694_v22, %v594_v13 }
 0x450   :  { %1265 = vmatpush.msra.mxu1 %v2918_v42  ;;  %v692_v5 = vrot.slane %v691_v51, 1 }
 0x451   :  { %v696_v17 = vrot.slane %v695_v55, 2 }
 0x452   :  { %1266 = vmatpush.msra.mxu1 %v2924_v36  ;;  %v693_v19 = vadd.f32 %v692_v5, %v691_v51 }
 0x453   :  { %v697_v50 = vadd.f32 %v696_v17, %v695_v55 }
 0x454   :  { %1267 = vmatpush.msra.mxu1 %v2930_v43 }
 0x455   :  { %v698_v29 = vrot.slane %v697_v50, 1 }
 0x456   :  { %1268 = vmatpush.msra.mxu1 %v2936_v6  ;;  %v700_v6 = vmul.f32 %v693_v19, %v2474_v40 }
 0x457   :  { %v699_v36 = vadd.f32 %v698_v29, %v697_v50 }
 0x458   :  { %1269 = vmatpush.msra.mxu1 %v2942_v45  ;;  %v702_v43 = vsub.f32 %v593_v61, %v700_v6 }
 0x459   :  { %v701_v46 = vmul.f32 %v699_v36, %v2474_v40 }
 0x45a   :  { %v704_v42 = vmul.f32 %v702_v43, %v702_v43 }
 0x45b   :  { %v703_v45 = vsub.f32 %v594_v13, %v701_v46 }
 0x45c   :  { %v706_v4 = vrot.slane %v704_v42, 4 }
 0x45d   :  { %v705_v16 = vmul.f32 %v703_v45, %v703_v45 }
 0x45e   :  { %v707_v47 = vadd.f32 %v706_v4, %v704_v42 }
 0x45f   :  { %v712_v15 = vrot.slane %v705_v16, 4 }
 0x460   :  { %v708_v30 = vrot.slane %v707_v47, 2 }
 0x461   :  { %v713_v49 = vadd.f32 %v712_v15, %v705_v16 }
 0x462   :  { %v709_v11 = vadd.f32 %v708_v30, %v707_v47 }
 0x463   :  { %v714_v9 = vrot.slane %v713_v49, 2 }
 0x464   :  { %v710_v22 = vrot.slane %v709_v11, 1 }
 0x465   :  { %v715_v55 = vadd.f32 %v714_v9, %v713_v49 }
 0x466   :  { %v711_v51 = vadd.f32 %v710_v22, %v709_v11  ;;  %v2952_v11 = vld [vmem:[%s3272_s2] ss:$0 sm:$0xff] }
 0x467   :  { %v716_v17 = vrot.slane %v715_v55, 1 }
 0x468   :  { %v718_v5 = vmul.f32 %v711_v51, %v2474_v40 }
 0x469   :  { %v717_v6 = vadd.f32 %v716_v17, %v715_v55 }
 0x46a   :  { %v720_v61 = vadd.f32 1e-05, %v718_v5 }
 0x46b   :  { %v719_v36 = vmul.f32 %v717_v6, %v2474_v40 }
 0x46c   :  { %1831 = vrsqrt.f32 %v720_v61  ;;  %vm728_vm0 = vweird.f32 %v720_v61 }
 0x46d   :  { %v721_v19 = vadd.f32 1e-05, %v719_v36 }
 0x46f   :  { %1833 = vrsqrt.f32 %v721_v19  ;;  %vm738_vm3 = vweird.f32 %v721_v19 }
 0x472   :  { %v1832_v46 = vpop.eup %1831 }
 0x473   :  { %v723_v4 = vmul.f32 %v1832_v46, %v720_v61  ;;  %vm729_vm15 = vweird.f32 %v1832_v46 }
 0x474   :  { %vm730_vm1 = vmor %vm728_vm0, %vm729_vm15 }
 0x475   :  { %v724_v42 = vmul.f32 %v1832_v46, %v723_v4  ;;  %v1834_v13 = vpop.eup %1833 }
 0x476   :  { %v733_v15 = vmul.f32 %v1834_v13, %v721_v19  ;;  %vm739_vm2 = vweird.f32 %v1834_v13 }
 0x477   :  { %v725_v30 = vmul.f32 0.5, %v724_v42  ;;  %vm740_vm4 = vmor %vm738_vm3, %vm739_vm2 }
 0x478   :  { %v734_v29 = vmul.f32 %v1834_v13, %v733_v15 }
 0x479   :  { %v726_v50 = vsub.f32 1.5, %v725_v30 }
 0x47a   :  { %v735_v9 = vmul.f32 0.5, %v734_v29 }
 0x47b   :  { %v727_v47 = vmul.f32 %v1832_v46, %v726_v50 }
 0x47c   :  { %v736_v55 = vsub.f32 1.5, %v735_v9 }
 0x47d   :  { %v731_v22 = vsel %vm730_vm1, %v1832_v46, %v727_v47 }
 0x47e   :  { %v742_v5 = vmul.f32 %v731_v22, %v702_v43  ;;  %v737_v17 = vmul.f32 %v1834_v13, %v736_v55  ;;  %v3362_v22 = vld [vmem:[#allocation4_spill] sm:$0xff] }
 0x480   :  { %v744_v61 = vmul.f32 %v2533_v38, %v742_v5  ;;  %v741_v30 = vsel %vm740_vm4, %v1834_v13, %v737_v17  ;;  %v2997_v5 = vld [vmem:[%s3272_s2 + $0x2] ss:$0 sm:$0xff] }
 0x481   :  { %v743_v29 = vmul.f32 %v741_v30, %v703_v45 }
 0x482   :  { %v746_v46 = vadd.f32 %v2539_v27, %v744_v61 }
 0x483   :  { %v745_v9 = vmul.f32 %v2533_v38, %v743_v29 }
 0x485   :  { %v747_v13 = vadd.f32 %v2539_v27, %v745_v9  ;;  %v3359_v27 = vld [vmem:[#allocation8_spill] sm:$0xff] }
 0x486   :  { %3364 = vst [vmem:[#allocation8_spill] sm:$0xff] %v2997_v5 }
 0x4b6   :  { %v767_v16 = vpop.f32.mrf.mxu1 }
 0x4b7   :  { %v768_v49 = vadd.f32 %v2952_v11, %v767_v16 }
 0x4b9   :  { %v773_v51 = vmul.f32 0.5, %v768_v49  ;;  %v3361_v49 = vld [vmem:[#allocation9_spill] sm:$0xff] }
 0x4bb   :  { %1835 = vtanh.f32 %v773_v51  ;;  %v3363_v51 = vld [vmem:[#allocation10_spill] sm:$0xff] }
 0x4be   :  { %v770_v6 = vpop.f32.mrf.mxu1 }
 0x4bf   :  { %v771_v36 = vadd.f32 %v2952_v11, %v770_v6 }
 0x4c1   :  { %v1836_v4 = vpop.eup %1835  ;;  %v774_v42 = vmul.f32 0.5, %v771_v36 }
 0x4c2   :  { %v777_v15 = vadd.f32 1.0, %v1836_v4 }
 0x4c3   :  { %1837 = vtanh.f32 %v774_v42 }
 0x4c4   :  { %v779_v50 = vmul.f32 0.5, %v777_v15 }
 0x4c6   :  { %v781_v47 = vadd.f32 %v779_v50, %v746_v46  ;;  %v814_v43 = vadd.f32 %v779_v50, %v2867_v8 }
 0x4c8   :  { %799 = vmatmul.f32.vlgmr.msra.gmra.mxu2 %v781_v47  ;;  %832 = vmatmul.f32.vlgmr.msra.gmra.mxu3 %v814_v43 }
 0x4c9   :  { %v1838_v19 = vpop.eup %1837  ;;  %1407 = vmatpush.msra.mxu2 %v2668_v23  ;;  %1440 = vmatpush.msra.mxu3 %v2674_v26 }
 0x4ca   :  { %v778_v16 = vadd.f32 1.0, %v1838_v19 }
 0x4cb   :  { %1408 = vmatpush.msra.mxu2 %v2680_v20  ;;  %1441 = vmatpush.msra.mxu3 %v2686_v34 }
 0x4cc   :  { %v780_v45 = vmul.f32 0.5, %v778_v16 }
 0x4cd   :  { %1409 = vmatpush.msra.mxu2 %v2693_v24  ;;  %1442 = vmatpush.msra.mxu3 %v2699_v48 }
 0x4ce   :  { %v782_v8 = vadd.f32 %v780_v45, %v747_v13  ;;  %v815_v38 = vadd.f32 %v780_v45, %v2880_v14  ;;  %v3360_v14 = vld [vmem:[#allocation3_spill] sm:$0xff] }
 0x4cf   :  { %1410 = vmatpush.msra.mxu2 %v2706_v28  ;;  %1443 = vmatpush.msra.mxu3 %v2712_v53 }
 0x4d0   :  { %802 = vmatmul.f32.gmra.mxu2 %v782_v8  ;;  %835 = vmatmul.f32.gmra.mxu3 %v815_v38 }
 0x4d1   :  { %1411 = vmatpush.msra.mxu2 %v2718_v32  ;;  %1444 = vmatpush.msra.mxu3 %v2724_v54 }
 0x4d3   :  { %1412 = vmatpush.msra.mxu2 %v2730_v56  ;;  %1445 = vmatpush.msra.mxu3 %v2736_v44 }
 0x4d5   :  { %1413 = vmatpush.msra.mxu2 %v2742_v59  ;;  %1446 = vmatpush.msra.mxu3 %v2748_v25 }
 0x4d7   :  { %1414 = vmatpush.msra.mxu2 %v2754_v57  ;;  %1447 = vmatpush.msra.mxu3 %v2760_v18 }
 0x4d9   :  { %1415 = vmatpush.msra.mxu2 %v2766_v31  ;;  %1448 = vmatpush.msra.mxu3 %v2772_v12 }
 0x4db   :  { %1416 = vmatpush.msra.mxu2 %v2778_v63  ;;  %1449 = vmatpush.msra.mxu3 %v2784_v21 }
 0x4dd   :  { %1417 = vmatpush.msra.mxu2 %v2790_v0  ;;  %1450 = vmatpush.msra.mxu3 %v2796_v35 }
 0x4df   :  { %1418 = vmatpush.msra.mxu2 %v2802_v37  ;;  %1451 = vmatpush.msra.mxu3 %v2808_v1 }
 0x4e1   :  { %1419 = vmatpush.msra.mxu2 %v2814_v2  ;;  %1452 = vmatpush.msra.mxu3 %v2820_v3 }
 0x4e3   :  { %1420 = vmatpush.msra.mxu2 %v2826_v39  ;;  %1453 = vmatpush.msra.mxu3 %v3359_v27 }
 0x4e5   :  { %1421 = vmatpush.msra.mxu2 %v3360_v14  ;;  %1454 = vmatpush.msra.mxu3 %v3361_v49 }
 0x4e7   :  { %1422 = vmatpush.msra.mxu2 %v3362_v22  ;;  %1455 = vmatpush.msra.mxu3 %v3363_v51 }
 0x54b   :  { %v833_v55 = vpop.f32.mrf.mxu3 }
 0x54c   :  { %v834_v17 = vadd.f32 %v2997_v5, %v833_v55 }
 0x54e   :  { %v839_v6 = vmul.f32 0.5, %v834_v17 }
 0x550   :  { %1839 = vtanh.f32 %v839_v6 }
 0x553   :  { %v836_v36 = vpop.f32.mrf.mxu3 }
 0x554   :  { %v837_v61 = vadd.f32 %v2997_v5, %v836_v36 }
 0x556   :  { %v840_v4 = vmul.f32 0.5, %v837_v61  ;;  %v1840_v42 = vpop.eup %1839 }
 0x557   :  { %v843_v30 = vadd.f32 1.0, %v1840_v42 }
 0x558   :  { %1841 = vtanh.f32 %v840_v4 }
 0x559   :  { %v845_v15 = vmul.f32 0.5, %v843_v30 }
 0x55b   :  { %v847_v46 = vrot.slane %v845_v15, 4 }
 0x55d   :  { %v848_v50 = vadd.f32 %v847_v46, %v845_v15 }
 0x55e   :  { %v1842_v29 = vpop.eup %1841 }
 0x55f   :  { %v849_v47 = vrot.slane %v848_v50, 2  ;;  %v844_v43 = vadd.f32 1.0, %v1842_v29 }
 0x561   :  { %v850_v9 = vadd.f32 %v849_v47, %v848_v50  ;;  %v846_v19 = vmul.f32 0.5, %v844_v43 }
 0x563   :  { %v851_v16 = vrot.slane %v850_v9, 1  ;;  %v853_v13 = vrot.slane %v846_v19, 4 }
 0x565   :  { %v852_v45 = vadd.f32 %v851_v16, %v850_v9  ;;  %v854_v8 = vadd.f32 %v853_v13, %v846_v19 }
 0x567   :  { %v859_v38 = vmul.f32 %v852_v45, %v2474_v40  ;;  %v855_v55 = vrot.slane %v854_v8, 2 }
 0x569   :  { %v861_v17 = vsub.f32 %v845_v15, %v859_v38  ;;  %v856_v6 = vadd.f32 %v855_v55, %v854_v8 }
 0x56b   :  { %v863_v36 = vmul.f32 %v861_v17, %v861_v17  ;;  %v857_v61 = vrot.slane %v856_v6, 1 }
 0x56d   :  { %v865_v4 = vrot.slane %v863_v36, 4  ;;  %v858_v42 = vadd.f32 %v857_v61, %v856_v6 }
 0x56f   :  { %v866_v30 = vadd.f32 %v865_v4, %v863_v36  ;;  %v860_v46 = vmul.f32 %v858_v42, %v2474_v40 }
 0x571   :  { %v867_v5 = vrot.slane %v866_v30, 2  ;;  %v862_v29 = vsub.f32 %v846_v19, %v860_v46 }
 0x573   :  { %v868_v50 = vadd.f32 %v867_v5, %v866_v30  ;;  %v864_v47 = vmul.f32 %v862_v29, %v862_v29 }
 0x575   :  { %v869_v43 = vrot.slane %v868_v50, 1  ;;  %v871_v51 = vrot.slane %v864_v47, 4 }
 0x577   :  { %v870_v9 = vadd.f32 %v869_v43, %v868_v50  ;;  %v872_v16 = vadd.f32 %v871_v51, %v864_v47 }
 0x579   :  { %v877_v13 = vmul.f32 %v870_v9, %v2474_v40  ;;  %v873_v45 = vrot.slane %v872_v16, 2 }
 0x57b   :  { %v879_v15 = vadd.f32 1e-05, %v877_v13  ;;  %v874_v8 = vadd.f32 %v873_v45, %v872_v16  ;;  %v3008_v16 = vld [vmem:[%s3274_s3] ss:$0 sm:$0xff] }
 0x57d   :  { %1843 = vrsqrt.f32 %v879_v15  ;;  %v875_v38 = vrot.slane %v874_v8, 1  ;;  %vm887_vm6 = vweird.f32 %v879_v15 }
 0x57f   :  { %v876_v55 = vadd.f32 %v875_v38, %v874_v8  ;;  %v3014_v8 = vld [vmem:[%s3275_s4] ss:$0 sm:$0xff] }
 0x581   :  { %v878_v6 = vmul.f32 %v876_v55, %v2474_v40 }
 0x583   :  { %v1844_v36 = vpop.eup %1843  ;;  %v880_v61 = vadd.f32 1e-05, %v878_v6 }
 0x584   :  { %v882_v4 = vmul.f32 %v1844_v36, %v879_v15  ;;  %vm888_vm5 = vweird.f32 %v1844_v36 }
 0x585   :  { %1845 = vrsqrt.f32 %v880_v61  ;;  %vm889_vm7 = vmor %vm887_vm6, %vm888_vm5  ;;  %vm897_vm9 = vweird.f32 %v880_v61 }
 0x586   :  { %v883_v5 = vmul.f32 %v1844_v36, %v882_v4 }
 0x588   :  { %v884_v19 = vmul.f32 0.5, %v883_v5 }
 0x58a   :  { %v885_v42 = vsub.f32 1.5, %v884_v19 }
 0x58b   :  { %v1846_v30 = vpop.eup %1845 }
 0x58c   :  { %v886_v51 = vmul.f32 %v1844_v36, %v885_v42  ;;  %v892_v46 = vmul.f32 %v1846_v30, %v880_v61  ;;  %vm898_vm8 = vweird.f32 %v1846_v30  ;;  %v3031_v61 = vld [vmem:[%s3272_s2 + $0x1] ss:$0 sm:$0xff] }
 0x58d   :  { %vm899_vm10 = vmor %vm897_vm9, %vm898_vm8 }
 0x58e   :  { %v890_v50 = vsel %vm889_vm7, %v1844_v36, %v886_v51  ;;  %v893_v47 = vmul.f32 %v1846_v30, %v892_v46  ;;  %v800_v36 = vpop.f32.mrf.mxu2  ;;  %v3367_v51 = vld [vmem:[#allocation5_spill] sm:$0xff] }
 0x58f   :  { %v901_v43 = vmul.f32 %v890_v50, %v861_v17  ;;  %v801_v19 = vadd.f32 %v3031_v61, %v800_v36  ;;  %v3368_v50 = vld [vmem:[#allocation11_spill] sm:$0xff] }
 0x590   :  { %v894_v9 = vmul.f32 0.5, %v893_v47  ;;  %v3369_v47 = vld [vmem:[#allocation6_spill] sm:$0xff] }
 0x591   :  { %v903_v13 = vmul.f32 %v3008_v16, %v901_v43  ;;  %v3370_v43 = vld [vmem:[#allocation12_spill] sm:$0xff] }
 0x592   :  { %v895_v45 = vsub.f32 1.5, %v894_v9 }
 0x593   :  { %v3017_v15 = vadd.f32 %v3014_v8, %v903_v13  ;;  %v3372_v13 = vld [vmem:[#allocation14_spill] sm:$0xff] }
 0x594   :  { %v896_v38 = vmul.f32 %v1846_v30, %v895_v45 }
 0x595   :  { %v967_v17 = vadd.f32 %v2872_v10, %v3017_v15 }
 0x596   :  { %v900_v55 = vsel %vm899_vm10, %v1846_v30, %v896_v38  ;;  %v3366_v30 = vld [vmem:[#allocation2_spill] sm:$0xff]  ;;  %v3373_v38 = vld [vmem:[#allocation15_spill] sm:$0xff] }
 0x597   :  { %985 = vmatmul.f32.vlgmr.msrb.gmra.mxu0 %v967_v17  ;;  %v902_v6 = vmul.f32 %v900_v55, %v862_v29 }
 0x598   :  { %1473 = vmatpush.msrb.mxu0 %v2594_v62  ;;  %v806_v62 = vmul.f32 0.5, %v801_v19 }
 0x599   :  { %v904_v4 = vmul.f32 %v3008_v16, %v902_v6  ;;  %v3374_v6 = vld [vmem:[#allocation16_spill] sm:$0xff] }
 0x59a   :  { %1474 = vmatpush.msrb.mxu0 %v2601_v58  ;;  %v803_v58 = vpop.f32.mrf.mxu2  ;;  %1847 = vtanh.f32 %v806_v62 }
 0x59b   :  { %v3025_v5 = vadd.f32 %v3014_v8, %v904_v4  ;;  %v804_v42 = vadd.f32 %v3031_v61, %v803_v58 }
 0x59c   :  { %1475 = vmatpush.msrb.mxu0 %v2610_v60  ;;  %v3365_v60 = vld [vmem:[#allocation7_spill] sm:$0xff] }
 0x59d   :  { %v968_v29 = vadd.f32 %v2887_v41, %v3025_v5  ;;  %v807_v46 = vmul.f32 0.5, %v804_v42 }
 0x59e   :  { %1476 = vmatpush.msrb.mxu0 %v2618_v52 }
 0x59f   :  { %988 = vmatmul.f32.gmra.mxu0 %v968_v29  ;;  %1849 = vtanh.f32 %v807_v46 }
 0x5a0   :  { %1477 = vmatpush.msrb.mxu0 %v2624_v7  ;;  %v1848_v52 = vpop.eup %1847 }
 0x5a1   :  { %v810_v7 = vadd.f32 1.0, %v1848_v52 }
 0x5a2   :  { %1478 = vmatpush.msrb.mxu0 %v2630_v33  ;;  %v3371_v33 = vld [vmem:[#allocation13_spill] sm:$0xff] }
 0x5a3   :  { %v812_v9 = vmul.f32 0.5, %v810_v7 }
 0x5a4   :  { %1479 = vmatpush.msrb.mxu0 %v3365_v60 }
 0x5a5   :  { %v1850_v45 = vpop.eup %1849  ;;  %v907_v17 = vrot.slane %v812_v9, 4 }
 0x5a6   :  { %1480 = vmatpush.msrb.mxu0 %v3366_v30  ;;  %v811_v55 = vadd.f32 1.0, %v1850_v45 }
 0x5a7   :  { %v908_v36 = vadd.f32 %v907_v17, %v812_v9 }
 0x5a8   :  { %1481 = vmatpush.msrb.mxu0 %v3367_v51  ;;  %v813_v4 = vmul.f32 0.5, %v811_v55 }
 0x5a9   :  { %v909_v19 = vrot.slane %v908_v36, 2 }
 0x5aa   :  { %1482 = vmatpush.msrb.mxu0 %v3368_v50  ;;  %v913_v29 = vrot.slane %v813_v4, 4 }
 0x5ab   :  { %v910_v62 = vadd.f32 %v909_v19, %v908_v36 }
 0x5ac   :  { %1483 = vmatpush.msrb.mxu0 %v3369_v47  ;;  %v914_v58 = vadd.f32 %v913_v29, %v813_v4 }
 0x5ad   :  { %v911_v60 = vrot.slane %v910_v62, 1 }
 0x5ae   :  { %1484 = vmatpush.msrb.mxu0 %v3370_v43  ;;  %v915_v42 = vrot.slane %v914_v58, 2 }
 0x5af   :  { %v912_v30 = vadd.f32 %v911_v60, %v910_v62 }
 0x5b0   :  { %1485 = vmatpush.msrb.mxu0 %v3371_v33  ;;  %v916_v46 = vadd.f32 %v915_v42, %v914_v58 }
 0x5b1   :  { %v919_v52 = vmul.f32 %v912_v30, %v2474_v40 }
 0x5b2   :  { %1486 = vmatpush.msrb.mxu0 %v3372_v13  ;;  %v917_v7 = vrot.slane %v916_v46, 1 }
 0x5b3   :  { %v921_v13 = vsub.f32 %v812_v9, %v919_v52 }
 0x5b4   :  { %1487 = vmatpush.msrb.mxu0 %v3373_v38  ;;  %v918_v33 = vadd.f32 %v917_v7, %v916_v46 }
 0x5b5   :  { %v923_v38 = vmul.f32 %v921_v13, %v921_v13 }
 0x5b6   :  { %1488 = vmatpush.msrb.mxu0 %v3374_v6  ;;  %v920_v45 = vmul.f32 %v918_v33, %v2474_v40 }
 0x5b7   :  { %v925_v43 = vrot.slane %v923_v38, 4 }
 0x5b8   :  { %v922_v6 = vsub.f32 %v813_v4, %v920_v45 }
 0x5b9   :  { %v926_v17 = vadd.f32 %v925_v43, %v923_v38 }
 0x5ba   :  { %v924_v55 = vmul.f32 %v922_v6, %v922_v6 }
 0x5bb   :  { %v927_v47 = vrot.slane %v926_v17, 2 }
 0x5bc   :  { %v931_v50 = vrot.slane %v924_v55, 4 }
 0x5bd   :  { %v928_v36 = vadd.f32 %v927_v47, %v926_v17 }
 0x5be   :  { %v932_v19 = vadd.f32 %v931_v50, %v924_v55 }
 0x5bf   :  { %v929_v29 = vrot.slane %v928_v36, 1 }
 0x5c0   :  { %v933_v51 = vrot.slane %v932_v19, 2 }
 0x5c1   :  { %v930_v62 = vadd.f32 %v929_v29, %v928_v36 }
 0x5c2   :  { %v934_v58 = vadd.f32 %v933_v51, %v932_v19 }
 0x5c3   :  { %v937_v60 = vmul.f32 %v930_v62, %v2474_v40 }
 0x5c4   :  { %v935_v42 = vrot.slane %v934_v58, 1 }
 0x5c5   :  { %v939_v9 = vadd.f32 1e-05, %v937_v60 }
 0x5c6   :  { %v936_v30 = vadd.f32 %v935_v42, %v934_v58 }
 0x5c7   :  { %1851 = vrsqrt.f32 %v939_v9  ;;  %vm947_vm12 = vweird.f32 %v939_v9 }
 0x5c8   :  { %v938_v33 = vmul.f32 %v936_v30, %v2474_v40 }
 0x5ca   :  { %v940_v46 = vadd.f32 1e-05, %v938_v33  ;;  %v3059_v33 = vld [vmem:[%s3274_s3 + $0x1] ss:$0 sm:$0xff] }
 0x5cc   :  { %1853 = vrsqrt.f32 %v940_v46  ;;  %vm957_vm15 = vweird.f32 %v940_v46 }
 0x5cd   :  { %v1852_v4 = vpop.eup %1851 }
 0x5ce   :  { %v942_v43 = vmul.f32 %v1852_v4, %v939_v9  ;;  %vm948_vm11 = vweird.f32 %v1852_v4 }
 0x5cf   :  { %vm949_vm13 = vmor %vm947_vm12, %vm948_vm11 }
 0x5d0   :  { %v943_v38 = vmul.f32 %v1852_v4, %v942_v43 }
 0x5d2   :  { %v1854_v52 = vpop.eup %1853  ;;  %v944_v47 = vmul.f32 0.5, %v943_v38 }
 0x5d3   :  { %v952_v50 = vmul.f32 %v1854_v52, %v940_v46  ;;  %vm958_vm14 = vweird.f32 %v1854_v52 }
 0x5d4   :  { %v945_v7 = vsub.f32 1.5, %v944_v47  ;;  %vm959_vm0 = vmor %vm957_vm15, %vm958_vm14 }
 0x5d5   :  { %v953_v45 = vmul.f32 %v1854_v52, %v952_v50 }
 0x5d6   :  { %v946_v17 = vmul.f32 %v1852_v4, %v945_v7 }
 0x5d7   :  { %v954_v51 = vmul.f32 0.5, %v953_v45 }
 0x5d8   :  { %v950_v19 = vsel %vm949_vm13, %v1852_v4, %v946_v17 }
 0x5d9   :  { %v955_v62 = vsub.f32 1.5, %v954_v51  ;;  %v961_v58 = vmul.f32 %v950_v19, %v921_v13  ;;  %v3065_v13 = vld [vmem:[%s3275_s4 + $0x1] ss:$0 sm:$0xff] }
 0x5db   :  { %v956_v60 = vmul.f32 %v1854_v52, %v955_v62  ;;  %v963_v9 = vmul.f32 %v3059_v33, %v961_v58 }
 0x5dd   :  { %v960_v38 = vsel %vm959_vm0, %v1854_v52, %v956_v60  ;;  %v965_v46 = vadd.f32 %v3065_v13, %v963_v9 }
 0x5de   :  { %v962_v7 = vmul.f32 %v960_v38, %v922_v6 }
 0x5e0   :  { %v964_v51 = vmul.f32 %v3059_v33, %v962_v7 }
 0x614   :  { %v986_v55 = vpop.f32.mrf.mxu0 }
 0x615   :  { %v987_v36 = vadd.f32 %v2952_v11, %v986_v55 }
 0x617   :  { %v992_v29 = vmul.f32 0.5, %v987_v36  ;;  %v966_v36 = vadd.f32 %v3065_v13, %v964_v51 }
 0x619   :  { %1855 = vtanh.f32 %v992_v29 }
 0x61c   :  { %v989_v42 = vpop.f32.mrf.mxu0 }
 0x61d   :  { %v990_v30 = vadd.f32 %v2952_v11, %v989_v42 }
 0x61f   :  { %v1856_v43 = vpop.eup %1855  ;;  %v993_v4 = vmul.f32 0.5, %v990_v30 }
 0x620   :  { %v996_v47 = vadd.f32 1.0, %v1856_v43 }
 0x621   :  { %1857 = vtanh.f32 %v993_v4 }
 0x622   :  { %v998_v50 = vmul.f32 0.5, %v996_v47 }
 0x624   :  { %v1000_v45 = vadd.f32 %v998_v50, %v965_v46  ;;  %v1033_v17 = vadd.f32 %v998_v50, %v3017_v15 }
 0x626   :  { %1018 = vmatmul.f32.vlgmr.msrb.gmra.mxu1 %v1000_v45  ;;  %1051 = vmatmul.f32.vlgmr.msrb.gmra.mxu2 %v1033_v17 }
 0x627   :  { %v1858_v55 = vpop.eup %1857  ;;  %1626 = vmatpush.msrb.mxu1 %v2668_v23  ;;  %1659 = vmatpush.msrb.mxu2 %v2674_v26  ;;  %v3375_v23 = vld [vmem:[#allocation10_spill] sm:$0xff] }
 0x628   :  { %v997_v52 = vadd.f32 1.0, %v1858_v55 }
 0x629   :  { %1627 = vmatpush.msrb.mxu1 %v2680_v20  ;;  %1660 = vmatpush.msrb.mxu2 %v2686_v34  ;;  %v3376_v20 = vld [vmem:[#allocation8_spill] sm:$0xff] }
 0x62a   :  { %v999_v6 = vmul.f32 0.5, %v997_v52 }
 0x62b   :  { %1628 = vmatpush.msrb.mxu1 %v2693_v24  ;;  %1661 = vmatpush.msrb.mxu2 %v2699_v48 }
 0x62c   :  { %v1001_v15 = vadd.f32 %v999_v6, %v966_v36  ;;  %v1034_v19 = vadd.f32 %v999_v6, %v3025_v5 }
 0x62d   :  { %1629 = vmatpush.msrb.mxu1 %v2706_v28  ;;  %1662 = vmatpush.msrb.mxu2 %v2712_v53 }
 0x62e   :  { %1021 = vmatmul.f32.gmra.mxu1 %v1001_v15  ;;  %1054 = vmatmul.f32.gmra.mxu2 %v1034_v19 }
 0x62f   :  { %1630 = vmatpush.msrb.mxu1 %v2718_v32  ;;  %1663 = vmatpush.msrb.mxu2 %v2724_v54 }
 0x631   :  { %1631 = vmatpush.msrb.mxu1 %v2730_v56  ;;  %1664 = vmatpush.msrb.mxu2 %v2736_v44 }
 0x633   :  { %1632 = vmatpush.msrb.mxu1 %v2742_v59  ;;  %1665 = vmatpush.msrb.mxu2 %v2748_v25 }
 0x635   :  { %1633 = vmatpush.msrb.mxu1 %v2754_v57  ;;  %1666 = vmatpush.msrb.mxu2 %v2760_v18 }
 0x637   :  { %1634 = vmatpush.msrb.mxu1 %v2766_v31  ;;  %1667 = vmatpush.msrb.mxu2 %v2772_v12 }
 0x639   :  { %1635 = vmatpush.msrb.mxu1 %v2778_v63  ;;  %1668 = vmatpush.msrb.mxu2 %v2784_v21 }
 0x63b   :  { %1636 = vmatpush.msrb.mxu1 %v2790_v0  ;;  %1669 = vmatpush.msrb.mxu2 %v2796_v35 }
 0x63d   :  { %1637 = vmatpush.msrb.mxu1 %v2802_v37  ;;  %1670 = vmatpush.msrb.mxu2 %v2808_v1 }
 0x63f   :  { %1638 = vmatpush.msrb.mxu1 %v2814_v2  ;;  %1671 = vmatpush.msrb.mxu2 %v2820_v3 }
 0x641   :  { %1639 = vmatpush.msrb.mxu1 %v2826_v39  ;;  %1672 = vmatpush.msrb.mxu2 %v3359_v27 }
 0x643   :  { %1640 = vmatpush.msrb.mxu1 %v3360_v14  ;;  %1673 = vmatpush.msrb.mxu2 %v3361_v49 }
 0x645   :  { %1641 = vmatpush.msrb.mxu1 %v3362_v22  ;;  %1674 = vmatpush.msrb.mxu2 %v3375_v23 }
 0x6a9   :  { %v1052_v26 = vpop.f32.mrf.mxu2 }
 0x6aa   :  { %v1053_v34 = vadd.f32 %v3376_v20, %v1052_v26 }
 0x6ac   :  { %v1058_v24 = vmul.f32 0.5, %v1053_v34 }
 0x6ae   :  { %1859 = vtanh.f32 %v1058_v24 }
 0x6b1   :  { %v1055_v48 = vpop.f32.mrf.mxu2 }
 0x6b2   :  { %v1056_v28 = vadd.f32 %v3376_v20, %v1055_v48 }
 0x6b4   :  { %v1860_v53 = vpop.eup %1859  ;;  %v1059_v32 = vmul.f32 0.5, %v1056_v28 }
 0x6b5   :  { %v1062_v54 = vadd.f32 1.0, %v1860_v53 }
 0x6b6   :  { %1861 = vtanh.f32 %v1059_v32 }
 0x6b7   :  { %v1064_v56 = vmul.f32 0.5, %v1062_v54 }
 0x6b9   :  { %v1066_v44 = vrot.slane %v1064_v56, 4 }
 0x6bb   :  { %v1067_v59 = vadd.f32 %v1066_v44, %v1064_v56 }
 0x6bc   :  { %v1862_v25 = vpop.eup %1861 }
 0x6bd   :  { %v1068_v57 = vrot.slane %v1067_v59, 2  ;;  %v1063_v18 = vadd.f32 1.0, %v1862_v25  ;;  %v1984_v25 = vld [vmem:[%s3271_s1 + $0x178] sm:$0xff] }
 0x6bf   :  { %v1069_v31 = vadd.f32 %v1068_v57, %v1067_v59  ;;  %v1065_v12 = vmul.f32 0.5, %v1063_v18  ;;  %v1985_v18 = vld [vmem:[%s3271_s1 + $0x170] sm:$0xff] }
 0x6c1   :  { %v1070_v63 = vrot.slane %v1069_v31, 1  ;;  %v1072_v21 = vrot.slane %v1065_v12, 4 }
 0x6c3   :  { %v1071_v0 = vadd.f32 %v1070_v63, %v1069_v31  ;;  %v1073_v35 = vadd.f32 %v1072_v21, %v1065_v12  ;;  %v1986_v31 = vld [vmem:[%s3271_s1 + $0x168] sm:$0xff]  ;;  %v1987_v63 = vld [vmem:[%s3271_s1 + $0x160] sm:$0xff]  ;;  %v1019_v21 = vpop.f32.mrf.mxu1 }
 0x6c5   :  { %v1078_v37 = vmul.f32 %v1071_v0, %v2474_v40  ;;  %v1074_v1 = vrot.slane %v1073_v35, 2  ;;  %v1988_v0 = vld [vmem:[%s3271_s1 + $0x158] sm:$0xff] }
 0x6c7   :  { %v1080_v2 = vsub.f32 %v1064_v56, %v1078_v37  ;;  %v1075_v3 = vadd.f32 %v1074_v1, %v1073_v35  ;;  %v1020_v35 = vadd.f32 %v3031_v61, %v1019_v21  ;;  %v1989_v37 = vld [vmem:[%s3271_s1 + $0x150] sm:$0xff] }
 0x6c9   :  { %v1082_v39 = vmul.f32 %v1080_v2, %v1080_v2  ;;  %v1076_v27 = vrot.slane %v1075_v3, 1  ;;  %v1025_v1 = vmul.f32 0.5, %v1020_v35 }
 0x6cb   :  { %v1084_v14 = vrot.slane %v1082_v39, 4  ;;  %v1077_v49 = vadd.f32 %v1076_v27, %v1075_v3  ;;  %v1022_v3 = vpop.f32.mrf.mxu1  ;;  %v3378_v27 = vld [vmem:[#allocation11_spill] sm:$0xff] }
 0x6cd   :  { %v1085_v22 = vadd.f32 %v1084_v14, %v1082_v39  ;;  %v1079_v5 = vmul.f32 %v1077_v49, %v2474_v40  ;;  %v3377_v39 = vld [vmem:[#allocation5_spill] sm:$0xff]  ;;  %v1023_v14 = vadd.f32 %v3031_v61, %v1022_v3  ;;  %v3379_v49 = vld [vmem:[#allocation6_spill] sm:$0xff] }
 0x6cf   :  { %v1086_v29 = vrot.slane %v1085_v22, 2  ;;  %v1081_v62 = vsub.f32 %v1065_v12, %v1079_v5  ;;  %v1026_v5 = vmul.f32 0.5, %v1023_v14 }
 0x6d1   :  { %v1087_v58 = vadd.f32 %v1086_v29, %v1085_v22  ;;  %v1083_v60 = vmul.f32 %v1081_v62, %v1081_v62  ;;  %v3380_v22 = vld [vmem:[#allocation12_spill] sm:$0xff] }
 0x6d3   :  { %v1088_v42 = vrot.slane %v1087_v58, 1  ;;  %v1090_v30 = vrot.slane %v1083_v60, 4 }
 0x6d5   :  { %v1089_v9 = vadd.f32 %v1088_v42, %v1087_v58  ;;  %v1091_v43 = vadd.f32 %v1090_v30, %v1083_v60  ;;  %v3382_v58 = vld [vmem:[#allocation14_spill] sm:$0xff]  ;;  %v3383_v42 = vld [vmem:[#allocation15_spill] sm:$0xff]  ;;  %v3384_v30 = vld [vmem:[#allocation16_spill] sm:$0xff] }
 0x6d7   :  { %v1096_v4 = vmul.f32 %v1089_v9, %v2474_v40  ;;  %v1092_v38 = vrot.slane %v1091_v43, 2 }
 0x6d9   :  { %v1098_v47 = vadd.f32 1e-05, %v1096_v4  ;;  %v1093_v46 = vadd.f32 %v1092_v38, %v1091_v43 }
 0x6db   :  { %1863 = vrsqrt.f32 %v1098_v47  ;;  %v1094_v50 = vrot.slane %v1093_v46, 1  ;;  %vm1106_vm2 = vweird.f32 %v1098_v47 }
 0x6dd   :  { %v1095_v7 = vadd.f32 %v1094_v50, %v1093_v46 }
 0x6df   :  { %v1097_v45 = vmul.f32 %v1095_v7, %v2474_v40 }
 0x6e1   :  { %v1864_v17 = vpop.eup %1863  ;;  %v1099_v55 = vadd.f32 1e-05, %v1097_v45 }
 0x6e2   :  { %v1101_v51 = vmul.f32 %v1864_v17, %v1098_v47  ;;  %vm1107_vm1 = vweird.f32 %v1864_v17 }
 0x6e3   :  { %1865 = vrsqrt.f32 %v1099_v55  ;;  %vm1108_vm3 = vmor %vm1106_vm2, %vm1107_vm1  ;;  %vm1116_vm5 = vweird.f32 %v1099_v55 }
 0x6e4   :  { %v1102_v52 = vmul.f32 %v1864_v17, %v1101_v51  ;;  %1867 = vtanh.f32 %v1025_v1 }
 0x6e5   :  { %1869 = vtanh.f32 %v1026_v5 }
 0x6e6   :  { %v1103_v36 = vmul.f32 0.5, %v1102_v52 }
 0x6e8   :  { %v1104_v6 = vsub.f32 1.5, %v1103_v36 }
 0x6e9   :  { %v1866_v15 = vpop.eup %1865 }
 0x6ea   :  { %v1105_v19 = vmul.f32 %v1864_v17, %v1104_v6  ;;  %v1111_v23 = vmul.f32 %v1866_v15, %v1099_v55  ;;  %vm1117_vm4 = vweird.f32 %v1866_v15  ;;  %v1868_v29 = vpop.eup %1867 }
 0x6eb   :  { %vm1118_vm6 = vmor %vm1116_vm5, %vm1117_vm4  ;;  %v1029_v60 = vadd.f32 1.0, %v1868_v29  ;;  %v1870_v43 = vpop.eup %1869 }
 0x6ec   :  { %v1109_v26 = vsel %vm1108_vm3, %v1864_v17, %v1105_v19  ;;  %v1112_v24 = vmul.f32 %v1866_v15, %v1111_v23  ;;  %v1030_v38 = vadd.f32 1.0, %v1870_v43 }
 0x6ed   :  { %v1120_v34 = vmul.f32 %v1109_v26, %v1080_v2  ;;  %v1991_v2 = vld [vmem:[%s3271_s1 + $0x140] sm:$0xff]  ;;  %v1031_v9 = vmul.f32 0.5, %v1029_v60 }
 0x6ee   :  { %v1113_v28 = vmul.f32 0.5, %v1112_v24  ;;  %v1032_v46 = vmul.f32 0.5, %v1030_v38 }
 0x6ef   :  { %v1122_v48 = vmul.f32 %v3008_v16, %v1120_v34  ;;  %v1126_v4 = vrot.slane %v1031_v9, 4 }
 0x6f0   :  { %v1114_v32 = vsub.f32 1.5, %v1113_v28  ;;  %v1132_v7 = vrot.slane %v1032_v46, 4 }
 0x6f1   :  { %v3112_v53 = vadd.f32 %v3014_v8, %v1122_v48  ;;  %v1127_v47 = vadd.f32 %v1126_v4, %v1031_v9 }
 0x6f2   :  { %v1115_v56 = vmul.f32 %v1866_v15, %v1114_v32  ;;  %v1133_v17 = vadd.f32 %v1132_v7, %v1032_v46 }
 0x6f3   :  { %v1186_v54 = vadd.f32 %v2872_v10, %v3112_v53  ;;  %v1128_v50 = vrot.slane %v1127_v47, 2 }
 0x6f4   :  { %v1119_v44 = vsel %vm1118_vm6, %v1866_v15, %v1115_v56  ;;  %v1134_v55 = vrot.slane %v1133_v17, 2 }
 0x6f5   :  { %1204 = vmatmul.f32.vlgmr.msrb.gmra.mxu3 %v1186_v54  ;;  %v1121_v59 = vmul.f32 %v1119_v44, %v1081_v62  ;;  %v3381_v62 = vld [vmem:[#allocation13_spill] sm:$0xff]  ;;  %v1129_v45 = vadd.f32 %v1128_v50, %v1127_v47 }
 0x6f6   :  { %1692 = vmatpush.msrb.mxu3 %v1984_v25  ;;  %v1135_v36 = vadd.f32 %v1134_v55, %v1133_v17 }
 0x6f7   :  { %v1123_v57 = vmul.f32 %v3008_v16, %v1121_v59  ;;  %v1130_v51 = vrot.slane %v1129_v45, 1 }
 0x6f8   :  { %1693 = vmatpush.msrb.mxu3 %v1985_v18  ;;  %v1136_v15 = vrot.slane %v1135_v36, 1 }
 0x6f9   :  { %v3124_v10 = vadd.f32 %v3014_v8, %v1123_v57  ;;  %v1131_v52 = vadd.f32 %v1130_v51, %v1129_v45 }
 0x6fa   :  { %1694 = vmatpush.msrb.mxu3 %v1986_v31  ;;  %v1137_v23 = vadd.f32 %v1136_v15, %v1135_v36 }
 0x6fb   :  { %v1187_v12 = vadd.f32 %v2887_v41, %v3124_v10  ;;  %v1990_v41 = vld [vmem:[%s3271_s1 + $0x148] sm:$0xff]  ;;  %v1138_v6 = vmul.f32 %v1131_v52, %v2474_v40 }
 0x6fc   :  { %1695 = vmatpush.msrb.mxu3 %v1987_v63  ;;  %v1139_v34 = vmul.f32 %v1137_v23, %v2474_v40 }
 0x6fd   :  { %1207 = vmatmul.f32.gmra.mxu3 %v1187_v12  ;;  %v1140_v19 = vsub.f32 %v1031_v9, %v1138_v6 }
 0x6fe   :  { %1696 = vmatpush.msrb.mxu3 %v1988_v0  ;;  %v1141_v48 = vsub.f32 %v1032_v46, %v1139_v34 }
 0x6ff   :  { %v1142_v26 = vmul.f32 %v1140_v19, %v1140_v19 }
 0x700   :  { %1697 = vmatpush.msrb.mxu3 %v1989_v37  ;;  %v1143_v32 = vmul.f32 %v1141_v48, %v1141_v48 }
 0x701   :  { %v1144_v24 = vrot.slane %v1142_v26, 4 }
 0x702   :  { %1698 = vmatpush.msrb.mxu3 %v1990_v41  ;;  %v1150_v56 = vrot.slane %v1143_v32, 4 }
 0x703   :  { %v1145_v28 = vadd.f32 %v1144_v24, %v1142_v26 }
 0x704   :  { %1699 = vmatpush.msrb.mxu3 %v1991_v2  ;;  %v1151_v59 = vadd.f32 %v1150_v56, %v1143_v32 }
 0x705   :  { %v1146_v54 = vrot.slane %v1145_v28, 2 }
 0x706   :  { %1700 = vmatpush.msrb.mxu3 %v3377_v39  ;;  %v1152_v57 = vrot.slane %v1151_v59, 2 }
 0x707   :  { %v1147_v44 = vadd.f32 %v1146_v54, %v1145_v28 }
 0x708   :  { %1701 = vmatpush.msrb.mxu3 %v3378_v27  ;;  %v1153_v31 = vadd.f32 %v1152_v57, %v1151_v59 }
 0x709   :  { %v1148_v25 = vrot.slane %v1147_v44, 1 }
 0x70a   :  { %1702 = vmatpush.msrb.mxu3 %v3379_v49  ;;  %v1154_v63 = vrot.slane %v1153_v31, 1 }
 0x70b   :  { %v1149_v18 = vadd.f32 %v1148_v25, %v1147_v44 }
 0x70c   :  { %1703 = vmatpush.msrb.mxu3 %v3380_v22  ;;  %v1155_v0 = vadd.f32 %v1154_v63, %v1153_v31 }
 0x70d   :  { %v1156_v12 = vmul.f32 %v1149_v18, %v2474_v40 }
 0x70e   :  { %1704 = vmatpush.msrb.mxu3 %v3381_v62  ;;  %v1157_v35 = vmul.f32 %v1155_v0, %v2474_v40 }
 0x70f   :  { %v1158_v21 = vadd.f32 1e-05, %v1156_v12 }
 0x710   :  { %1705 = vmatpush.msrb.mxu3 %v3382_v58  ;;  %v1159_v37 = vadd.f32 1e-05, %v1157_v35 }
 0x711   :  { %1871 = vrsqrt.f32 %v1158_v21  ;;  %vm1166_vm8 = vweird.f32 %v1158_v21 }
 0x712   :  { %1706 = vmatpush.msrb.mxu3 %v3383_v42  ;;  %1873 = vrsqrt.f32 %v1159_v37  ;;  %vm1176_vm11 = vweird.f32 %v1159_v37 }
 0x714   :  { %1707 = vmatpush.msrb.mxu3 %v3384_v30 }
 0x717   :  { %v1872_v41 = vpop.eup %1871 }
 0x718   :  { %v1161_v1 = vmul.f32 %v1872_v41, %v1158_v21  ;;  %v1874_v3 = vpop.eup %1873  ;;  %vm1167_vm7 = vweird.f32 %v1872_v41 }
 0x719   :  { %v1171_v27 = vmul.f32 %v1874_v3, %v1159_v37  ;;  %vm1168_vm9 = vmor %vm1166_vm8, %vm1167_vm7  ;;  %vm1177_vm10 = vweird.f32 %v1874_v3 }
 0x71a   :  { %v1162_v2 = vmul.f32 %v1872_v41, %v1161_v1  ;;  %vm1178_vm12 = vmor %vm1176_vm11, %vm1177_vm10 }
 0x71b   :  { %v1172_v49 = vmul.f32 %v1874_v3, %v1171_v27 }
 0x71c   :  { %v1163_v39 = vmul.f32 0.5, %v1162_v2 }
 0x71d   :  { %v1173_v29 = vmul.f32 0.5, %v1172_v49 }
 0x71e   :  { %v1164_v14 = vsub.f32 1.5, %v1163_v39 }
 0x71f   :  { %v1174_v42 = vsub.f32 1.5, %v1173_v29 }
 0x720   :  { %v1165_v22 = vmul.f32 %v1872_v41, %v1164_v14 }
 0x721   :  { %v1175_v9 = vmul.f32 %v1874_v3, %v1174_v42 }
 0x722   :  { %v1169_v58 = vsel %vm1168_vm9, %v1872_v41, %v1165_v22 }
 0x723   :  { %v1180_v30 = vmul.f32 %v1169_v58, %v1140_v19  ;;  %v1179_v7 = vsel %vm1178_vm12, %v1874_v3, %v1175_v9 }
 0x724   :  { %v1181_v51 = vmul.f32 %v1179_v7, %v1141_v48 }
 0x725   :  { %v1182_v4 = vmul.f32 %v3059_v33, %v1180_v30 }
 0x726   :  { %v1183_v36 = vmul.f32 %v3059_v33, %v1181_v51 }
 0x727   :  { %v1184_v45 = vadd.f32 %v3065_v13, %v1182_v4 }
 0x728   :  { %v1185_v15 = vadd.f32 %v3065_v13, %v1183_v36 }
 0x778   :  { %v1205_v5 = vpop.f32.mrf.mxu3 }
 0x779   :  { %v1206_v62 = vadd.f32 %v2952_v11, %v1205_v5 }
 0x77b   :  { %v1211_v60 = vmul.f32 0.5, %v1206_v62 }
 0x77d   :  { %1875 = vtanh.f32 %v1211_v60 }
 0x780   :  { %v1208_v43 = vpop.f32.mrf.mxu3 }
 0x781   :  { %v1209_v38 = vadd.f32 %v2952_v11, %v1208_v43 }
 0x783   :  { %v1876_v47 = vpop.eup %1875  ;;  %v1212_v50 = vmul.f32 0.5, %v1209_v38 }
 0x784   :  { %v1215_v46 = vadd.f32 1.0, %v1876_v47 }
 0x785   :  { %1877 = vtanh.f32 %v1212_v50 }
 0x786   :  { %v1217_v17 = vmul.f32 0.5, %v1215_v46 }
 0x788   :  { %v1219_v55 = vadd.f32 %v1217_v17, %v1184_v45  ;;  %v1252_v52 = vadd.f32 %v1217_v17, %v3112_v53 }
 0x78a   :  { %1237 = vmatmul.f32.vlgmr.msra.gmra.mxu0 %v1219_v55  ;;  %1270 = vmatmul.f32.vlgmr.msra.gmra.mxu1 %v1252_v52 }
 0x78b   :  { %v1878_v6 = vpop.eup %1877 }
 0x78c   :  { %v1216_v11 = vadd.f32 1.0, %v1878_v6 }
 0x78e   :  { %v1218_v19 = vmul.f32 0.5, %v1216_v11 }
 0x790   :  { %v1220_v23 = vadd.f32 %v1218_v19, %v1185_v15  ;;  %v1253_v26 = vadd.f32 %v1218_v19, %v3124_v10 }
 0x792   :  { %1240 = vmatmul.f32.gmra.mxu0 %v1220_v23  ;;  %1273 = vmatmul.f32.gmra.mxu1 %v1253_v26 }
 0x807   :  { %v1271_v34 = vpop.f32.mrf.mxu1 }
 0x808   :  { %v1272_v24 = vadd.f32 %v3376_v20, %v1271_v34 }
 0x80a   :  { %v1277_v48 = vmul.f32 0.5, %v1272_v24 }
 0x80c   :  { %1879 = vtanh.f32 %v1277_v48 }
 0x80f   :  { %v1274_v53 = vpop.f32.mrf.mxu1 }
 0x810   :  { %v1275_v28 = vadd.f32 %v3376_v20, %v1274_v53  ;;  %v3181_v53 = vld [vmem:[%s3273_s0] sm:$0xff] }
 0x812   :  { %v1880_v32 = vpop.eup %1879  ;;  %v1278_v54 = vmul.f32 0.5, %v1275_v28 }
 0x813   :  { %v1281_v56 = vadd.f32 1.0, %v1880_v32 }
 0x814   :  { %1881 = vtanh.f32 %v1278_v54 }
 0x815   :  { %v1283_v44 = vmul.f32 0.5, %v1281_v56 }
 0x817   :  { %v1285_v59 = vrot.slane %v1283_v44, 4 }
 0x819   :  { %v1286_v25 = vadd.f32 %v1285_v59, %v1283_v44 }
 0x81a   :  { %v1882_v57 = vpop.eup %1881 }
 0x81b   :  { %v1287_v18 = vrot.slane %v1286_v25, 2  ;;  %v1282_v10 = vadd.f32 1.0, %v1882_v57 }
 0x81d   :  { %v1288_v31 = vadd.f32 %v1287_v18, %v1286_v25  ;;  %v1284_v12 = vmul.f32 0.5, %v1282_v10  ;;  %v3192_v25 = vld [vmem:[%s3273_s0 + $0x8] sm:$0xff]  ;;  %v1238_v18 = vpop.f32.mrf.mxu0 }
 0x81e   :  { %v1239_v10 = vadd.f32 %v3031_v61, %v1238_v18  ;;  %v3205_v18 = vld [vmem:[%s3272_s2] ss:$0 sm:$0xff] }
 0x81f   :  { %v1289_v63 = vrot.slane %v1288_v31, 1  ;;  %v1291_v21 = vrot.slane %v1284_v12, 4 }
 0x821   :  { %v1290_v0 = vadd.f32 %v1289_v63, %v1288_v31  ;;  %v1292_v35 = vadd.f32 %v1291_v21, %v1284_v12  ;;  %v1244_v31 = vmul.f32 0.5, %v1239_v10 }
 0x823   :  { %v1297_v37 = vmul.f32 %v1290_v0, %v2474_v40  ;;  %v1293_v41 = vrot.slane %v1292_v35, 2 }
 0x825   :  { %v1299_v20 = vsub.f32 %v1283_v44, %v1297_v37  ;;  %v1294_v1 = vadd.f32 %v1293_v41, %v1292_v35 }
 0x827   :  { %v1301_v2 = vmul.f32 %v1299_v20, %v1299_v20  ;;  %v1295_v3 = vrot.slane %v1294_v1, 1 }
 0x829   :  { %v1303_v39 = vrot.slane %v1301_v2, 4  ;;  %v1296_v27 = vadd.f32 %v1295_v3, %v1294_v1 }
 0x82b   :  { %v1304_v14 = vadd.f32 %v1303_v39, %v1301_v2  ;;  %v1298_v49 = vmul.f32 %v1296_v27, %v2474_v40 }
 0x82d   :  { %v1305_v22 = vrot.slane %v1304_v14, 2  ;;  %v1300_v5 = vsub.f32 %v1284_v12, %v1298_v49  ;;  %v1241_v12 = vpop.f32.mrf.mxu0 }
 0x82f   :  { %v1306_v29 = vadd.f32 %v1305_v22, %v1304_v14  ;;  %v1302_v62 = vmul.f32 %v1300_v5, %v1300_v5 }
 0x831   :  { %v1307_v58 = vrot.slane %v1306_v29, 1  ;;  %v1309_v60 = vrot.slane %v1302_v62, 4 }
 0x833   :  { %v1308_v42 = vadd.f32 %v1307_v58, %v1306_v29  ;;  %v1310_v30 = vadd.f32 %v1309_v60, %v1302_v62 }
 0x835   :  { %v1315_v9 = vmul.f32 %v1308_v42, %v2474_v40  ;;  %v1311_v43 = vrot.slane %v1310_v30, 2 }
 0x837   :  { %v1317_v4 = vadd.f32 1e-05, %v1315_v9  ;;  %v1312_v38 = vadd.f32 %v1311_v43, %v1310_v30 }
 0x839   :  { %1883 = vrsqrt.f32 %v1317_v4  ;;  %v1313_v47 = vrot.slane %v1312_v38, 1  ;;  %vm1325_vm14 = vweird.f32 %v1317_v4 }
 0x83b   :  { %v1314_v46 = vadd.f32 %v1313_v47, %v1312_v38 }
 0x83d   :  { %v1316_v50 = vmul.f32 %v1314_v46, %v2474_v40 }
 0x83f   :  { %v1884_v7 = vpop.eup %1883  ;;  %v1318_v17 = vadd.f32 1e-05, %v1316_v50 }
 0x840   :  { %v1320_v45 = vmul.f32 %v1884_v7, %v1317_v4  ;;  %vm1326_vm13 = vweird.f32 %v1884_v7 }
 0x841   :  { %1885 = vrsqrt.f32 %v1318_v17  ;;  %vm1327_vm15 = vmor %vm1325_vm14, %vm1326_vm13  ;;  %vm1335_vm1 = vweird.f32 %v1318_v17 }
 0x842   :  { %v1321_v51 = vmul.f32 %v1884_v7, %v1320_v45  ;;  %1887 = vtanh.f32 %v1244_v31 }
 0x844   :  { %v1322_v55 = vmul.f32 0.5, %v1321_v51 }
 0x846   :  { %v1323_v52 = vsub.f32 1.5, %v1322_v55 }
 0x847   :  { %v1886_v36 = vpop.eup %1885 }
 0x848   :  { %v1324_v6 = vmul.f32 %v1884_v7, %v1323_v52  ;;  %v1330_v11 = vmul.f32 %v1886_v36, %v1318_v17  ;;  %vm1336_vm0 = vweird.f32 %v1886_v36 }
 0x849   :  { %vm1337_vm2 = vmor %vm1335_vm1, %vm1336_vm0 }
 0x84a   :  { %v1328_v15 = vsel %vm1327_vm15, %v1884_v7, %v1324_v6  ;;  %v1331_v23 = vmul.f32 %v1886_v36, %v1330_v11 }
 0x84b   :  { %v1339_v19 = vmul.f32 %v1328_v15, %v1299_v20 }
 0x84c   :  { %v1332_v34 = vmul.f32 0.5, %v1331_v23 }
 0x84d   :  { %v1341_v26 = vmul.f32 %v3008_v16, %v1339_v19 }
 0x84e   :  { %v1333_v48 = vsub.f32 1.5, %v1332_v34 }
 0x84f   :  { %v3176_v24 = vadd.f32 %v3014_v8, %v1341_v26 }
 0x850   :  { %v1334_v32 = vmul.f32 %v1886_v36, %v1333_v48 }
 0x851   :  { %v1405_v28 = vadd.f32 %v3181_v53, %v3176_v24 }
 0x852   :  { %v1338_v54 = vsel %vm1337_vm2, %v1886_v36, %v1334_v32 }
 0x853   :  { %1423 = vmatmul.f32.vlgmr.msra.gmra.mxu2 %v1405_v28  ;;  %v1340_v56 = vmul.f32 %v1338_v54, %v1300_v5 }
 0x855   :  { %v1342_v44 = vmul.f32 %v3008_v16, %v1340_v56  ;;  %v1242_v16 = vadd.f32 %v3031_v61, %v1241_v12 }
 0x857   :  { %v3187_v59 = vadd.f32 %v3014_v8, %v1342_v44  ;;  %v1245_v63 = vmul.f32 0.5, %v1242_v16  ;;  %v1888_v8 = vpop.eup %1887 }
 0x858   :  { %v1248_v21 = vadd.f32 1.0, %v1888_v8 }
 0x859   :  { %v1406_v57 = vadd.f32 %v3192_v25, %v3187_v59  ;;  %1889 = vtanh.f32 %v1245_v63 }
 0x85a   :  { %v1250_v0 = vmul.f32 0.5, %v1248_v21 }
 0x85b   :  { %1426 = vmatmul.f32.gmra.mxu2 %v1406_v57 }
 0x85c   :  { %v1345_v37 = vrot.slane %v1250_v0, 4 }
 0x85e   :  { %v1346_v20 = vadd.f32 %v1345_v37, %v1250_v0 }
 0x85f   :  { %v1890_v35 = vpop.eup %1889 }
 0x860   :  { %v1249_v41 = vadd.f32 1.0, %v1890_v35  ;;  %v1347_v2 = vrot.slane %v1346_v20, 2 }
 0x862   :  { %v1251_v1 = vmul.f32 0.5, %v1249_v41  ;;  %v1348_v39 = vadd.f32 %v1347_v2, %v1346_v20 }
 0x864   :  { %v1351_v3 = vrot.slane %v1251_v1, 4  ;;  %v1349_v14 = vrot.slane %v1348_v39, 1 }
 0x866   :  { %v1352_v27 = vadd.f32 %v1351_v3, %v1251_v1  ;;  %v1350_v22 = vadd.f32 %v1349_v14, %v1348_v39 }
 0x868   :  { %v1353_v49 = vrot.slane %v1352_v27, 2  ;;  %v1357_v61 = vmul.f32 %v1350_v22, %v2474_v40 }
 0x86a   :  { %v1354_v5 = vadd.f32 %v1353_v49, %v1352_v27  ;;  %v1359_v62 = vsub.f32 %v1250_v0, %v1357_v61 }
 0x86c   :  { %v1355_v29 = vrot.slane %v1354_v5, 1  ;;  %v1361_v60 = vmul.f32 %v1359_v62, %v1359_v62 }
 0x86e   :  { %v1356_v58 = vadd.f32 %v1355_v29, %v1354_v5  ;;  %v1363_v30 = vrot.slane %v1361_v60, 4 }
 0x870   :  { %v1358_v42 = vmul.f32 %v1356_v58, %v2474_v40  ;;  %v1364_v43 = vadd.f32 %v1363_v30, %v1361_v60 }
 0x872   :  { %v1360_v9 = vsub.f32 %v1251_v1, %v1358_v42  ;;  %v1365_v38 = vrot.slane %v1364_v43, 2  ;;  %v3218_v42 = vld [vmem:[%s3272_s2 + $0x2] ss:$0 sm:$0xff] }
 0x874   :  { %v1362_v4 = vmul.f32 %v1360_v9, %v1360_v9  ;;  %v1366_v46 = vadd.f32 %v1365_v38, %v1364_v43 }
 0x876   :  { %v1369_v47 = vrot.slane %v1362_v4, 4  ;;  %v1367_v7 = vrot.slane %v1366_v46, 1 }
 0x878   :  { %v1370_v50 = vadd.f32 %v1369_v47, %v1362_v4  ;;  %v1368_v17 = vadd.f32 %v1367_v7, %v1366_v46 }
 0x87a   :  { %v1371_v45 = vrot.slane %v1370_v50, 2  ;;  %v1375_v55 = vmul.f32 %v1368_v17, %v2474_v40 }
 0x87c   :  { %v1372_v51 = vadd.f32 %v1371_v45, %v1370_v50  ;;  %v1377_v36 = vadd.f32 1e-05, %v1375_v55 }
 0x87e   :  { %v1373_v52 = vrot.slane %v1372_v51, 1  ;;  %1891 = vrsqrt.f32 %v1377_v36  ;;  %vm1385_vm4 = vweird.f32 %v1377_v36 }
 0x880   :  { %v1374_v6 = vadd.f32 %v1373_v52, %v1372_v51 }
 0x882   :  { %v1376_v11 = vmul.f32 %v1374_v6, %v2474_v40 }
 0x884   :  { %v1378_v15 = vadd.f32 1e-05, %v1376_v11  ;;  %v1892_v19 = vpop.eup %1891 }
 0x885   :  { %v1380_v23 = vmul.f32 %v1892_v19, %v1377_v36  ;;  %vm1386_vm3 = vweird.f32 %v1892_v19 }
 0x886   :  { %1893 = vrsqrt.f32 %v1378_v15  ;;  %vm1387_vm5 = vmor %vm1385_vm4, %vm1386_vm3  ;;  %vm1395_vm7 = vweird.f32 %v1378_v15 }
 0x887   :  { %v1381_v26 = vmul.f32 %v1892_v19, %v1380_v23 }
 0x889   :  { %v1382_v48 = vmul.f32 0.5, %v1381_v26 }
 0x88b   :  { %v1383_v32 = vsub.f32 1.5, %v1382_v48 }
 0x88c   :  { %v1894_v34 = vpop.eup %1893 }
 0x88d   :  { %v1390_v28 = vmul.f32 %v1894_v34, %v1378_v15  ;;  %v1384_v56 = vmul.f32 %v1892_v19, %v1383_v32  ;;  %vm1396_vm6 = vweird.f32 %v1894_v34 }
 0x88e   :  { %vm1397_vm8 = vmor %vm1395_vm7, %vm1396_vm6 }
 0x88f   :  { %v1391_v54 = vmul.f32 %v1894_v34, %v1390_v28  ;;  %v1388_v31 = vsel %vm1387_vm5, %v1892_v19, %v1384_v56 }
 0x890   :  { %v1399_v63 = vmul.f32 %v1388_v31, %v1359_v62 }
 0x891   :  { %v1392_v57 = vmul.f32 0.5, %v1391_v54 }
 0x892   :  { %v1401_v0 = vmul.f32 %v3059_v33, %v1399_v63 }
 0x893   :  { %v1393_v16 = vsub.f32 1.5, %v1392_v57 }
 0x894   :  { %v1403_v2 = vadd.f32 %v3065_v13, %v1401_v0 }
 0x895   :  { %v1394_v8 = vmul.f32 %v1894_v34, %v1393_v16 }
 0x897   :  { %v1398_v1 = vsel %vm1397_vm8, %v1894_v34, %v1394_v8 }
 0x898   :  { %v1400_v39 = vmul.f32 %v1398_v1, %v1360_v9 }
 0x89a   :  { %v1402_v49 = vmul.f32 %v3059_v33, %v1400_v39 }
 0x89c   :  { %v1404_v61 = vadd.f32 %v3065_v13, %v1402_v49 }
 0x8d6   :  { %v1424_v44 = vpop.f32.mrf.mxu2 }
 0x8d7   :  { %v1425_v10 = vadd.f32 %v3205_v18, %v1424_v44 }
 0x8d9   :  { %v1430_v12 = vmul.f32 0.5, %v1425_v10 }
 0x8db   :  { %1895 = vtanh.f32 %v1430_v12 }
 0x8de   :  { %v1427_v21 = vpop.f32.mrf.mxu2 }
 0x8df   :  { %v1428_v35 = vadd.f32 %v3205_v18, %v1427_v21 }
 0x8e1   :  { %v1896_v37 = vpop.eup %1895  ;;  %v1431_v20 = vmul.f32 0.5, %v1428_v35 }
 0x8e2   :  { %v1434_v41 = vadd.f32 1.0, %v1896_v37 }
 0x8e3   :  { %1897 = vtanh.f32 %v1431_v20 }
 0x8e4   :  { %v1436_v3 = vmul.f32 0.5, %v1434_v41 }
 0x8e6   :  { %v1438_v27 = vadd.f32 %v1436_v3, %v1403_v2  ;;  %v1471_v14 = vadd.f32 %v1436_v3, %v3176_v24 }
 0x8e8   :  { %1456 = vmatmul.f32.vlgmr.msra.gmra.mxu3 %v1438_v27  ;;  %1489 = vmatmul.f32.vlgmr.msrb.gmra.mxu0 %v1471_v14 }
 0x8e9   :  { %v1898_v22 = vpop.eup %1897 }
 0x8ea   :  { %v1435_v5 = vadd.f32 1.0, %v1898_v22 }
 0x8ec   :  { %v1437_v29 = vmul.f32 0.5, %v1435_v5 }
 0x8ee   :  { %v1439_v62 = vadd.f32 %v1437_v29, %v1404_v61  ;;  %v1472_v58 = vadd.f32 %v1437_v29, %v3187_v59 }
 0x8f0   :  { %1459 = vmatmul.f32.gmra.mxu3 %v1439_v62  ;;  %1492 = vmatmul.f32.gmra.mxu0 %v1472_v58  ;;  %v1996_v62 = vld [vmem:[%s3274_s3] ss:$0 sm:$0xff] }
 0x965   :  { %v1490_v60 = vpop.f32.mrf.mxu0 }
 0x966   :  { %v1491_v24 = vadd.f32 %v3218_v42, %v1490_v60 }
 0x968   :  { %v1496_v30 = vmul.f32 0.5, %v1491_v24  ;;  %v1997_v24 = vld [vmem:[%s3275_s4] ss:$0 sm:$0xff] }
 0x96a   :  { %1899 = vtanh.f32 %v1496_v30 }
 0x96d   :  { %v1493_v33 = vpop.f32.mrf.mxu0 }
 0x96e   :  { %v1494_v9 = vadd.f32 %v3218_v42, %v1493_v33 }
 0x970   :  { %v1900_v13 = vpop.eup %1899  ;;  %v1497_v4 = vmul.f32 0.5, %v1494_v9 }
 0x971   :  { %v1500_v43 = vadd.f32 1.0, %v1900_v13 }
 0x972   :  { %1901 = vtanh.f32 %v1497_v4 }
 0x973   :  { %v1502_v38 = vmul.f32 0.5, %v1500_v43 }
 0x975   :  { %v1504_v59 = vrot.slane %v1502_v38, 4 }
 0x977   :  { %v1505_v47 = vadd.f32 %v1504_v59, %v1502_v38 }
 0x978   :  { %v1902_v46 = vpop.eup %1901 }
 0x979   :  { %v1506_v50 = vrot.slane %v1505_v47, 2  ;;  %v1501_v7 = vadd.f32 1.0, %v1902_v46  ;;  %v3241_v46 = vld [vmem:[%s3272_s2 + $0x1] ss:$0 sm:$0xff] }
 0x97b   :  { %v1507_v45 = vadd.f32 %v1506_v50, %v1505_v47  ;;  %v1503_v17 = vmul.f32 0.5, %v1501_v7 }
 0x97d   :  { %v1508_v51 = vrot.slane %v1507_v45, 1  ;;  %v1510_v55 = vrot.slane %v1503_v17, 4 }
 0x97f   :  { %v1509_v52 = vadd.f32 %v1508_v51, %v1507_v45  ;;  %v1511_v36 = vadd.f32 %v1510_v55, %v1503_v17 }
 0x981   :  { %v1516_v6 = vmul.f32 %v1509_v52, %v2474_v40  ;;  %v1512_v11 = vrot.slane %v1511_v36, 2 }
 0x983   :  { %v1518_v15 = vsub.f32 %v1502_v38, %v1516_v6  ;;  %v1513_v19 = vadd.f32 %v1512_v11, %v1511_v36  ;;  %v1457_v38 = vpop.f32.mrf.mxu3 }
 0x984   :  { %v1458_v50 = vadd.f32 %v3241_v46, %v1457_v38 }
 0x985   :  { %v1520_v23 = vmul.f32 %v1518_v15, %v1518_v15  ;;  %v1514_v26 = vrot.slane %v1513_v19, 1 }
 0x986   :  { %v1463_v7 = vmul.f32 0.5, %v1458_v50 }
 0x987   :  { %v1522_v34 = vrot.slane %v1520_v23, 4  ;;  %v1515_v48 = vadd.f32 %v1514_v26, %v1513_v19 }
 0x989   :  { %v1523_v28 = vadd.f32 %v1522_v34, %v1520_v23  ;;  %v1517_v32 = vmul.f32 %v1515_v48, %v2474_v40 }
 0x98b   :  { %v1524_v54 = vrot.slane %v1523_v28, 2  ;;  %v1519_v56 = vsub.f32 %v1503_v17, %v1517_v32  ;;  %v1460_v45 = vpop.f32.mrf.mxu3 }
 0x98c   :  { %v1461_v17 = vadd.f32 %v3241_v46, %v1460_v45 }
 0x98d   :  { %v1525_v44 = vadd.f32 %v1524_v54, %v1523_v28  ;;  %v1521_v57 = vmul.f32 %v1519_v56, %v1519_v56 }
 0x98e   :  { %v1464_v51 = vmul.f32 0.5, %v1461_v17 }
 0x98f   :  { %v1526_v10 = vrot.slane %v1525_v44, 1  ;;  %v1528_v31 = vrot.slane %v1521_v57, 4 }
 0x991   :  { %v1527_v12 = vadd.f32 %v1526_v10, %v1525_v44  ;;  %v1529_v16 = vadd.f32 %v1528_v31, %v1521_v57 }
 0x993   :  { %v1534_v63 = vmul.f32 %v1527_v12, %v2474_v40  ;;  %v1530_v8 = vrot.slane %v1529_v16, 2 }
 0x995   :  { %v1536_v21 = vadd.f32 1e-05, %v1534_v63  ;;  %v1531_v0 = vadd.f32 %v1530_v8, %v1529_v16 }
 0x997   :  { %1903 = vrsqrt.f32 %v1536_v21  ;;  %v1532_v35 = vrot.slane %v1531_v0, 1  ;;  %vm1544_vm10 = vweird.f32 %v1536_v21 }
 0x999   :  { %v1533_v37 = vadd.f32 %v1532_v35, %v1531_v0 }
 0x99b   :  { %v1535_v41 = vmul.f32 %v1533_v37, %v2474_v40 }
 0x99d   :  { %v1904_v20 = vpop.eup %1903  ;;  %v1537_v2 = vadd.f32 1e-05, %v1535_v41 }
 0x99e   :  { %v1539_v1 = vmul.f32 %v1904_v20, %v1536_v21  ;;  %vm1545_vm9 = vweird.f32 %v1904_v20 }
 0x99f   :  { %1905 = vrsqrt.f32 %v1537_v2  ;;  %vm1546_vm11 = vmor %vm1544_vm10, %vm1545_vm9  ;;  %vm1554_vm13 = vweird.f32 %v1537_v2 }
 0x9a0   :  { %v1540_v3 = vmul.f32 %v1904_v20, %v1539_v1  ;;  %1907 = vtanh.f32 %v1463_v7 }
 0x9a1   :  { %1909 = vtanh.f32 %v1464_v51  ;;  %v1999_v51 = vld [vmem:[%s3274_s3 + $0x1] ss:$0 sm:$0xff] }
 0x9a2   :  { %v1541_v39 = vmul.f32 0.5, %v1540_v3 }
 0x9a4   :  { %v1542_v27 = vsub.f32 1.5, %v1541_v39 }
 0x9a5   :  { %v1906_v14 = vpop.eup %1905 }
 0x9a6   :  { %v1543_v49 = vmul.f32 %v1904_v20, %v1542_v27  ;;  %v1549_v22 = vmul.f32 %v1906_v14, %v1537_v2  ;;  %vm1555_vm12 = vweird.f32 %v1906_v14  ;;  %v1908_v55 = vpop.eup %1907 }
 0x9a7   :  { %vm1556_vm14 = vmor %vm1554_vm13, %vm1555_vm12  ;;  %v1467_v52 = vadd.f32 1.0, %v1908_v55  ;;  %v1910_v6 = vpop.eup %1909 }
 0x9a8   :  { %v1547_v5 = vsel %vm1546_vm11, %v1904_v20, %v1543_v49  ;;  %v1550_v29 = vmul.f32 %v1906_v14, %v1549_v22 }
 0x9a9   :  { %v1558_v61 = vmul.f32 %v1547_v5, %v1518_v15  ;;  %v1469_v36 = vmul.f32 0.5, %v1467_v52  ;;  %v1468_v15 = vadd.f32 1.0, %v1910_v6 }
 0x9aa   :  { %v1551_v60 = vmul.f32 0.5, %v1550_v29 }
 0x9ab   :  { %v1560_v58 = vmul.f32 %v1996_v62, %v1558_v61  ;;  %v1564_v11 = vrot.slane %v1469_v36, 4  ;;  %v1470_v23 = vmul.f32 0.5, %v1468_v15 }
 0x9ac   :  { %v1552_v33 = vsub.f32 1.5, %v1551_v60 }
 0x9ad   :  { %v3232_v30 = vadd.f32 %v1997_v24, %v1560_v58  ;;  %v1565_v19 = vadd.f32 %v1564_v11, %v1469_v36  ;;  %v1570_v34 = vrot.slane %v1470_v23, 4 }
 0x9ae   :  { %v1553_v13 = vmul.f32 %v1906_v14, %v1552_v33 }
 0x9af   :  { %v1624_v9 = vadd.f32 %v3181_v53, %v3232_v30  ;;  %v1566_v26 = vrot.slane %v1565_v19, 2 }
 0x9b0   :  { %v1557_v43 = vsel %vm1556_vm14, %v1906_v14, %v1553_v13 }
 0x9b1   :  { %1642 = vmatmul.f32.vlgmr.msrb.gmra.mxu1 %v1624_v9  ;;  %v1559_v4 = vmul.f32 %v1557_v43, %v1519_v56  ;;  %v1567_v48 = vadd.f32 %v1566_v26, %v1565_v19  ;;  %v2000_v19 = vld [vmem:[%s3275_s4 + $0x1] ss:$0 sm:$0xff] }
 0x9b3   :  { %v1561_v59 = vmul.f32 %v1996_v62, %v1559_v4  ;;  %v1568_v28 = vrot.slane %v1567_v48, 1 }
 0x9b5   :  { %v3236_v47 = vadd.f32 %v1997_v24, %v1561_v59  ;;  %v1569_v54 = vadd.f32 %v1568_v28, %v1567_v48 }
 0x9b7   :  { %v1625_v53 = vadd.f32 %v3192_v25, %v3236_v47  ;;  %v1571_v25 = vadd.f32 %v1570_v34, %v1470_v23  ;;  %v1576_v44 = vmul.f32 %v1569_v54, %v2474_v40 }
 0x9b9   :  { %1645 = vmatmul.f32.gmra.mxu1 %v1625_v53  ;;  %v1572_v32 = vrot.slane %v1571_v25, 2  ;;  %v1578_v10 = vsub.f32 %v1469_v36, %v1576_v44 }
 0x9bb   :  { %v1573_v56 = vadd.f32 %v1572_v32, %v1571_v25  ;;  %v1580_v12 = vmul.f32 %v1578_v10, %v1578_v10 }
 0x9bd   :  { %v1574_v57 = vrot.slane %v1573_v56, 1  ;;  %v1582_v63 = vrot.slane %v1580_v12, 4 }
 0x9bf   :  { %v1575_v31 = vadd.f32 %v1574_v57, %v1573_v56  ;;  %v1583_v21 = vadd.f32 %v1582_v63, %v1580_v12 }
 0x9c1   :  { %v1577_v16 = vmul.f32 %v1575_v31, %v2474_v40  ;;  %v1584_v35 = vrot.slane %v1583_v21, 2 }
 0x9c3   :  { %v1579_v8 = vsub.f32 %v1470_v23, %v1577_v16  ;;  %v1585_v41 = vadd.f32 %v1584_v35, %v1583_v21 }
 0x9c5   :  { %v1581_v0 = vmul.f32 %v1579_v8, %v1579_v8  ;;  %v1586_v1 = vrot.slane %v1585_v41, 1 }
 0x9c7   :  { %v1588_v37 = vrot.slane %v1581_v0, 4  ;;  %v1587_v3 = vadd.f32 %v1586_v1, %v1585_v41 }
 0x9c9   :  { %v1589_v20 = vadd.f32 %v1588_v37, %v1581_v0  ;;  %v1594_v27 = vmul.f32 %v1587_v3, %v2474_v40 }
 0x9cb   :  { %v1590_v2 = vrot.slane %v1589_v20, 2  ;;  %v1596_v49 = vadd.f32 1e-05, %v1594_v27 }
 0x9cd   :  { %v1591_v39 = vadd.f32 %v1590_v2, %v1589_v20  ;;  %1911 = vrsqrt.f32 %v1596_v49  ;;  %vm1604_vm0 = vweird.f32 %v1596_v49 }
 0x9cf   :  { %v1592_v14 = vrot.slane %v1591_v39, 1 }
 0x9d1   :  { %v1593_v22 = vadd.f32 %v1592_v14, %v1591_v39 }
 0x9d3   :  { %v1595_v5 = vmul.f32 %v1593_v22, %v2474_v40  ;;  %v1912_v29 = vpop.eup %1911 }
 0x9d4   :  { %v1599_v62 = vmul.f32 %v1912_v29, %v1596_v49  ;;  %vm1605_vm15 = vweird.f32 %v1912_v29 }
 0x9d5   :  { %v1597_v61 = vadd.f32 1e-05, %v1595_v5  ;;  %vm1606_vm1 = vmor %vm1604_vm0, %vm1605_vm15 }
 0x9d6   :  { %v1600_v58 = vmul.f32 %v1912_v29, %v1599_v62 }
 0x9d7   :  { %1913 = vrsqrt.f32 %v1597_v61  ;;  %vm1614_vm3 = vweird.f32 %v1597_v61 }
 0x9d8   :  { %v1601_v24 = vmul.f32 0.5, %v1600_v58 }
 0x9da   :  { %v1602_v9 = vsub.f32 1.5, %v1601_v24 }
 0x9dc   :  { %v1603_v43 = vmul.f32 %v1912_v29, %v1602_v9 }
 0x9dd   :  { %v1914_v60 = vpop.eup %1913 }
 0x9de   :  { %v1609_v33 = vmul.f32 %v1914_v60, %v1597_v61  ;;  %v1607_v50 = vsel %vm1606_vm1, %v1912_v29, %v1603_v43  ;;  %vm1615_vm2 = vweird.f32 %v1914_v60 }
 0x9df   :  { %v1618_v7 = vmul.f32 %v1607_v50, %v1578_v10  ;;  %vm1616_vm4 = vmor %vm1614_vm3, %vm1615_vm2 }
 0x9e0   :  { %v1610_v13 = vmul.f32 %v1914_v60, %v1609_v33 }
 0x9e1   :  { %v1620_v55 = vmul.f32 %v1999_v51, %v1618_v7 }
 0x9e2   :  { %v1611_v38 = vmul.f32 0.5, %v1610_v13 }
 0x9e3   :  { %v1622_v23 = vadd.f32 %v2000_v19, %v1620_v55 }
 0x9e4   :  { %v1612_v53 = vsub.f32 1.5, %v1611_v38 }
 0x9e6   :  { %v1613_v45 = vmul.f32 %v1914_v60, %v1612_v53 }
 0x9e8   :  { %v1617_v15 = vsel %vm1616_vm4, %v1914_v60, %v1613_v45 }
 0x9e9   :  { %v1619_v34 = vmul.f32 %v1617_v15, %v1579_v8 }
 0xa2e   :  { %v1643_v4 = vpop.f32.mrf.mxu1 }
 0xa2f   :  { %v1644_v59 = vadd.f32 %v3205_v18, %v1643_v4 }
 0xa31   :  { %v1649_v40 = vmul.f32 0.5, %v1644_v59 }
 0xa33   :  { %1915 = vtanh.f32 %v1649_v40 }
 0xa36   :  { %v1646_v17 = vpop.f32.mrf.mxu1 }
 0xa37   :  { %v1647_v52 = vadd.f32 %v3205_v18, %v1646_v17  ;;  %v1621_v18 = vmul.f32 %v1999_v51, %v1619_v34 }
 0xa39   :  { %v1916_v36 = vpop.eup %1915  ;;  %v1650_v11 = vmul.f32 0.5, %v1647_v52  ;;  %v1623_v54 = vadd.f32 %v2000_v19, %v1621_v18 }
 0xa3a   :  { %v1653_v6 = vadd.f32 1.0, %v1916_v36 }
 0xa3b   :  { %1917 = vtanh.f32 %v1650_v11 }
 0xa3c   :  { %v1655_v26 = vmul.f32 0.5, %v1653_v6 }
 0xa3e   :  { %v1657_v48 = vadd.f32 %v1655_v26, %v1622_v23  ;;  %v1690_v25 = vadd.f32 %v1655_v26, %v3232_v30 }
 0xa40   :  { %1675 = vmatmul.f32.vlgmr.msrb.gmra.mxu2 %v1657_v48  ;;  %1708 = vmatmul.f32.vlgmr.msrb.gmra.mxu3 %v1690_v25 }
 0xa41   :  { %v1918_v28 = vpop.eup %1917 }
 0xa42   :  { %v1654_v32 = vadd.f32 1.0, %v1918_v28 }
 0xa44   :  { %v1656_v56 = vmul.f32 0.5, %v1654_v32 }
 0xa46   :  { %v1658_v44 = vadd.f32 %v1656_v56, %v1623_v54  ;;  %v1691_v57 = vadd.f32 %v1656_v56, %v3236_v47 }
 0xa48   :  { %1678 = vmatmul.f32.gmra.mxu2 %v1658_v44  ;;  %1711 = vmatmul.f32.gmra.mxu3 %v1691_v57 }
 0xac3   :  { %v1676_v10 = vpop.f32.mrf.mxu2  ;;  %v1709_v31 = vpop.f32.mrf.mxu3 }
 0xac4   :  { %v1677_v12 = vadd.f32 %v3241_v46, %v1676_v10  ;;  %v1710_v16 = vadd.f32 %v3218_v42, %v1709_v31 }
 0xac6   :  { %v1682_v63 = vmul.f32 0.5, %v1677_v12  ;;  %v1715_v30 = vmul.f32 0.5, %v1710_v16 }
 0xac8   :  { %1919 = vtanh.f32 %v1682_v63 }
 0xac9   :  { %1921 = vtanh.f32 %v1715_v30 }
 0xacb   :  { %v1679_v8 = vpop.f32.mrf.mxu2  ;;  %v1712_v21 = vpop.f32.mrf.mxu3 }
 0xacc   :  { %v1680_v0 = vadd.f32 %v3241_v46, %v1679_v8  ;;  %v1713_v35 = vadd.f32 %v3218_v42, %v1712_v21 }
 0xace   :  { %v1920_v37 = vpop.eup %1919  ;;  %v1683_v20 = vmul.f32 0.5, %v1680_v0  ;;  %v1716_v1 = vmul.f32 0.5, %v1713_v35 }
 0xacf   :  { %v1922_v47 = vpop.eup %1921  ;;  %v1686_v41 = vadd.f32 1.0, %v1920_v37 }
 0xad0   :  { %v1719_v2 = vadd.f32 1.0, %v1922_v47  ;;  %1923 = vtanh.f32 %v1683_v20 }
 0xad1   :  { %v1688_v3 = vmul.f32 0.5, %v1686_v41  ;;  %1925 = vtanh.f32 %v1716_v1 }
 0xad2   :  { %v1721_v39 = vmul.f32 0.5, %v1719_v2 }
 0xad4   :  { %v1723_v27 = vadd.f32 %v1721_v39, %v1688_v3 }
 0xad6   :  { %v1725_v14 = vmul.f32 0.5, %v1723_v27  ;;  %v1924_v49 = vpop.eup %1923 }
 0xad7   :  { %v1926_v22 = vpop.eup %1925  ;;  %v1687_v46 = vadd.f32 1.0, %v1924_v49 }
 0xad8   :  { %1727 = vst [vmem:[%s3276_s5] sm:$0xff] %v1725_v14  ;;  %v1720_v42 = vadd.f32 1.0, %v1926_v22 }
 0xad9   :  { %v1689_v5 = vmul.f32 0.5, %v1687_v46 }
 0xada   :  { %v1722_v61 = vmul.f32 0.5, %v1720_v42 }
 0xadc   :  { %v1724_v29 = vadd.f32 %v1722_v61, %v1689_v5 }
 0xade   :  { %v1726_v62 = vmul.f32 0.5, %v1724_v29 }
 0xae0   :  { %1728 = vst [vmem:[%s3276_s5 + $0x8] sm:$0xff] %v1726_v62 }

</bundles_post_ra>
